<compile_context>
chip_gen: v7x
topology: tpu7x:2x2x1
jax: 0.10.0
libtpu: 0.0.40
codegen_flags: <defaults>
</compile_context>

<pallas_src>
import jax
import jax.numpy as jnp
from jax.experimental import pallas as pl
from jax.experimental.pallas import tpu as pltpu

# ---- model constants (mirror PFNet7 defaults; input_dim chosen so the p4 slice is valid) ----
ELEM_TO_ID_LEN = 3            # len(elem_to_id): cand_p4 residual uses data.x[:, 3:7]
OUTPUT_DIM_ID = 6             # len(class_to_id)
OUTPUT_DIM_P4 = 4
INPUT_DIM = 8                 # must be >= ELEM_TO_ID_LEN + 4
HIDDEN_DIM = 32
SPACE_DIM = 2
K_NEAREST = 3
NEG_SLOPE = 0.01              # nn.LeakyReLU default slope
OUT_W = 128                   # lane-dense packed output width: [ids | p4 | zero pad]

# packed layer indices inside the stacked [NUM_LAYERS, 32, 32] weight tensor
(L_N1A, L_N1B, L_N1C, L_N1D,
 L_S, L_H,
 L_O1, L_O2M, L_O2X,
 L_N2A, L_N2B, L_N2C, L_N2D,
 L_N3AX, L_N3AI, L_N3B, L_N3C, L_N3D) = range(18)
NUM_LAYERS = 18


def _leaky(v):
    # LeakyReLU(0.01): one mul + max instead of cmp + select + mul.
    return jnp.maximum(v, NEG_SLOPE * v)


# --------------------------- stage 1: nn1 + lin_s + lin_h ---------------------------
def _stage1_kernel(x_ref, w_ref, b_ref, h_ref, s_ref, hp_ref):
    def lin(v, l):
        return (jnp.dot(v, w_ref[l], preferred_element_type=jnp.float32)
                + b_ref[l:l + 1, :])

    h = x_ref[...]                                   # [tile, 32] (zero-padded input)
    for l in (L_N1A, L_N1B, L_N1C, L_N1D):
        h = _leaky(lin(h, l))
    h_ref[...] = h
    s_ref[...] = lin(h, L_S)                         # learned coords; cols >= SPACE_DIM are 0
    hp_ref[...] = lin(h, L_H)                        # propagated features


# ---------------- stage 2: GravNet kNN + aggregation + nn2/nn3 ----------------
def _make_stage2_kernel(n_nodes, tile_m):
    def kernel(x_ref, h_ref, s_all_ref, hp_all_ref, w_ref, b_ref, out_ref):
        def lin(v, l):
            return (jnp.dot(v, w_ref[l], preferred_element_type=jnp.float32)
                    + b_ref[l:l + 1, :])

        row0 = pl.multiple_of(pl.program_id(0) * tile_m, tile_m)
        h_t = h_ref[...]                             # [tile, 32]
        s_all = s_all_ref[...]                       # [N, 32]
        hp_all = hp_all_ref[...]                     # [N, 32]
        s_t = s_all_ref[pl.ds(row0, tile_m), :]      # this tile's coordinates

        # pairwise squared distances via the Gram identity (MXU, not VPU loop)
        nt = (((1,), (1,)), ((), ()))                # contract last dim of both
        gram = jax.lax.dot_general(s_t, s_all, nt,
                                   preferred_element_type=jnp.float32)       # [tile, N]
        n2_t = jnp.sum(s_t * s_t, axis=-1, keepdims=True)                    # [tile, 1]
        n2_all = jax.lax.dot_general(jnp.ones((1, HIDDEN_DIM), jnp.float32),
                                     s_all * s_all, nt,
                                     preferred_element_type=jnp.float32)     # [1, N]
        D = jnp.maximum(n2_t + n2_all - 2.0 * gram, 0.0)                     # [tile, N]

        # iterative k-nearest-neighbor selection (self-edge included, as in
        # torch_cluster.knn). Selection matrices are stacked and sent through a
        # single MXU matmul; w = exp(-10 d^2) is applied after the matmul.
        col_ids = jax.lax.broadcasted_iota(jnp.int32, (tile_m, n_nodes), 1)
        sels, wks = [], []
        for _ in range(K_NEAREST):
            dmin = jnp.min(D, axis=1, keepdims=True)                         # [tile, 1]
            # TODO(synk): tie-break uses exact float equality with lowest-index
            # preference; exactly equidistant neighbors may order differently
            # from torch_cluster.knn.
            amin = jnp.min(jnp.where(D == dmin, col_ids, n_nodes),
                           axis=1, keepdims=True)
            onehot = (col_ids == amin).astype(jnp.float32)                   # [tile, N]
            sels.append(onehot)
            wks.append(jnp.exp(-10.0 * dmin))
            D = jnp.where(onehot > 0, jnp.float32(1e30), D)                  # mask selected

        sel = jnp.concatenate(sels, axis=0)                                  # [K*tile, N]
        msgs = jnp.dot(sel, hp_all, preferred_element_type=jnp.float32)      # [K*tile, 32]

        m = wks[0] * msgs[0:tile_m, :]
        acc_sum, acc_max = m, m
        for k in range(1, K_NEAREST):
            m = wks[k] * msgs[k * tile_m:(k + 1) * tile_m, :]
            acc_sum = acc_sum + m
            acc_max = jnp.maximum(acc_max, m)
        mean_agg = acc_sum * (1.0 / K_NEAREST)

        # lin_out1(h) + lin_out2([mean, max]) as three clean 32-wide matmuls
        # (wo2 split in the wrapper; bias slots for wo1 / wo2_max are zero).
        xx = _leaky(lin(h_t, L_O1) + lin(mean_agg, L_O2M) + lin(acc_max, L_O2X))
        # TODO(synk): new_edge_index returned by the custom GravNetConv is unused
        # downstream and is not materialized here.

        # ---------------- nn2 ----------------
        c = _leaky(lin(xx, L_N2A))
        c = _leaky(lin(c, L_N2B))
        c = _leaky(lin(c, L_N2C))
        ids_full = lin(c, L_N2D)                     # [tile, 32]; cols >= 6 are exactly 0

        # ---------------- nn3 (cat[x, cand_ids] via split, zero-padded weights) ----------------
        q = _leaky(lin(xx, L_N3AX) + lin(ids_full, L_N3AI))
        q = _leaky(lin(q, L_N3B))
        q = _leaky(lin(q, L_N3C))
        p4_full = lin(q, L_N3D)                      # [tile, 32]; cols >= 4 are 0

        resid = x_ref[:, ELEM_TO_ID_LEN:ELEM_TO_ID_LEN + OUTPUT_DIM_P4]      # data.x[:, 3:7]
        cand_p4 = resid + p4_full[:, 0:OUTPUT_DIM_P4]

        # single lane-dense packed output slab: [ids(6) | p4(4) | zeros]
        out_ref[...] = jnp.zeros_like(out_ref)
        out_ref[:, 0:OUTPUT_DIM_ID] = ids_full[:, 0:OUTPUT_DIM_ID]
        out_ref[:, OUTPUT_DIM_ID:OUTPUT_DIM_ID + OUTPUT_DIM_P4] = cand_p4

    return kernel


def _edge_sigmoid_kernel(ea_ref, ew_ref):
    ew_ref[...] = jax.nn.sigmoid(ea_ref[...])        # sigmoid(edge_weight), (1, E) layout


# --------------------------- parameter handling ---------------------------
def init_params(key):
    """Deterministic parameter init (torch-Linear-like uniform), weights as [in, out]."""
    def linear(k, fan_in, fan_out, bias=True):
        kw, kb = jax.random.split(k)
        bound = 1.0 / (fan_in ** 0.5)
        w = jax.random.uniform(kw, (fan_in, fan_out), jnp.float32, -bound, bound)
        if bias:
            b = jax.random.uniform(kb, (1, fan_out), jnp.float32, -bound, bound)
            return [w, b]
        return [w]

    keys = iter(jax.random.split(key, 20))
    params = []
    # nn1: 4 Linear layers
    params += linear(next(keys), INPUT_DIM, HIDDEN_DIM)
    params += linear(next(keys), HIDDEN_DIM, HIDDEN_DIM)
    params += linear(next(keys), HIDDEN_DIM, HIDDEN_DIM)
    params += linear(next(keys), HIDDEN_DIM, HIDDEN_DIM)
    # GravNetConv: lin_s, lin_h, lin_out1 (no bias), lin_out2
    params += linear(next(keys), HIDDEN_DIM, SPACE_DIM)
    params += linear(next(keys), HIDDEN_DIM, HIDDEN_DIM)
    params += linear(next(keys), HIDDEN_DIM, HIDDEN_DIM, bias=False)
    params += linear(next(keys), 2 * HIDDEN_DIM, HIDDEN_DIM)
    # nn2
    params += linear(next(keys), HIDDEN_DIM, HIDDEN_DIM)
    params += linear(next(keys), HIDDEN_DIM, HIDDEN_DIM)
    params += linear(next(keys), HIDDEN_DIM, HIDDEN_DIM)
    params += linear(next(keys), HIDDEN_DIM, OUTPUT_DIM_ID)
    # nn3
    params += linear(next(keys), HIDDEN_DIM + OUTPUT_DIM_ID, HIDDEN_DIM)
    params += linear(next(keys), HIDDEN_DIM, HIDDEN_DIM)
    params += linear(next(keys), HIDDEN_DIM, HIDDEN_DIM)
    params += linear(next(keys), HIDDEN_DIM, OUTPUT_DIM_P4)
    return params


def _pack_params(params):
    """Pack the 31 Linear params into one [18,32,32] weight stack + [18,32] bias stack."""
    (w1a, b1a, w1b, b1b, w1c, b1c, w1d, b1d,
     ws, bs, wh, bh, wo1, wo2, bo2,
     w2a, b2a, w2b, b2b, w2c, b2c, w2d, b2d,
     w3a, b3a, w3b, b3b, w3c, b3c, w3d, b3d) = params
    H = HIDDEN_DIM

    def pad_w(w):
        return jnp.pad(w, ((0, H - w.shape[0]), (0, H - w.shape[1])))

    def pad_b(b):
        b = b.reshape(-1)
        return jnp.pad(b, (0, H - b.shape[0]))

    zeros_b = jnp.zeros((H,), jnp.float32)
    w_list = [w1a, w1b, w1c, w1d,                 # nn1
              ws, wh,                             # lin_s (cols padded), lin_h
              wo1, wo2[:H, :], wo2[H:, :],        # lin_out1, lin_out2 split (mean/max)
              w2a, w2b, w2c, w2d,                 # nn2 (last cols padded)
              w3a[:H, :], w3a[H:, :],             # nn3 first layer split (x / cand_ids)
              w3b, w3c, w3d]                      # nn3 rest (last cols padded)
    b_list = [b1a, b1b, b1c, b1d,
              bs, bh,
              None, bo2, None,                    # wo1 no bias; bo2 added once (mean slot)
              b2a, b2b, b2c, b2d,
              b3a, None,                          # b3a added once (x slot)
              b3b, b3c, b3d]
    W = jnp.stack([pad_w(w) for w in w_list])
    B = jnp.stack([pad_b(b) if b is not None else zeros_b for b in b_list])
    return W, B


# --------------------------- forward wrapper ---------------------------
def pfnet7_forward(x, edge_attr, params):
    """Returns (sigmoid(edge_weight), cand_ids, cand_p4) like PFNet7.forward."""
    n = x.shape[0]
    e = edge_attr.shape[0]
    W, B = _pack_params(params)
    x_pad = jnp.pad(x, ((0, 0), (0, HIDDEN_DIM - x.shape[1])))

    # 128-row node tiles map cleanly onto every MXU generation; fall back to a
    # single whole-graph tile when N is not a multiple of 128.
    # TODO(synk): pad/mask the node axis to tile arbitrary N.
    tile_m = 128 if (n % 128 == 0) else n
    n_tiles = n // tile_m

    node_spec = pl.BlockSpec((tile_m, HIDDEN_DIM), lambda i: (i, 0))
    full_nodes_spec = pl.BlockSpec((n, HIDDEN_DIM), lambda i: (0, 0))
    w_spec = pl.BlockSpec((NUM_LAYERS, HIDDEN_DIM, HIDDEN_DIM), lambda i: (0, 0, 0))
    b_spec = pl.BlockSpec((NUM_LAYERS, HIDDEN_DIM), lambda i: (0, 0))
    parallel = pltpu.CompilerParams(dimension_semantics=("parallel",))

    h, s, hp = pl.pallas_call(
        _stage1_kernel,
        grid=(n_tiles,),
        in_specs=[node_spec, w_spec, b_spec],
        out_specs=(node_spec, node_spec, node_spec),
        out_shape=tuple(jax.ShapeDtypeStruct((n, HIDDEN_DIM), jnp.float32)
                        for _ in range(3)),
        compiler_params=parallel,
    )(x_pad, W, B)

    packed = pl.pallas_call(
        _make_stage2_kernel(n, tile_m),
        grid=(n_tiles,),
        in_specs=[node_spec, node_spec, full_nodes_spec, full_nodes_spec,
                  w_spec, b_spec],
        out_specs=pl.BlockSpec((tile_m, OUT_W), lambda i: (i, 0)),
        out_shape=jax.ShapeDtypeStruct((n, OUT_W), jnp.float32),
        compiler_params=parallel,
    )(x_pad, h, s, hp, W, B)

    ew = pl.pallas_call(
        _edge_sigmoid_kernel,
        out_shape=jax.ShapeDtypeStruct((1, e), jnp.float32),
        in_specs=[pl.BlockSpec(memory_space=pltpu.MemorySpace.VMEM)],
        out_specs=pl.BlockSpec(memory_space=pltpu.MemorySpace.VMEM),
    )(edge_attr.reshape(1, e))

    cand_ids = packed[:, :OUTPUT_DIM_ID]
    cand_p4 = packed[:, OUTPUT_DIM_ID:OUTPUT_DIM_ID + OUTPUT_DIM_P4]
    return ew[0], cand_ids, cand_p4


if __name__ == "__main__":
    key = jax.random.PRNGKey(0)
    kx, ke, kp = jax.random.split(key, 3)
    N, E = 128, 64
    x = jax.random.normal(kx, (N, INPUT_DIM), jnp.float32)          # data.x
    edge_attr = jax.random.normal(ke, (E, 1), jnp.float32)          # data.edge_attr
    params = init_params(kp)

    edge_w, cand_ids, cand_p4 = jax.jit(pfnet7_forward)(x, edge_attr, params)
    jax.block_until_ready((edge_w, cand_ids, cand_p4))

    assert edge_w.shape == (E,)
    assert cand_ids.shape == (N, OUTPUT_DIM_ID)
    assert cand_p4.shape == (N, OUTPUT_DIM_P4)
    assert bool(jnp.all(jnp.isfinite(edge_w)))
    assert bool(jnp.all(jnp.isfinite(cand_ids)))
    assert bool(jnp.all(jnp.isfinite(cand_p4)))
    print("KERNEL_OK")
</pallas_src>

<mosaic_0001>
module attributes {stable_mosaic.version = 11 : i64} {
  func.func @_stage1_kernel(%arg0: i32, %arg1: memref<128x32xf32, #tpu.memory_space<vmem>>, %arg2: memref<18x32x32xf32, #tpu.memory_space<vmem>>, %arg3: memref<18x32xf32, #tpu.memory_space<vmem>>, %arg4: memref<128x32xf32, #tpu.memory_space<vmem>>, %arg5: memref<128x32xf32, #tpu.memory_space<vmem>>, %arg6: memref<128x32xf32, #tpu.memory_space<vmem>>) attributes {dimension_semantics = [#tpu.dimension_semantics<parallel>], iteration_bounds = array<i64: 1>, scalar_prefetch = 0 : i64, scratch_operands = 0 : i64, tpu.core_type = #tpu.core_type<tc>, window_params = [{transform_indices = @transform_0, window_bounds = array<i64: 128, 32>}, {pipeline_mode = #tpu.pipeline_mode<synchronous>, transform_indices = @transform_1, window_bounds = array<i64: 18, 32, 32>}, {pipeline_mode = #tpu.pipeline_mode<synchronous>, transform_indices = @transform_2, window_bounds = array<i64: 18, 32>}, {transform_indices = @transform_3, window_bounds = array<i64: 128, 32>}, {transform_indices = @transform_4, window_bounds = array<i64: 128, 32>}, {transform_indices = @transform_5, window_bounds = array<i64: 128, 32>}]} {
    %c0 = arith.constant 0 : index
    %c0_0 = arith.constant 0 : index
    %0 = vector.load %arg1[%c0, %c0_0] : memref<128x32xf32, #tpu.memory_space<vmem>>, vector<128x32xf32>
    %c0_1 = arith.constant 0 : index
    %c0_2 = arith.constant 0 : index
    %c0_3 = arith.constant 0 : index
    %1 = vector.load %arg2[%c0_1, %c0_2, %c0_3] : memref<18x32x32xf32, #tpu.memory_space<vmem>>, vector<1x32x32xf32>
    %2 = vector.shape_cast %1 : vector<1x32x32xf32> to vector<32x32xf32>
    %cst = arith.constant dense<0.000000e+00> : vector<128x32xf32>
    %3 = tpu.matmul %0, %2, %cst {dimension_numbers = #tpu.dot_dimension_numbers<[1], [0], [0], [1], [0, 0, 1, 1], [], []>} : vector<128x32xf32>, vector<32x32xf32>, vector<128x32xf32> -> vector<128x32xf32>
    %c0_4 = arith.constant 0 : index
    %c0_5 = arith.constant 0 : index
    %4 = vector.load %arg3[%c0_4, %c0_5] : memref<18x32xf32, #tpu.memory_space<vmem>>, vector<1x32xf32>
    %5 = vector.broadcast %4 : vector<1x32xf32> to vector<128x32xf32>
    %6 = arith.addf %3, %5 : vector<128x32xf32>
    %cst_6 = arith.constant 0.00999999977 : f32
    %7 = vector.broadcast %cst_6 : f32 to vector<128x32xf32>
    %8 = arith.mulf %7, %6 : vector<128x32xf32>
    %9 = arith.maximumf %6, %8 : vector<128x32xf32>
    %c1 = arith.constant 1 : index
    %c0_7 = arith.constant 0 : index
    %c0_8 = arith.constant 0 : index
    %10 = vector.load %arg2[%c1, %c0_7, %c0_8] : memref<18x32x32xf32, #tpu.memory_space<vmem>>, vector<1x32x32xf32>
    %11 = vector.shape_cast %10 : vector<1x32x32xf32> to vector<32x32xf32>
    %cst_9 = arith.constant dense<0.000000e+00> : vector<128x32xf32>
    %12 = tpu.matmul %9, %11, %cst_9 {dimension_numbers = #tpu.dot_dimension_numbers<[1], [0], [0], [1], [0, 0, 1, 1], [], []>} : vector<128x32xf32>, vector<32x32xf32>, vector<128x32xf32> -> vector<128x32xf32>
    %c1_10 = arith.constant 1 : index
    %c0_11 = arith.constant 0 : index
    %13 = vector.load %arg3[%c1_10, %c0_11] : memref<18x32xf32, #tpu.memory_space<vmem>>, vector<1x32xf32>
    %14 = vector.broadcast %13 : vector<1x32xf32> to vector<128x32xf32>
    %15 = arith.addf %12, %14 : vector<128x32xf32>
    %cst_12 = arith.constant 0.00999999977 : f32
    %16 = vector.broadcast %cst_12 : f32 to vector<128x32xf32>
    %17 = arith.mulf %16, %15 : vector<128x32xf32>
    %18 = arith.maximumf %15, %17 : vector<128x32xf32>
    %c2 = arith.constant 2 : index
    %c0_13 = arith.constant 0 : index
    %c0_14 = arith.constant 0 : index
    %19 = vector.load %arg2[%c2, %c0_13, %c0_14] : memref<18x32x32xf32, #tpu.memory_space<vmem>>, vector<1x32x32xf32>
    %20 = vector.shape_cast %19 : vector<1x32x32xf32> to vector<32x32xf32>
    %cst_15 = arith.constant dense<0.000000e+00> : vector<128x32xf32>
    %21 = tpu.matmul %18, %20, %cst_15 {dimension_numbers = #tpu.dot_dimension_numbers<[1], [0], [0], [1], [0, 0, 1, 1], [], []>} : vector<128x32xf32>, vector<32x32xf32>, vector<128x32xf32> -> vector<128x32xf32>
    %c2_16 = arith.constant 2 : index
    %c0_17 = arith.constant 0 : index
    %22 = vector.load %arg3[%c2_16, %c0_17] : memref<18x32xf32, #tpu.memory_space<vmem>>, vector<1x32xf32>
    %23 = vector.broadcast %22 : vector<1x32xf32> to vector<128x32xf32>
    %24 = arith.addf %21, %23 : vector<128x32xf32>
    %cst_18 = arith.constant 0.00999999977 : f32
    %25 = vector.broadcast %cst_18 : f32 to vector<128x32xf32>
    %26 = arith.mulf %25, %24 : vector<128x32xf32>
    %27 = arith.maximumf %24, %26 : vector<128x32xf32>
    %c3 = arith.constant 3 : index
    %c0_19 = arith.constant 0 : index
    %c0_20 = arith.constant 0 : index
    %28 = vector.load %arg2[%c3, %c0_19, %c0_20] : memref<18x32x32xf32, #tpu.memory_space<vmem>>, vector<1x32x32xf32>
    %29 = vector.shape_cast %28 : vector<1x32x32xf32> to vector<32x32xf32>
    %cst_21 = arith.constant dense<0.000000e+00> : vector<128x32xf32>
    %30 = tpu.matmul %27, %29, %cst_21 {dimension_numbers = #tpu.dot_dimension_numbers<[1], [0], [0], [1], [0, 0, 1, 1], [], []>} : vector<128x32xf32>, vector<32x32xf32>, vector<128x32xf32> -> vector<128x32xf32>
    %c3_22 = arith.constant 3 : index
    %c0_23 = arith.constant 0 : index
    %31 = vector.load %arg3[%c3_22, %c0_23] : memref<18x32xf32, #tpu.memory_space<vmem>>, vector<1x32xf32>
    %32 = vector.broadcast %31 : vector<1x32xf32> to vector<128x32xf32>
    %33 = arith.addf %30, %32 : vector<128x32xf32>
    %cst_24 = arith.constant 0.00999999977 : f32
    %34 = vector.broadcast %cst_24 : f32 to vector<128x32xf32>
    %35 = arith.mulf %34, %33 : vector<128x32xf32>
    %36 = arith.maximumf %33, %35 : vector<128x32xf32>
    %c0_25 = arith.constant 0 : index
    %c0_26 = arith.constant 0 : index
    %37 = vector.load %arg4[%c0_25, %c0_26] : memref<128x32xf32, #tpu.memory_space<vmem>>, vector<128x32xf32>
    tpu.vector_store %arg4[%c0_25, %c0_26], %36 {strides = array<i32>} : memref<128x32xf32, #tpu.memory_space<vmem>>, vector<128x32xf32>,
    %c4 = arith.constant 4 : index
    %c0_27 = arith.constant 0 : index
    %c0_28 = arith.constant 0 : index
    %38 = vector.load %arg2[%c4, %c0_27, %c0_28] : memref<18x32x32xf32, #tpu.memory_space<vmem>>, vector<1x32x32xf32>
    %39 = vector.shape_cast %38 : vector<1x32x32xf32> to vector<32x32xf32>
    %cst_29 = arith.constant dense<0.000000e+00> : vector<128x32xf32>
    %40 = tpu.matmul %36, %39, %cst_29 {dimension_numbers = #tpu.dot_dimension_numbers<[1], [0], [0], [1], [0, 0, 1, 1], [], []>} : vector<128x32xf32>, vector<32x32xf32>, vector<128x32xf32> -> vector<128x32xf32>
    %c4_30 = arith.constant 4 : index
    %c0_31 = arith.constant 0 : index
    %41 = vector.load %arg3[%c4_30, %c0_31] : memref<18x32xf32, #tpu.memory_space<vmem>>, vector<1x32xf32>
    %42 = vector.broadcast %41 : vector<1x32xf32> to vector<128x32xf32>
    %43 = arith.addf %40, %42 : vector<128x32xf32>
    %c0_32 = arith.constant 0 : index
    %c0_33 = arith.constant 0 : index
    %44 = vector.load %arg5[%c0_32, %c0_33] : memref<128x32xf32, #tpu.memory_space<vmem>>, vector<128x32xf32>
    tpu.vector_store %arg5[%c0_32, %c0_33], %43 {strides = array<i32>} : memref<128x32xf32, #tpu.memory_space<vmem>>, vector<128x32xf32>,
    %c5 = arith.constant 5 : index
    %c0_34 = arith.constant 0 : index
    %c0_35 = arith.constant 0 : index
    %45 = vector.load %arg2[%c5, %c0_34, %c0_35] : memref<18x32x32xf32, #tpu.memory_space<vmem>>, vector<1x32x32xf32>
    %46 = vector.shape_cast %45 : vector<1x32x32xf32> to vector<32x32xf32>
    %cst_36 = arith.constant dense<0.000000e+00> : vector<128x32xf32>
    %47 = tpu.matmul %36, %46, %cst_36 {dimension_numbers = #tpu.dot_dimension_numbers<[1], [0], [0], [1], [0, 0, 1, 1], [], []>} : vector<128x32xf32>, vector<32x32xf32>, vector<128x32xf32> -> vector<128x32xf32>
    %c5_37 = arith.constant 5 : index
    %c0_38 = arith.constant 0 : index
    %48 = vector.load %arg3[%c5_37, %c0_38] : memref<18x32xf32, #tpu.memory_space<vmem>>, vector<1x32xf32>
    %49 = vector.broadcast %48 : vector<1x32xf32> to vector<128x32xf32>
    %50 = arith.addf %47, %49 : vector<128x32xf32>
    %c0_39 = arith.constant 0 : index
    %c0_40 = arith.constant 0 : index
    %51 = vector.load %arg6[%c0_39, %c0_40] : memref<128x32xf32, #tpu.memory_space<vmem>>, vector<128x32xf32>
    tpu.vector_store %arg6[%c0_39, %c0_40], %50 {strides = array<i32>} : memref<128x32xf32, #tpu.memory_space<vmem>>, vector<128x32xf32>,
    return
  }
  func.func @transform_0(%arg0: i32) -> (i32, i32) {
    %c0_i32 = arith.constant 0 : i32
    %c0_i32_0 = arith.constant 0 : i32
    return %arg0, %c0_i32 : i32, i32
  }
  func.func @transform_1(%arg0: i32) -> (i32, i32, i32) {
    %c0_i32 = arith.constant 0 : i32
    %c0_i32_0 = arith.constant 0 : i32
    %c0_i32_1 = arith.constant 0 : i32
    %c0_i32_2 = arith.constant 0 : i32
    return %c0_i32, %c0_i32_0, %c0_i32_1 : i32, i32, i32
  }
  func.func @transform_2(%arg0: i32) -> (i32, i32) {
    %c0_i32 = arith.constant 0 : i32
    %c0_i32_0 = arith.constant 0 : i32
    %c0_i32_1 = arith.constant 0 : i32
    return %c0_i32, %c0_i32_0 : i32, i32
  }
  func.func @transform_3(%arg0: i32) -> (i32, i32) {
    %c0_i32 = arith.constant 0 : i32
    %c0_i32_0 = arith.constant 0 : i32
    return %arg0, %c0_i32 : i32, i32
  }
  func.func @transform_4(%arg0: i32) -> (i32, i32) {
    %c0_i32 = arith.constant 0 : i32
    %c0_i32_0 = arith.constant 0 : i32
    return %arg0, %c0_i32 : i32, i32
  }
  func.func @transform_5(%arg0: i32) -> (i32, i32) {
    %c0_i32 = arith.constant 0 : i32
    %c0_i32_0 = arith.constant 0 : i32
    return %arg0, %c0_i32 : i32, i32
  }
}

module attributes {stable_mosaic.version = 11 : i64} {
  func.func @kernel(%arg0: i32, %arg1: memref<128x32xf32, #tpu.memory_space<vmem>>, %arg2: memref<128x32xf32, #tpu.memory_space<vmem>>, %arg3: memref<128x32xf32, #tpu.memory_space<vmem>>, %arg4: memref<128x32xf32, #tpu.memory_space<vmem>>, %arg5: memref<18x32x32xf32, #tpu.memory_space<vmem>>, %arg6: memref<18x32xf32, #tpu.memory_space<vmem>>, %arg7: memref<128x128xf32, #tpu.memory_space<vmem>>) attributes {dimension_semantics = [#tpu.dimension_semantics<parallel>], iteration_bounds = array<i64: 1>, scalar_prefetch = 0 : i64, scratch_operands = 0 : i64, tpu.core_type = #tpu.core_type<tc>, window_params = [{transform_indices = @transform_0, window_bounds = array<i64: 128, 32>}, {transform_indices = @transform_1, window_bounds = array<i64: 128, 32>}, {pipeline_mode = #tpu.pipeline_mode<synchronous>, transform_indices = @transform_2, window_bounds = array<i64: 128, 32>}, {pipeline_mode = #tpu.pipeline_mode<synchronous>, transform_indices = @transform_3, window_bounds = array<i64: 128, 32>}, {pipeline_mode = #tpu.pipeline_mode<synchronous>, transform_indices = @transform_4, window_bounds = array<i64: 18, 32, 32>}, {pipeline_mode = #tpu.pipeline_mode<synchronous>, transform_indices = @transform_5, window_bounds = array<i64: 18, 32>}, {transform_indices = @transform_6, window_bounds = array<i64: 128, 128>}]} {
    %c128_i32 = arith.constant 128 : i32
    %0 = arith.muli %arg0, %c128_i32 : i32
    %1 = tpu.assume_multiple %0, 128 : i32
    %c0 = arith.constant 0 : index
    %c0_0 = arith.constant 0 : index
    %2 = vector.load %arg2[%c0, %c0_0] : memref<128x32xf32, #tpu.memory_space<vmem>>, vector<128x32xf32>
    %c0_1 = arith.constant 0 : index
    %c0_2 = arith.constant 0 : index
    %3 = vector.load %arg3[%c0_1, %c0_2] : memref<128x32xf32, #tpu.memory_space<vmem>>, vector<128x32xf32>
    %c0_3 = arith.constant 0 : index
    %c0_4 = arith.constant 0 : index
    %4 = vector.load %arg4[%c0_3, %c0_4] : memref<128x32xf32, #tpu.memory_space<vmem>>, vector<128x32xf32>
    %5 = arith.index_cast %1 : i32 to index
    %c0_5 = arith.constant 0 : index
    %6 = vector.load %arg3[%5, %c0_5] : memref<128x32xf32, #tpu.memory_space<vmem>>, vector<128x32xf32>
    %cst = arith.constant dense<0.000000e+00> : vector<128x128xf32>
    %7 = tpu.matmul %6, %3, %cst {dimension_numbers = #tpu.dot_dimension_numbers<[1], [1], [0], [0], [0, 0, 1, 0], [], []>} : vector<128x32xf32>, vector<128x32xf32>, vector<128x128xf32> -> vector<128x128xf32>
    %8 = arith.mulf %6, %6 : vector<128x32xf32>
    %cst_6 = arith.constant dense<0.000000e+00> : vector<128xf32>
    %9 = vector.multi_reduction <add>, %8, %cst_6 [1] : vector<128x32xf32> to vector<128xf32>
    %10 = vector.shape_cast %9 : vector<128xf32> to vector<128x1xf32>
    %cst_7 = arith.constant 1.000000e+00 : f32
    %11 = vector.broadcast %cst_7 : f32 to vector<1x32xf32>
    %12 = arith.mulf %3, %3 : vector<128x32xf32>
    %cst_8 = arith.constant dense<0.000000e+00> : vector<1x128xf32>
    %13 = tpu.matmul %11, %12, %cst_8 {dimension_numbers = #tpu.dot_dimension_numbers<[1], [1], [0], [0], [0, 0, 1, 0], [], []>} : vector<1x32xf32>, vector<128x32xf32>, vector<1x128xf32> -> vector<1x128xf32>
    %14 = vector.broadcast %10 : vector<128x1xf32> to vector<128x128xf32>
    %15 = vector.broadcast %13 : vector<1x128xf32> to vector<128x128xf32>
    %16 = arith.addf %14, %15 : vector<128x128xf32>
    %cst_9 = arith.constant 2.000000e+00 : f32
    %17 = vector.broadcast %cst_9 : f32 to vector<128x128xf32>
    %18 = arith.mulf %17, %7 : vector<128x128xf32>
    %19 = arith.subf %16, %18 : vector<128x128xf32>
    %cst_10 = arith.constant 0.000000e+00 : f32
    %20 = vector.broadcast %cst_10 : f32 to vector<128x128xf32>
    %21 = arith.maximumf %19, %20 : vector<128x128xf32>
    %22 = tpu.iota {dimensions = array<i32: 1>} : vector<128x128xi32>
    %cst_11 = arith.constant dense<0x7F800000> : vector<128xf32>
    %23 = vector.multi_reduction <minimumf>, %21, %cst_11 [1] : vector<128x128xf32> to vector<128xf32>
    %24 = vector.shape_cast %23 : vector<128xf32> to vector<128x1xf32>
    %25 = vector.broadcast %24 : vector<128x1xf32> to vector<128x128xf32>
    %26 = arith.cmpf oeq, %21, %25 : vector<128x128xf32>
    %c128_i32_12 = arith.constant 128 : i32
    %27 = vector.broadcast %c128_i32_12 : i32 to vector<128x128xi32>
    %28 = arith.select %26, %22, %27 : vector<128x128xi1>, vector<128x128xi32>
    %cst_13 = arith.constant dense<2147483647> : vector<128xi32>
    %29 = vector.multi_reduction <minsi>, %28, %cst_13 [1] : vector<128x128xi32> to vector<128xi32>
    %30 = vector.shape_cast %29 : vector<128xi32> to vector<128x1xi32>
    %31 = vector.broadcast %30 : vector<128x1xi32> to vector<128x128xi32>
    %32 = arith.cmpi eq, %22, %31 : vector<128x128xi32>
    %33 = arith.extui %32 : vector<128x128xi1> to vector<128x128xi32>
    %34 = arith.sitofp %33 : vector<128x128xi32> to vector<128x128xf32>
    %cst_14 = arith.constant -1.000000e+01 : f32
    %35 = vector.broadcast %cst_14 : f32 to vector<128x1xf32>
    %36 = arith.mulf %35, %24 : vector<128x1xf32>
    %37 = math.exp %36 : vector<128x1xf32>
    %cst_15 = arith.constant 0.000000e+00 : f32
    %38 = vector.broadcast %cst_15 : f32 to vector<128x128xf32>
    %39 = arith.cmpf ogt, %34, %38 : vector<128x128xf32>
    %cst_16 = arith.constant 1.000000e+30 : f32
    %40 = vector.broadcast %cst_16 : f32 to vector<128x128xf32>
    %41 = arith.select %39, %40, %21 : vector<128x128xi1>, vector<128x128xf32>
    %cst_17 = arith.constant dense<0x7F800000> : vector<128xf32>
    %42 = vector.multi_reduction <minimumf>, %41, %cst_17 [1] : vector<128x128xf32> to vector<128xf32>
    %43 = vector.shape_cast %42 : vector<128xf32> to vector<128x1xf32>
    %44 = vector.broadcast %43 : vector<128x1xf32> to vector<128x128xf32>
    %45 = arith.cmpf oeq, %41, %44 : vector<128x128xf32>
    %c128_i32_18 = arith.constant 128 : i32
    %46 = vector.broadcast %c128_i32_18 : i32 to vector<128x128xi32>
    %47 = arith.select %45, %22, %46 : vector<128x128xi1>, vector<128x128xi32>
    %cst_19 = arith.constant dense<2147483647> : vector<128xi32>
    %48 = vector.multi_reduction <minsi>, %47, %cst_19 [1] : vector<128x128xi32> to vector<128xi32>
    %49 = vector.shape_cast %48 : vector<128xi32> to vector<128x1xi32>
    %50 = vector.broadcast %49 : vector<128x1xi32> to vector<128x128xi32>
    %51 = arith.cmpi eq, %22, %50 : vector<128x128xi32>
    %52 = arith.extui %51 : vector<128x128xi1> to vector<128x128xi32>
    %53 = arith.sitofp %52 : vector<128x128xi32> to vector<128x128xf32>
    %cst_20 = arith.constant -1.000000e+01 : f32
    %54 = vector.broadcast %cst_20 : f32 to vector<128x1xf32>
    %55 = arith.mulf %54, %43 : vector<128x1xf32>
    %56 = math.exp %55 : vector<128x1xf32>
    %cst_21 = arith.constant 0.000000e+00 : f32
    %57 = vector.broadcast %cst_21 : f32 to vector<128x128xf32>
    %58 = arith.cmpf ogt, %53, %57 : vector<128x128xf32>
    %cst_22 = arith.constant 1.000000e+30 : f32
    %59 = vector.broadcast %cst_22 : f32 to vector<128x128xf32>
    %60 = arith.select %58, %59, %41 : vector<128x128xi1>, vector<128x128xf32>
    %cst_23 = arith.constant dense<0x7F800000> : vector<128xf32>
    %61 = vector.multi_reduction <minimumf>, %60, %cst_23 [1] : vector<128x128xf32> to vector<128xf32>
    %62 = vector.shape_cast %61 : vector<128xf32> to vector<128x1xf32>
    %63 = vector.broadcast %62 : vector<128x1xf32> to vector<128x128xf32>
    %64 = arith.cmpf oeq, %60, %63 : vector<128x128xf32>
    %c128_i32_24 = arith.constant 128 : i32
    %65 = vector.broadcast %c128_i32_24 : i32 to vector<128x128xi32>
    %66 = arith.select %64, %22, %65 : vector<128x128xi1>, vector<128x128xi32>
    %cst_25 = arith.constant dense<2147483647> : vector<128xi32>
    %67 = vector.multi_reduction <minsi>, %66, %cst_25 [1] : vector<128x128xi32> to vector<128xi32>
    %68 = vector.shape_cast %67 : vector<128xi32> to vector<128x1xi32>
    %69 = vector.broadcast %68 : vector<128x1xi32> to vector<128x128xi32>
    %70 = arith.cmpi eq, %22, %69 : vector<128x128xi32>
    %71 = arith.extui %70 : vector<128x128xi1> to vector<128x128xi32>
    %72 = arith.sitofp %71 : vector<128x128xi32> to vector<128x128xf32>
    %cst_26 = arith.constant -1.000000e+01 : f32
    %73 = vector.broadcast %cst_26 : f32 to vector<128x1xf32>
    %74 = arith.mulf %73, %62 : vector<128x1xf32>
    %75 = math.exp %74 : vector<128x1xf32>
    %76 = tpu.concatenate %34, %53, %72 in 0 : vector<128x128xf32>, vector<128x128xf32>, vector<128x128xf32> -> vector<384x128xf32>
    %cst_27 = arith.constant dense<0.000000e+00> : vector<384x32xf32>
    %77 = tpu.matmul %76, %4, %cst_27 {dimension_numbers = #tpu.dot_dimension_numbers<[1], [0], [0], [1], [0, 0, 1, 1], [], []>} : vector<384x128xf32>, vector<128x32xf32>, vector<384x32xf32> -> vector<384x32xf32>
    %78 = vector.extract_strided_slice %77 {offsets = [0, 0], sizes = [128, 32], strides = [1, 1]} : vector<384x32xf32> to vector<128x32xf32>
    %79 = vector.broadcast %37 : vector<128x1xf32> to vector<128x32xf32>
    %80 = arith.mulf %79, %78 : vector<128x32xf32>
    %81 = vector.extract_strided_slice %77 {offsets = [128, 0], sizes = [128, 32], strides = [1, 1]} : vector<384x32xf32> to vector<128x32xf32>
    %82 = vector.broadcast %56 : vector<128x1xf32> to vector<128x32xf32>
    %83 = arith.mulf %82, %81 : vector<128x32xf32>
    %84 = arith.addf %80, %83 : vector<128x32xf32>
    %85 = arith.maximumf %80, %83 : vector<128x32xf32>
    %86 = vector.extract_strided_slice %77 {offsets = [256, 0], sizes = [128, 32], strides = [1, 1]} : vector<384x32xf32> to vector<128x32xf32>
    %87 = vector.broadcast %75 : vector<128x1xf32> to vector<128x32xf32>
    %88 = arith.mulf %87, %86 : vector<128x32xf32>
    %89 = arith.addf %84, %88 : vector<128x32xf32>
    %90 = arith.maximumf %85, %88 : vector<128x32xf32>
    %cst_28 = arith.constant 0.333333343 : f32
    %91 = vector.broadcast %cst_28 : f32 to vector<128x32xf32>
    %92 = arith.mulf %89, %91 : vector<128x32xf32>
    %c6 = arith.constant 6 : index
    %c0_29 = arith.constant 0 : index
    %c0_30 = arith.constant 0 : index
    %93 = vector.load %arg5[%c6, %c0_29, %c0_30] : memref<18x32x32xf32, #tpu.memory_space<vmem>>, vector<1x32x32xf32>
    %94 = vector.shape_cast %93 : vector<1x32x32xf32> to vector<32x32xf32>
    %cst_31 = arith.constant dense<0.000000e+00> : vector<128x32xf32>
    %95 = tpu.matmul %2, %94, %cst_31 {dimension_numbers = #tpu.dot_dimension_numbers<[1], [0], [0], [1], [0, 0, 1, 1], [], []>} : vector<128x32xf32>, vector<32x32xf32>, vector<128x32xf32> -> vector<128x32xf32>
    %c6_32 = arith.constant 6 : index
    %c0_33 = arith.constant 0 : index
    %96 = vector.load %arg6[%c6_32, %c0_33] : memref<18x32xf32, #tpu.memory_space<vmem>>, vector<1x32xf32>
    %97 = vector.broadcast %96 : vector<1x32xf32> to vector<128x32xf32>
    %98 = arith.addf %95, %97 : vector<128x32xf32>
    %c7 = arith.constant 7 : index
    %c0_34 = arith.constant 0 : index
    %c0_35 = arith.constant 0 : index
    %99 = vector.load %arg5[%c7, %c0_34, %c0_35] : memref<18x32x32xf32, #tpu.memory_space<vmem>>, vector<1x32x32xf32>
    %100 = vector.shape_cast %99 : vector<1x32x32xf32> to vector<32x32xf32>
    %cst_36 = arith.constant dense<0.000000e+00> : vector<128x32xf32>
    %101 = tpu.matmul %92, %100, %cst_36 {dimension_numbers = #tpu.dot_dimension_numbers<[1], [0], [0], [1], [0, 0, 1, 1], [], []>} : vector<128x32xf32>, vector<32x32xf32>, vector<128x32xf32> -> vector<128x32xf32>
    %c7_37 = arith.constant 7 : index
    %c0_38 = arith.constant 0 : index
    %102 = vector.load %arg6[%c7_37, %c0_38] : memref<18x32xf32, #tpu.memory_space<vmem>>, vector<1x32xf32>
    %103 = vector.broadcast %102 : vector<1x32xf32> to vector<128x32xf32>
    %104 = arith.addf %101, %103 : vector<128x32xf32>
    %105 = arith.addf %98, %104 : vector<128x32xf32>
    %c8 = arith.constant 8 : index
    %c0_39 = arith.constant 0 : index
    %c0_40 = arith.constant 0 : index
    %106 = vector.load %arg5[%c8, %c0_39, %c0_40] : memref<18x32x32xf32, #tpu.memory_space<vmem>>, vector<1x32x32xf32>
    %107 = vector.shape_cast %106 : vector<1x32x32xf32> to vector<32x32xf32>
    %cst_41 = arith.constant dense<0.000000e+00> : vector<128x32xf32>
    %108 = tpu.matmul %90, %107, %cst_41 {dimension_numbers = #tpu.dot_dimension_numbers<[1], [0], [0], [1], [0, 0, 1, 1], [], []>} : vector<128x32xf32>, vector<32x32xf32>, vector<128x32xf32> -> vector<128x32xf32>
    %c8_42 = arith.constant 8 : index
    %c0_43 = arith.constant 0 : index
    %109 = vector.load %arg6[%c8_42, %c0_43] : memref<18x32xf32, #tpu.memory_space<vmem>>, vector<1x32xf32>
    %110 = vector.broadcast %109 : vector<1x32xf32> to vector<128x32xf32>
    %111 = arith.addf %108, %110 : vector<128x32xf32>
    %112 = arith.addf %105, %111 : vector<128x32xf32>
    %cst_44 = arith.constant 0.00999999977 : f32
    %113 = vector.broadcast %cst_44 : f32 to vector<128x32xf32>
    %114 = arith.mulf %113, %112 : vector<128x32xf32>
    %115 = arith.maximumf %112, %114 : vector<128x32xf32>
    %c9 = arith.constant 9 : index
    %c0_45 = arith.constant 0 : index
    %c0_46 = arith.constant 0 : index
    %116 = vector.load %arg5[%c9, %c0_45, %c0_46] : memref<18x32x32xf32, #tpu.memory_space<vmem>>, vector<1x32x32xf32>
    %117 = vector.shape_cast %116 : vector<1x32x32xf32> to vector<32x32xf32>
    %cst_47 = arith.constant dense<0.000000e+00> : vector<128x32xf32>
    %118 = tpu.matmul %115, %117, %cst_47 {dimension_numbers = #tpu.dot_dimension_numbers<[1], [0], [0], [1], [0, 0, 1, 1], [], []>} : vector<128x32xf32>, vector<32x32xf32>, vector<128x32xf32> -> vector<128x32xf32>
    %c9_48 = arith.constant 9 : index
    %c0_49 = arith.constant 0 : index
    %119 = vector.load %arg6[%c9_48, %c0_49] : memref<18x32xf32, #tpu.memory_space<vmem>>, vector<1x32xf32>
    %120 = vector.broadcast %119 : vector<1x32xf32> to vector<128x32xf32>
    %121 = arith.addf %118, %120 : vector<128x32xf32>
    %cst_50 = arith.constant 0.00999999977 : f32
    %122 = vector.broadcast %cst_50 : f32 to vector<128x32xf32>
    %123 = arith.mulf %122, %121 : vector<128x32xf32>
    %124 = arith.maximumf %121, %123 : vector<128x32xf32>
    %c10 = arith.constant 10 : index
    %c0_51 = arith.constant 0 : index
    %c0_52 = arith.constant 0 : index
    %125 = vector.load %arg5[%c10, %c0_51, %c0_52] : memref<18x32x32xf32, #tpu.memory_space<vmem>>, vector<1x32x32xf32>
    %126 = vector.shape_cast %125 : vector<1x32x32xf32> to vector<32x32xf32>
    %cst_53 = arith.constant dense<0.000000e+00> : vector<128x32xf32>
    %127 = tpu.matmul %124, %126, %cst_53 {dimension_numbers = #tpu.dot_dimension_numbers<[1], [0], [0], [1], [0, 0, 1, 1], [], []>} : vector<128x32xf32>, vector<32x32xf32>, vector<128x32xf32> -> vector<128x32xf32>
    %c10_54 = arith.constant 10 : index
    %c0_55 = arith.constant 0 : index
    %128 = vector.load %arg6[%c10_54, %c0_55] : memref<18x32xf32, #tpu.memory_space<vmem>>, vector<1x32xf32>
    %129 = vector.broadcast %128 : vector<1x32xf32> to vector<128x32xf32>
    %130 = arith.addf %127, %129 : vector<128x32xf32>
    %cst_56 = arith.constant 0.00999999977 : f32
    %131 = vector.broadcast %cst_56 : f32 to vector<128x32xf32>
    %132 = arith.mulf %131, %130 : vector<128x32xf32>
    %133 = arith.maximumf %130, %132 : vector<128x32xf32>
    %c11 = arith.constant 11 : index
    %c0_57 = arith.constant 0 : index
    %c0_58 = arith.constant 0 : index
    %134 = vector.load %arg5[%c11, %c0_57, %c0_58] : memref<18x32x32xf32, #tpu.memory_space<vmem>>, vector<1x32x32xf32>
    %135 = vector.shape_cast %134 : vector<1x32x32xf32> to vector<32x32xf32>
    %cst_59 = arith.constant dense<0.000000e+00> : vector<128x32xf32>
    %136 = tpu.matmul %133, %135, %cst_59 {dimension_numbers = #tpu.dot_dimension_numbers<[1], [0], [0], [1], [0, 0, 1, 1], [], []>} : vector<128x32xf32>, vector<32x32xf32>, vector<128x32xf32> -> vector<128x32xf32>
    %c11_60 = arith.constant 11 : index
    %c0_61 = arith.constant 0 : index
    %137 = vector.load %arg6[%c11_60, %c0_61] : memref<18x32xf32, #tpu.memory_space<vmem>>, vector<1x32xf32>
    %138 = vector.broadcast %137 : vector<1x32xf32> to vector<128x32xf32>
    %139 = arith.addf %136, %138 : vector<128x32xf32>
    %cst_62 = arith.constant 0.00999999977 : f32
    %140 = vector.broadcast %cst_62 : f32 to vector<128x32xf32>
    %141 = arith.mulf %140, %139 : vector<128x32xf32>
    %142 = arith.maximumf %139, %141 : vector<128x32xf32>
    %c12 = arith.constant 12 : index
    %c0_63 = arith.constant 0 : index
    %c0_64 = arith.constant 0 : index
    %143 = vector.load %arg5[%c12, %c0_63, %c0_64] : memref<18x32x32xf32, #tpu.memory_space<vmem>>, vector<1x32x32xf32>
    %144 = vector.shape_cast %143 : vector<1x32x32xf32> to vector<32x32xf32>
    %cst_65 = arith.constant dense<0.000000e+00> : vector<128x32xf32>
    %145 = tpu.matmul %142, %144, %cst_65 {dimension_numbers = #tpu.dot_dimension_numbers<[1], [0], [0], [1], [0, 0, 1, 1], [], []>} : vector<128x32xf32>, vector<32x32xf32>, vector<128x32xf32> -> vector<128x32xf32>
    %c12_66 = arith.constant 12 : index
    %c0_67 = arith.constant 0 : index
    %146 = vector.load %arg6[%c12_66, %c0_67] : memref<18x32xf32, #tpu.memory_space<vmem>>, vector<1x32xf32>
    %147 = vector.broadcast %146 : vector<1x32xf32> to vector<128x32xf32>
    %148 = arith.addf %145, %147 : vector<128x32xf32>
    %c13 = arith.constant 13 : index
    %c0_68 = arith.constant 0 : index
    %c0_69 = arith.constant 0 : index
    %149 = vector.load %arg5[%c13, %c0_68, %c0_69] : memref<18x32x32xf32, #tpu.memory_space<vmem>>, vector<1x32x32xf32>
    %150 = vector.shape_cast %149 : vector<1x32x32xf32> to vector<32x32xf32>
    %cst_70 = arith.constant dense<0.000000e+00> : vector<128x32xf32>
    %151 = tpu.matmul %115, %150, %cst_70 {dimension_numbers = #tpu.dot_dimension_numbers<[1], [0], [0], [1], [0, 0, 1, 1], [], []>} : vector<128x32xf32>, vector<32x32xf32>, vector<128x32xf32> -> vector<128x32xf32>
    %c13_71 = arith.constant 13 : index
    %c0_72 = arith.constant 0 : index
    %152 = vector.load %arg6[%c13_71, %c0_72] : memref<18x32xf32, #tpu.memory_space<vmem>>, vector<1x32xf32>
    %153 = vector.broadcast %152 : vector<1x32xf32> to vector<128x32xf32>
    %154 = arith.addf %151, %153 : vector<128x32xf32>
    %c14 = arith.constant 14 : index
    %c0_73 = arith.constant 0 : index
    %c0_74 = arith.constant 0 : index
    %155 = vector.load %arg5[%c14, %c0_73, %c0_74] : memref<18x32x32xf32, #tpu.memory_space<vmem>>, vector<1x32x32xf32>
    %156 = vector.shape_cast %155 : vector<1x32x32xf32> to vector<32x32xf32>
    %cst_75 = arith.constant dense<0.000000e+00> : vector<128x32xf32>
    %157 = tpu.matmul %148, %156, %cst_75 {dimension_numbers = #tpu.dot_dimension_numbers<[1], [0], [0], [1], [0, 0, 1, 1], [], []>} : vector<128x32xf32>, vector<32x32xf32>, vector<128x32xf32> -> vector<128x32xf32>
    %c14_76 = arith.constant 14 : index
    %c0_77 = arith.constant 0 : index
    %158 = vector.load %arg6[%c14_76, %c0_77] : memref<18x32xf32, #tpu.memory_space<vmem>>, vector<1x32xf32>
    %159 = vector.broadcast %158 : vector<1x32xf32> to vector<128x32xf32>
    %160 = arith.addf %157, %159 : vector<128x32xf32>
    %161 = arith.addf %154, %160 : vector<128x32xf32>
    %cst_78 = arith.constant 0.00999999977 : f32
    %162 = vector.broadcast %cst_78 : f32 to vector<128x32xf32>
    %163 = arith.mulf %162, %161 : vector<128x32xf32>
    %164 = arith.maximumf %161, %163 : vector<128x32xf32>
    %c15 = arith.constant 15 : index
    %c0_79 = arith.constant 0 : index
    %c0_80 = arith.constant 0 : index
    %165 = vector.load %arg5[%c15, %c0_79, %c0_80] : memref<18x32x32xf32, #tpu.memory_space<vmem>>, vector<1x32x32xf32>
    %166 = vector.shape_cast %165 : vector<1x32x32xf32> to vector<32x32xf32>
    %cst_81 = arith.constant dense<0.000000e+00> : vector<128x32xf32>
    %167 = tpu.matmul %164, %166, %cst_81 {dimension_numbers = #tpu.dot_dimension_numbers<[1], [0], [0], [1], [0, 0, 1, 1], [], []>} : vector<128x32xf32>, vector<32x32xf32>, vector<128x32xf32> -> vector<128x32xf32>
    %c15_82 = arith.constant 15 : index
    %c0_83 = arith.constant 0 : index
    %168 = vector.load %arg6[%c15_82, %c0_83] : memref<18x32xf32, #tpu.memory_space<vmem>>, vector<1x32xf32>
    %169 = vector.broadcast %168 : vector<1x32xf32> to vector<128x32xf32>
    %170 = arith.addf %167, %169 : vector<128x32xf32>
    %cst_84 = arith.constant 0.00999999977 : f32
    %171 = vector.broadcast %cst_84 : f32 to vector<128x32xf32>
    %172 = arith.mulf %171, %170 : vector<128x32xf32>
    %173 = arith.maximumf %170, %172 : vector<128x32xf32>
    %c16 = arith.constant 16 : index
    %c0_85 = arith.constant 0 : index
    %c0_86 = arith.constant 0 : index
    %174 = vector.load %arg5[%c16, %c0_85, %c0_86] : memref<18x32x32xf32, #tpu.memory_space<vmem>>, vector<1x32x32xf32>
    %175 = vector.shape_cast %174 : vector<1x32x32xf32> to vector<32x32xf32>
    %cst_87 = arith.constant dense<0.000000e+00> : vector<128x32xf32>
    %176 = tpu.matmul %173, %175, %cst_87 {dimension_numbers = #tpu.dot_dimension_numbers<[1], [0], [0], [1], [0, 0, 1, 1], [], []>} : vector<128x32xf32>, vector<32x32xf32>, vector<128x32xf32> -> vector<128x32xf32>
    %c16_88 = arith.constant 16 : index
    %c0_89 = arith.constant 0 : index
    %177 = vector.load %arg6[%c16_88, %c0_89] : memref<18x32xf32, #tpu.memory_space<vmem>>, vector<1x32xf32>
    %178 = vector.broadcast %177 : vector<1x32xf32> to vector<128x32xf32>
    %179 = arith.addf %176, %178 : vector<128x32xf32>
    %cst_90 = arith.constant 0.00999999977 : f32
    %180 = vector.broadcast %cst_90 : f32 to vector<128x32xf32>
    %181 = arith.mulf %180, %179 : vector<128x32xf32>
    %182 = arith.maximumf %179, %181 : vector<128x32xf32>
    %c17 = arith.constant 17 : index
    %c0_91 = arith.constant 0 : index
    %c0_92 = arith.constant 0 : index
    %183 = vector.load %arg5[%c17, %c0_91, %c0_92] : memref<18x32x32xf32, #tpu.memory_space<vmem>>, vector<1x32x32xf32>
    %184 = vector.shape_cast %183 : vector<1x32x32xf32> to vector<32x32xf32>
    %cst_93 = arith.constant dense<0.000000e+00> : vector<128x32xf32>
    %185 = tpu.matmul %182, %184, %cst_93 {dimension_numbers = #tpu.dot_dimension_numbers<[1], [0], [0], [1], [0, 0, 1, 1], [], []>} : vector<128x32xf32>, vector<32x32xf32>, vector<128x32xf32> -> vector<128x32xf32>
    %c17_94 = arith.constant 17 : index
    %c0_95 = arith.constant 0 : index
    %186 = vector.load %arg6[%c17_94, %c0_95] : memref<18x32xf32, #tpu.memory_space<vmem>>, vector<1x32xf32>
    %187 = vector.broadcast %186 : vector<1x32xf32> to vector<128x32xf32>
    %188 = arith.addf %185, %187 : vector<128x32xf32>
    %c0_96 = arith.constant 0 : index
    %c3 = arith.constant 3 : index
    %189 = vector.load %arg1[%c0_96, %c3] : memref<128x32xf32, #tpu.memory_space<vmem>>, vector<128x4xf32>
    %190 = vector.extract_strided_slice %188 {offsets = [0, 0], sizes = [128, 4], strides = [1, 1]} : vector<128x32xf32> to vector<128x4xf32>
    %191 = arith.addf %189, %190 : vector<128x4xf32>
    %cst_97 = arith.constant 0.000000e+00 : f32
    %192 = vector.broadcast %cst_97 : f32 to vector<128x128xf32>
    %c0_98 = arith.constant 0 : index
    %c0_99 = arith.constant 0 : index
    %193 = vector.load %arg7[%c0_98, %c0_99] : memref<128x128xf32, #tpu.memory_space<vmem>>, vector<128x128xf32>
    tpu.vector_store %arg7[%c0_98, %c0_99], %192 {strides = array<i32>} : memref<128x128xf32, #tpu.memory_space<vmem>>, vector<128x128xf32>,
    %194 = vector.extract_strided_slice %148 {offsets = [0, 0], sizes = [128, 6], strides = [1, 1]} : vector<128x32xf32> to vector<128x6xf32>
    %c0_100 = arith.constant 0 : index
    %c0_101 = arith.constant 0 : index
    %195 = vector.load %arg7[%c0_100, %c0_101] : memref<128x128xf32, #tpu.memory_space<vmem>>, vector<128x6xf32>
    tpu.vector_store %arg7[%c0_100, %c0_101], %194 {strides = array<i32>} : memref<128x128xf32, #tpu.memory_space<vmem>>, vector<128x6xf32>,
    %c0_102 = arith.constant 0 : index
    %c6_103 = arith.constant 6 : index
    %196 = vector.load %arg7[%c0_102, %c6_103] : memref<128x128xf32, #tpu.memory_space<vmem>>, vector<128x4xf32>
    tpu.vector_store %arg7[%c0_102, %c6_103], %191 {strides = array<i32>} : memref<128x128xf32, #tpu.memory_space<vmem>>, vector<128x4xf32>,
    return
  }
  func.func @transform_0(%arg0: i32) -> (i32, i32) {
    %c0_i32 = arith.constant 0 : i32
    %c0_i32_0 = arith.constant 0 : i32
    return %arg0, %c0_i32 : i32, i32
  }
  func.func @transform_1(%arg0: i32) -> (i32, i32) {
    %c0_i32 = arith.constant 0 : i32
    %c0_i32_0 = arith.constant 0 : i32
    return %arg0, %c0_i32 : i32, i32
  }
  func.func @transform_2(%arg0: i32) -> (i32, i32) {
    %c0_i32 = arith.constant 0 : i32
    %c0_i32_0 = arith.constant 0 : i32
    %c0_i32_1 = arith.constant 0 : i32
    return %c0_i32, %c0_i32_0 : i32, i32
  }
  func.func @transform_3(%arg0: i32) -> (i32, i32) {
    %c0_i32 = arith.constant 0 : i32
    %c0_i32_0 = arith.constant 0 : i32
    %c0_i32_1 = arith.constant 0 : i32
    return %c0_i32, %c0_i32_0 : i32, i32
  }
  func.func @transform_4(%arg0: i32) -> (i32, i32, i32) {
    %c0_i32 = arith.constant 0 : i32
    %c0_i32_0 = arith.constant 0 : i32
    %c0_i32_1 = arith.constant 0 : i32
    %c0_i32_2 = arith.constant 0 : i32
    return %c0_i32, %c0_i32_0, %c0_i32_1 : i32, i32, i32
  }
  func.func @transform_5(%arg0: i32) -> (i32, i32) {
    %c0_i32 = arith.constant 0 : i32
    %c0_i32_0 = arith.constant 0 : i32
    %c0_i32_1 = arith.constant 0 : i32
    return %c0_i32, %c0_i32_0 : i32, i32
  }
  func.func @transform_6(%arg0: i32) -> (i32, i32) {
    %c0_i32 = arith.constant 0 : i32
    %c0_i32_0 = arith.constant 0 : i32
    return %arg0, %c0_i32 : i32, i32
  }
}

module attributes {stable_mosaic.version = 11 : i64} {
  func.func @_edge_sigmoid_kernel(%arg0: memref<1x64xf32, #tpu.memory_space<vmem>>, %arg1: memref<1x64xf32, #tpu.memory_space<vmem>>) attributes {dimension_semantics = [], scalar_prefetch = 0 : i64, scratch_operands = 0 : i64, tpu.core_type = #tpu.core_type<tc>} {
    %c0 = arith.constant 0 : index
    %c0_0 = arith.constant 0 : index
    %0 = vector.load %arg0[%c0, %c0_0] : memref<1x64xf32, #tpu.memory_space<vmem>>, vector<1x64xf32>
    %1 = arith.negf %0 : vector<1x64xf32>
    %2 = math.exp %1 : vector<1x64xf32>
    %cst = arith.constant 1.000000e+00 : f32
    %3 = vector.broadcast %cst : f32 to vector<1x64xf32>
    %4 = arith.addf %3, %2 : vector<1x64xf32>
    %5 = arith.divf %3, %4 : vector<1x64xf32>
    %c0_1 = arith.constant 0 : index
    %c0_2 = arith.constant 0 : index
    %6 = vector.load %arg1[%c0_1, %c0_2] : memref<1x64xf32, #tpu.memory_space<vmem>>, vector<1x64xf32>
    tpu.vector_store %arg1[%c0_1, %c0_2], %5 {strides = array<i32>} : memref<1x64xf32, #tpu.memory_space<vmem>>, vector<1x64xf32>,
    return
  }
}

</mosaic_0001>

<bundles_post_ra>
// kernel: pfnet7_forward.5
= control target key start
LH: loop header
LB: loop body
LE: loop exit
PB: predicated region body
PF: predicated region fallthrough
CT: control target
= control target key end

     0   :  { %s88_s0 = inlined_call_operand.vmem [shape: f32[1,64], index: 0, kind: input, shape index: {}]   ;;  %s89_s1 = inlined_call_operand.hbm [shape: f32[1,64], index: 1, kind: output, shape index: {}]  }
   0x1   :  { %v9_v0 = vld [vmem:[%s88_s0] sm:$0x1] }
   0x2   :  { %6 = vsyncpa [#allocation3], 0  ;;  %v32_v1 = vmul.f32 -1.442695, %v9_v0  ;;  %s62_s8 = smov [#allocation2]   ;;  %vm16_vm0 = vcmask 516096  }
   0x3   :  { %s24_s9 = sshll.u32 %s62_s8, 4  ;;  %s25_s9 = int_to_ptr.vmem [resolvable:$true] %s24_s9 }
   0x4   :  { %34 = vpow2.f32 %v32_v1  ;;  %s38_s10 = scalar_lea.vmem %s25_s9, 16  ;;  %s42_s11 = scalar_lea.vmem %s25_s9, 32 }
   0x5   :  { %p39_p0 = scmp.ne.s32.totalorder %s25_s9, %s38_s10  ;;  %p43_p1 = scmp.lt.s32.totalorder %s25_s9, %s25_s9 }
   0x6   :  { %p44_p2 = scmp.lt.s32.totalorder %s42_s11, %s38_s10 }
   0x8   :  { %p45_p3 = por %p44_p2, %p43_p1 }
   0xa   :  { %p46_p4 = pnand %p45_p3, %p39_p0 }
   0xe   :  { %v35_v2 = vpop.eup %34 }
   0xf   :  { %v13_v3 = vadd.f32 1.0, %v35_v2 }
  0x11   :  { %36 = vrcp.f32 %v13_v3 }
  0x1b   :  { %v37_v4 = vpop.eup %36 }
  0x1c   :  { %17 = vst.msk [vmem:[#allocation2] sm:$0x1] %vm16_vm0, %v37_v4 }
  0x1d   :  { %49 = shalt.err (!%p46_p4)
}
  0x1e   :  { %s50_s13 = scalar_lea.hbm %s89_s1, 16 }
  0x1f   :  { %p51_p5 = scmp.ne.s32.totalorder %s89_s1, %s50_s13  ;;  %p54_p6 = scmp.lt.u32.totalorder %s50_s13, %s89_s1 }
  0x21   :  { %p56_p7 = pnand %p54_p6, %p51_p5 }
  0x23   :  { %59 = shalt.err (!%p56_p7)
}
  0x24   :  { %27 = dma.vmem_to_hbm [thread:$0]  %s25_s9, 16, %s89_s1, [#allocation3]  }
  0x25   :  { %60 = dma.done.wait [#allocation3], 16  }
  0x26   :  { %61 = vsyncadd [#allocation3], 4294967280 }
  0x27   :  { %31 = vsyncpa [#allocation3], 1 }

// kernel: pfnet7_forward.3
= control target key start
LH: loop header
LB: loop body
LE: loop exit
PB: predicated region body
PF: predicated region fallthrough
CT: control target
= control target key end

     0   :  { %vm42_vm0 = vcmask 261120   ;;  %s2437_s1 = inlined_call_operand.vmem [shape: f32[18,32,32], index: 1, kind: input, shape index: {}]   ;;  %s2438_s0 = inlined_call_operand.vmem [shape: f32[128,32], index: 0, kind: input, shape index: {}]   ;;  %s2439_s2 = inlined_call_operand.vmem [shape: f32[18,32], index: 2, kind: input, shape index: {}]   ;;  %s2440_s3 = inlined_call_operand.vmem [shape: f32[128,32], index: 3, kind: output, shape index: {0}]   ;;  %s2441_s4 = inlined_call_operand.vmem [shape: f32[128,32], index: 4, kind: output, shape index: {1}]   ;;  %s2442_s5 = inlined_call_operand.vmem [shape: f32[128,32], index: 5, kind: output, shape index: {2}]  }
   0x1   :  { %v33_v0 = vld [vmem:[%s2437_s1] sm:$0xff]  ;;  %v34_v1 = vld [vmem:[%s2437_s1 + $0x8] sm:$0xff]  ;;  %v35_v2 = vld [vmem:[%s2437_s1 + $0x10] sm:$0xff] }
   0x2   :  { %v1825_v3 = vpack.c.bf16 %v34_v1, %v33_v0  ;;  %v36_v4 = vld [vmem:[%s2437_s1 + $0x18] sm:$0xff]  ;;  %v17_v5 = vld [vmem:[%s2438_s0] sm:$0xff]  ;;  %v18_v7 = vld [vmem:[%s2438_s0 + $0x8] sm:$0xff] }
   0x3   :  { %v1829_v6 = vpack.c.bf16 %v36_v4, %v35_v2  ;;  %1641 = vmatprep.mubr.msk.f32.mxu0 %vm42_vm0, %v17_v5  ;;  %v19_v8 = vld [vmem:[%s2438_s0 + $0x10] sm:$0xff]  ;;  %v20_v9 = vld [vmem:[%s2438_s0 + $0x18] sm:$0xff]  ;;  %v21_v10 = vld [vmem:[%s2438_s0 + $0x20] sm:$0xff] }
   0x4   :  { %1826 = vmatprep.subr.bf16.mxu0 %v1825_v3  ;;  %v22_v11 = vld [vmem:[%s2438_s0 + $0x28] sm:$0xff]  ;;  %v23_v12 = vld [vmem:[%s2438_s0 + $0x30] sm:$0xff]  ;;  %v24_v13 = vld [vmem:[%s2438_s0 + $0x38] sm:$0xff] }
   0x5   :  { %1828 = vmatpush3.bf16.msra.mxu0 %v1825_v3  ;;  %v25_v14 = vld [vmem:[%s2438_s0 + $0x40] sm:$0xff]  ;;  %v26_v15 = vld [vmem:[%s2438_s0 + $0x48] sm:$0xff]  ;;  %v27_v16 = vld [vmem:[%s2438_s0 + $0x50] sm:$0xff] }
   0x6   :  { %1830 = vmatprep.subr.bf16.mxu0 %v1829_v6  ;;  %v28_v17 = vld [vmem:[%s2438_s0 + $0x58] sm:$0xff]  ;;  %v29_v18 = vld [vmem:[%s2438_s0 + $0x60] sm:$0xff]  ;;  %v30_v19 = vld [vmem:[%s2438_s0 + $0x68] sm:$0xff] }
   0x7   :  { %v31_v20 = vld [vmem:[%s2438_s0 + $0x70] sm:$0xff]  ;;  %v32_v21 = vld [vmem:[%s2438_s0 + $0x78] sm:$0xff]  ;;  %v1408_v22 = vld [vmem:[%s2437_s1 + $0x20] sm:$0xff] }
   0x8   :  { %v1409_v23 = vld [vmem:[%s2437_s1 + $0x28] sm:$0xff]  ;;  %v1410_v25 = vld [vmem:[%s2437_s1 + $0x30] sm:$0xff]  ;;  %v1411_v26 = vld [vmem:[%s2437_s1 + $0x38] sm:$0xff] }
   0x9   :  { %1832 = vmatpush3.bf16.msra.mxu0 %v1829_v6  ;;  %v1833_v24 = vpack.c.bf16 %v1409_v23, %v1408_v22  ;;  %v1837_v27 = vpack.c.bf16 %v1411_v26, %v1410_v25  ;;  %v1429_v28 = vld [vmem:[%s2437_s1 + $0x40] sm:$0xff]  ;;  %v1430_v29 = vld [vmem:[%s2437_s1 + $0x48] sm:$0xff]  ;;  %v1431_v30 = vld [vmem:[%s2437_s1 + $0x50] sm:$0xff] }
   0xa   :  { %v1841_v31 = vpack.c.bf16 %v1430_v29, %v1429_v28  ;;  %v1432_v32 = vld [vmem:[%s2437_s1 + $0x58] sm:$0xff]  ;;  %v2006_v34 = vld [vmem:[%s2439_s2] ss:$0 sm:$0xff] }
   0xb   :  { %1834 = vmatprep.subr.bf16.mxu1 %v1833_v24  ;;  %v1845_v33 = vpack.c.bf16 %v1432_v32, %v1431_v30 }
   0xc   :  { %1642 = vmatmul.mubr.msk.f32.vlgmr.msra.gmra.mrb[0].mxu0 %vm42_vm0, %v18_v7  ;;  %1836 = vmatpush3.bf16.msra.mxu1 %v1833_v24 }
   0xd   :  { %1644 = vmatprep.mubr.msk.f32.mxu0 %vm42_vm0, %v19_v8  ;;  %1838 = vmatprep.subr.bf16.mxu1 %v1837_v27 }
   0xe   :  { %1842 = vmatprep.subr.bf16.mxu0 %v1841_v31 }
   0xf   :  { %1844 = vmatpush3.bf16.msra.mxu0 %v1841_v31 }
  0x10   :  { %1645 = vmatmul.mubr.msk.f32.gmra.mrb[2].mxu0 %vm42_vm0, %v20_v9  ;;  %1840 = vmatpush3.bf16.msra.mxu1 %v1837_v27 }
  0x11   :  { %1647 = vmatprep.mubr.msk.f32.mxu0 %vm42_vm0, %v21_v10  ;;  %1846 = vmatprep.subr.bf16.mxu0 %v1845_v33 }
  0x13   :  { %1848 = vmatpush3.bf16.msra.mxu0 %v1845_v33 }
  0x14   :  { %1648 = vmatmul.mubr.msk.f32.gmra.mrb[4].mxu0 %vm42_vm0, %v22_v11 }
  0x15   :  { %1650 = vmatprep.mubr.msk.f32.mxu0 %vm42_vm0, %v23_v12 }
  0x18   :  { %1651 = vmatmul.mubr.msk.f32.gmra.mrb[6].mxu0 %vm42_vm0, %v24_v13 }
  0x19   :  { %1653 = vmatprep.mubr.msk.f32.mxu0 %vm42_vm0, %v25_v14 }
  0x1c   :  { %1654 = vmatmul.mubr.msk.f32.gmra.mrb[8].mxu0 %vm42_vm0, %v26_v15 }
  0x1d   :  { %1656 = vmatprep.mubr.msk.f32.mxu0 %vm42_vm0, %v27_v16 }
  0x20   :  { %1657 = vmatmul.mubr.msk.f32.gmra.mrb[10].mxu0 %vm42_vm0, %v28_v17 }
  0x21   :  { %1659 = vmatprep.mubr.msk.f32.mxu0 %vm42_vm0, %v29_v18 }
  0x24   :  { %1660 = vmatmul.mubr.msk.f32.gmra.mrb[12].mxu0 %vm42_vm0, %v30_v19 }
  0x25   :  { %1662 = vmatprep.mubr.msk.f32.mxu0 %vm42_vm0, %v31_v20 }
  0x28   :  { %1663 = vmatmul.mubr.msk.f32.gmra.mrb[14].mxu0 %vm42_vm0, %v32_v21 }
  0xdf   :  { %v1643_v35 = vpop.f32.mrb[0].mxu0 }
  0xe0   :  { %v163_v36 = vadd.f32 %v1643_v35, %v2006_v34  ;;  %v157_v37 = vpop.f32.mrb[1].mxu0 }
  0xe1   :  { %v158_v38 = vadd.f32 %v2006_v34, %v157_v37  ;;  %v1452_v37 = vld [vmem:[%s2437_s1 + $0x70] sm:$0xff] }
  0xe2   :  { %v237_v39 = vmul.f32 0.01, %v163_v36 }
  0xe3   :  { %v236_v40 = vmul.f32 0.01, %v158_v38  ;;  %v1646_v41 = vpop.f32.mrb[2].mxu0 }
  0xe4   :  { %v173_v42 = vadd.f32 %v1646_v41, %v2006_v34  ;;  %v167_v43 = vpop.f32.mrb[3].mxu0  ;;  %v253_v46 = vmax.f32 %v163_v36, %v237_v39  ;;  %v1450_v36 = vld [vmem:[%s2437_s1 + $0x60] sm:$0xff]  ;;  %v1453_v39 = vld [vmem:[%s2437_s1 + $0x78] sm:$0xff] }
  0xe5   :  { %v168_v44 = vadd.f32 %v2006_v34, %v167_v43  ;;  %v252_v45 = vmax.f32 %v158_v38, %v236_v40  ;;  %v1853_v40 = vpack.c.bf16 %v1453_v39, %v1452_v37  ;;  %v2055_v41 = vld [vmem:[%s2439_s2 + $0x1] ss:$0 sm:$0xff] }
  0xe6   :  { %v239_v47 = vmul.f32 0.01, %v173_v42 }
  0xe7   :  { %v238_v48 = vmul.f32 0.01, %v168_v44  ;;  %v1649_v49 = vpop.f32.mrb[4].mxu0  ;;  %1673 = vmatprep.mubr.msk.f32.mxu1 %vm42_vm0, %v252_v45 }
  0xe8   :  { %v183_v50 = vadd.f32 %v1649_v49, %v2006_v34  ;;  %v177_v51 = vpop.f32.mrb[5].mxu0  ;;  %1674 = vmatmul.mubr.msk.f32.vlgmr.msra.gmra.mrb[0].mxu1 %vm42_vm0, %v253_v46  ;;  %v255_v54 = vmax.f32 %v173_v42, %v239_v47 }
  0xe9   :  { %v254_v52 = vmax.f32 %v168_v44, %v238_v48  ;;  %v178_v53 = vadd.f32 %v2006_v34, %v177_v51 }
  0xea   :  { %v241_v55 = vmul.f32 0.01, %v183_v50 }
  0xeb   :  { %v240_v56 = vmul.f32 0.01, %v178_v53  ;;  %v1652_v57 = vpop.f32.mrb[6].mxu0  ;;  %1676 = vmatprep.mubr.msk.f32.mxu1 %vm42_vm0, %v254_v52 }
  0xec   :  { %v193_v58 = vadd.f32 %v1652_v57, %v2006_v34  ;;  %v187_v59 = vpop.f32.mrb[7].mxu0  ;;  %1677 = vmatmul.mubr.msk.f32.gmra.mrb[2].mxu1 %vm42_vm0, %v255_v54  ;;  %v257_v62 = vmax.f32 %v183_v50, %v241_v55 }
  0xed   :  { %v256_v60 = vmax.f32 %v178_v53, %v240_v56  ;;  %v188_v61 = vadd.f32 %v2006_v34, %v187_v59 }
  0xee   :  { %v243_v63 = vmul.f32 0.01, %v193_v58 }
  0xef   :  { %v242_v0 = vmul.f32 0.01, %v188_v61  ;;  %v1655_v1 = vpop.f32.mrb[8].mxu0  ;;  %1679 = vmatprep.mubr.msk.f32.mxu1 %vm42_vm0, %v256_v60 }
  0xf0   :  { %v203_v2 = vadd.f32 %v1655_v1, %v2006_v34  ;;  %v197_v3 = vpop.f32.mrb[9].mxu0  ;;  %1680 = vmatmul.mubr.msk.f32.gmra.mrb[4].mxu1 %vm42_vm0, %v257_v62  ;;  %v259_v6 = vmax.f32 %v193_v58, %v243_v63 }
  0xf1   :  { %v258_v4 = vmax.f32 %v188_v61, %v242_v0  ;;  %v198_v5 = vadd.f32 %v2006_v34, %v197_v3 }
  0xf2   :  { %v245_v7 = vmul.f32 0.01, %v203_v2 }
  0xf3   :  { %v244_v8 = vmul.f32 0.01, %v198_v5  ;;  %v1658_v9 = vpop.f32.mrb[10].mxu0  ;;  %1682 = vmatprep.mubr.msk.f32.mxu1 %vm42_vm0, %v258_v4 }
  0xf4   :  { %v213_v10 = vadd.f32 %v1658_v9, %v2006_v34  ;;  %v207_v11 = vpop.f32.mrb[11].mxu0  ;;  %1683 = vmatmul.mubr.msk.f32.gmra.mrb[6].mxu1 %vm42_vm0, %v259_v6  ;;  %v261_v14 = vmax.f32 %v203_v2, %v245_v7 }
  0xf5   :  { %v260_v12 = vmax.f32 %v198_v5, %v244_v8  ;;  %v208_v13 = vadd.f32 %v2006_v34, %v207_v11 }
  0xf6   :  { %v247_v15 = vmul.f32 0.01, %v213_v10 }
  0xf7   :  { %v246_v16 = vmul.f32 0.01, %v208_v13  ;;  %v1661_v17 = vpop.f32.mrb[12].mxu0  ;;  %1685 = vmatprep.mubr.msk.f32.mxu1 %vm42_vm0, %v260_v12 }
  0xf8   :  { %v223_v18 = vadd.f32 %v1661_v17, %v2006_v34  ;;  %v217_v19 = vpop.f32.mrb[13].mxu0  ;;  %1686 = vmatmul.mubr.msk.f32.gmra.mrb[8].mxu1 %vm42_vm0, %v261_v14  ;;  %v263_v22 = vmax.f32 %v213_v10, %v247_v15 }
  0xf9   :  { %v262_v20 = vmax.f32 %v208_v13, %v246_v16  ;;  %v218_v21 = vadd.f32 %v2006_v34, %v217_v19 }
  0xfa   :  { %v249_v23 = vmul.f32 0.01, %v223_v18 }
  0xfb   :  { %v248_v24 = vmul.f32 0.01, %v218_v21  ;;  %v1664_v25 = vpop.f32.mrb[14].mxu0  ;;  %1688 = vmatprep.mubr.msk.f32.mxu1 %vm42_vm0, %v262_v20 }
  0xfc   :  { %v233_v26 = vadd.f32 %v1664_v25, %v2006_v34  ;;  %v227_v27 = vpop.f32.mrb[15].mxu0  ;;  %1689 = vmatmul.mubr.msk.f32.gmra.mrb[10].mxu1 %vm42_vm0, %v263_v22  ;;  %v265_v30 = vmax.f32 %v223_v18, %v249_v23 }
  0xfd   :  { %v264_v28 = vmax.f32 %v218_v21, %v248_v24  ;;  %v228_v29 = vadd.f32 %v2006_v34, %v227_v27  ;;  %v1451_v34 = vld [vmem:[%s2437_s1 + $0x68] sm:$0xff] }
  0xfe   :  { %v251_v31 = vmul.f32 0.01, %v233_v26  ;;  %v1849_v38 = vpack.c.bf16 %v1451_v34, %v1450_v36 }
  0xff   :  { %v250_v32 = vmul.f32 0.01, %v228_v29  ;;  %1691 = vmatprep.mubr.msk.f32.mxu1 %vm42_vm0, %v264_v28 }
 0x100   :  { %1692 = vmatmul.mubr.msk.f32.gmra.mrb[12].mxu1 %vm42_vm0, %v265_v30  ;;  %v267_v35 = vmax.f32 %v233_v26, %v251_v31  ;;  %1850 = vmatprep.subr.bf16.mxu1 %v1849_v38 }
 0x101   :  { %v266_v33 = vmax.f32 %v228_v29, %v250_v32  ;;  %1852 = vmatpush3.bf16.msra.mxu1 %v1849_v38 }
 0x102   :  { %1854 = vmatprep.subr.bf16.mxu1 %v1853_v40 }
 0x103   :  { %1694 = vmatprep.mubr.msk.f32.mxu1 %vm42_vm0, %v266_v33 }
 0x104   :  { %1695 = vmatmul.mubr.msk.f32.gmra.mrb[14].mxu1 %vm42_vm0, %v267_v35 }
 0x105   :  { %1856 = vmatpush3.bf16.msra.mxu1 %v1853_v40 }
 0x1bb   :  { %v1675_v42 = vpop.f32.mrb[0].mxu1 }
 0x1bc   :  { %v398_v43 = vadd.f32 %v1675_v42, %v2055_v41  ;;  %v392_v44 = vpop.f32.mrb[1].mxu1 }
 0x1bd   :  { %v393_v45 = vadd.f32 %v2055_v41, %v392_v44  ;;  %v1492_v44 = vld [vmem:[%s2437_s1 + $0xa0] sm:$0xff] }
 0x1be   :  { %v472_v46 = vmul.f32 0.01, %v398_v43 }
 0x1bf   :  { %v471_v47 = vmul.f32 0.01, %v393_v45  ;;  %v1678_v48 = vpop.f32.mrb[2].mxu1 }
 0x1c0   :  { %v408_v49 = vadd.f32 %v1678_v48, %v2055_v41  ;;  %v402_v50 = vpop.f32.mrb[3].mxu1  ;;  %v488_v53 = vmax.f32 %v398_v43, %v472_v46  ;;  %v1471_v43 = vld [vmem:[%s2437_s1 + $0x80] sm:$0xff]  ;;  %v1493_v46 = vld [vmem:[%s2437_s1 + $0xa8] sm:$0xff]  ;;  %v1474_v48 = vld [vmem:[%s2437_s1 + $0x98] sm:$0xff] }
 0x1c1   :  { %v487_v51 = vmax.f32 %v393_v45, %v471_v47  ;;  %v403_v52 = vadd.f32 %v2055_v41, %v402_v50  ;;  %v1473_v47 = vld [vmem:[%s2437_s1 + $0x90] sm:$0xff] }
 0x1c2   :  { %v474_v54 = vmul.f32 0.01, %v408_v49  ;;  %v1861_v50 = vpack.c.bf16 %v1474_v48, %v1473_v47 }
 0x1c3   :  { %v473_v55 = vmul.f32 0.01, %v403_v52  ;;  %v1681_v56 = vpop.f32.mrb[4].mxu1  ;;  %1705 = vmatprep.mubr.msk.f32.mxu0 %vm42_vm0, %v487_v51  ;;  %v2110_v51 = vld [vmem:[%s2439_s2 + $0x2] ss:$0 sm:$0xff] }
 0x1c4   :  { %v418_v57 = vadd.f32 %v1681_v56, %v2055_v41  ;;  %v412_v58 = vpop.f32.mrb[5].mxu1  ;;  %1706 = vmatmul.mubr.msk.f32.vlgmr.msra.gmra.mrb[16].mxu0 %vm42_vm0, %v488_v53  ;;  %v490_v61 = vmax.f32 %v408_v49, %v474_v54  ;;  %v1865_v49 = vpack.c.bf16 %v1493_v46, %v1492_v44 }
 0x1c5   :  { %v489_v59 = vmax.f32 %v403_v52, %v473_v55  ;;  %v413_v60 = vadd.f32 %v2055_v41, %v412_v58 }
 0x1c6   :  { %v476_v62 = vmul.f32 0.01, %v418_v57  ;;  %1866 = vmatprep.subr.bf16.mxu1 %v1865_v49 }
 0x1c7   :  { %v475_v63 = vmul.f32 0.01, %v413_v60  ;;  %v1684_v0 = vpop.f32.mrb[6].mxu1  ;;  %1708 = vmatprep.mubr.msk.f32.mxu0 %vm42_vm0, %v489_v59  ;;  %v1494_v59 = vld [vmem:[%s2437_s1 + $0xb0] sm:$0xff] }
 0x1c8   :  { %v428_v1 = vadd.f32 %v1684_v0, %v2055_v41  ;;  %v422_v2 = vpop.f32.mrb[7].mxu1  ;;  %1709 = vmatmul.mubr.msk.f32.gmra.mrb[18].mxu0 %vm42_vm0, %v490_v61  ;;  %v492_v5 = vmax.f32 %v418_v57, %v476_v62 }
 0x1c9   :  { %v491_v3 = vmax.f32 %v413_v60, %v475_v63  ;;  %v423_v4 = vadd.f32 %v2055_v41, %v422_v2  ;;  %v1495_v60 = vld [vmem:[%s2437_s1 + $0xb8] sm:$0xff] }
 0x1ca   :  { %v478_v6 = vmul.f32 0.01, %v428_v1 }
 0x1cb   :  { %v477_v7 = vmul.f32 0.01, %v423_v4  ;;  %v1687_v8 = vpop.f32.mrb[8].mxu1  ;;  %1711 = vmatprep.mubr.msk.f32.mxu0 %vm42_vm0, %v491_v3  ;;  %v1869_v3 = vpack.c.bf16 %v1495_v60, %v1494_v59 }
 0x1cc   :  { %v438_v9 = vadd.f32 %v1687_v8, %v2055_v41  ;;  %v432_v10 = vpop.f32.mrb[9].mxu1  ;;  %1712 = vmatmul.mubr.msk.f32.gmra.mrb[20].mxu0 %vm42_vm0, %v492_v5  ;;  %v494_v13 = vmax.f32 %v428_v1, %v478_v6 }
 0x1cd   :  { %v493_v11 = vmax.f32 %v423_v4, %v477_v7  ;;  %v433_v12 = vadd.f32 %v2055_v41, %v432_v10 }
 0x1ce   :  { %v480_v14 = vmul.f32 0.01, %v438_v9 }
 0x1cf   :  { %v479_v15 = vmul.f32 0.01, %v433_v12  ;;  %v1690_v16 = vpop.f32.mrb[10].mxu1  ;;  %1714 = vmatprep.mubr.msk.f32.mxu0 %vm42_vm0, %v493_v11 }
 0x1d0   :  { %v448_v17 = vadd.f32 %v1690_v16, %v2055_v41  ;;  %v442_v18 = vpop.f32.mrb[11].mxu1  ;;  %1715 = vmatmul.mubr.msk.f32.gmra.mrb[22].mxu0 %vm42_vm0, %v494_v13  ;;  %v496_v21 = vmax.f32 %v438_v9, %v480_v14 }
 0x1d1   :  { %v495_v19 = vmax.f32 %v433_v12, %v479_v15  ;;  %v443_v20 = vadd.f32 %v2055_v41, %v442_v18 }
 0x1d2   :  { %v482_v22 = vmul.f32 0.01, %v448_v17 }
 0x1d3   :  { %v481_v23 = vmul.f32 0.01, %v443_v20  ;;  %v1693_v24 = vpop.f32.mrb[12].mxu1  ;;  %1717 = vmatprep.mubr.msk.f32.mxu0 %vm42_vm0, %v495_v19 }
 0x1d4   :  { %v458_v25 = vadd.f32 %v1693_v24, %v2055_v41  ;;  %v452_v26 = vpop.f32.mrb[13].mxu1  ;;  %1718 = vmatmul.mubr.msk.f32.gmra.mrb[24].mxu0 %vm42_vm0, %v496_v21  ;;  %v498_v29 = vmax.f32 %v448_v17, %v482_v22 }
 0x1d5   :  { %v497_v27 = vmax.f32 %v443_v20, %v481_v23  ;;  %v453_v28 = vadd.f32 %v2055_v41, %v452_v26 }
 0x1d6   :  { %v484_v30 = vmul.f32 0.01, %v458_v25 }
 0x1d7   :  { %v483_v31 = vmul.f32 0.01, %v453_v28  ;;  %v1696_v32 = vpop.f32.mrb[14].mxu1  ;;  %1720 = vmatprep.mubr.msk.f32.mxu0 %vm42_vm0, %v497_v27 }
 0x1d8   :  { %v468_v33 = vadd.f32 %v1696_v32, %v2055_v41  ;;  %v462_v35 = vpop.f32.mrb[15].mxu1  ;;  %1721 = vmatmul.mubr.msk.f32.gmra.mrb[26].mxu0 %vm42_vm0, %v498_v29  ;;  %v500_v37 = vmax.f32 %v458_v25, %v484_v30 }
 0x1d9   :  { %v499_v36 = vmax.f32 %v453_v28, %v483_v31  ;;  %v463_v34 = vadd.f32 %v2055_v41, %v462_v35  ;;  %v1472_v41 = vld [vmem:[%s2437_s1 + $0x88] sm:$0xff] }
 0x1da   :  { %v486_v38 = vmul.f32 0.01, %v468_v33  ;;  %v1857_v45 = vpack.c.bf16 %v1472_v41, %v1471_v43 }
 0x1db   :  { %v485_v39 = vmul.f32 0.01, %v463_v34  ;;  %1723 = vmatprep.mubr.msk.f32.mxu0 %vm42_vm0, %v499_v36 }
 0x1dc   :  { %1724 = vmatmul.mubr.msk.f32.gmra.mrb[28].mxu0 %vm42_vm0, %v500_v37  ;;  %v502_v42 = vmax.f32 %v468_v33, %v486_v38  ;;  %1858 = vmatprep.subr.bf16.mxu0 %v1857_v45 }
 0x1dd   :  { %v501_v40 = vmax.f32 %v463_v34, %v485_v39  ;;  %1860 = vmatpush3.bf16.msra.mxu0 %v1857_v45 }
 0x1de   :  { %1862 = vmatprep.subr.bf16.mxu0 %v1861_v50 }
 0x1df   :  { %1726 = vmatprep.mubr.msk.f32.mxu0 %vm42_vm0, %v501_v40 }
 0x1e0   :  { %1727 = vmatmul.mubr.msk.f32.gmra.mrb[30].mxu0 %vm42_vm0, %v502_v42 }
 0x1e1   :  { %1864 = vmatpush3.bf16.msra.mxu0 %v1861_v50 }
 0x297   :  { %v1707_v52 = vpop.f32.mrb[16].mxu0 }
 0x298   :  { %v633_v53 = vadd.f32 %v1707_v52, %v2110_v51  ;;  %v627_v54 = vpop.f32.mrb[17].mxu0 }
 0x299   :  { %v628_v55 = vadd.f32 %v2110_v51, %v627_v54 }
 0x29a   :  { %v707_v56 = vmul.f32 0.01, %v633_v53 }
 0x29b   :  { %v706_v57 = vmul.f32 0.01, %v628_v55  ;;  %v1710_v58 = vpop.f32.mrb[18].mxu0 }
 0x29c   :  { %v643_v61 = vadd.f32 %v1710_v58, %v2110_v51  ;;  %v637_v62 = vpop.f32.mrb[19].mxu0  ;;  %v723_v1 = vmax.f32 %v633_v53, %v707_v56  ;;  %v2153_v56 = vld [vmem:[%s2439_s2 + $0x3] ss:$0 sm:$0xff] }
 0x29d   :  { %v722_v63 = vmax.f32 %v628_v55, %v706_v57  ;;  %v638_v0 = vadd.f32 %v2110_v51, %v637_v62 }
 0x29e   :  { %v709_v2 = vmul.f32 0.01, %v643_v61 }
 0x29f   :  { %v708_v4 = vmul.f32 0.01, %v638_v0  ;;  %v1713_v5 = vpop.f32.mrb[20].mxu0  ;;  %1737 = vmatprep.mubr.msk.f32.mxu1 %vm42_vm0, %v722_v63 }
 0x2a0   :  { %v653_v6 = vadd.f32 %v1713_v5, %v2110_v51  ;;  %v647_v7 = vpop.f32.mrb[21].mxu0  ;;  %1738 = vmatmul.mubr.msk.f32.vlgmr.msra.gmra.mrb[16].mxu1 %vm42_vm0, %v723_v1  ;;  %v725_v10 = vmax.f32 %v643_v61, %v709_v2 }
 0x2a1   :  { %v724_v8 = vmax.f32 %v638_v0, %v708_v4  ;;  %v648_v9 = vadd.f32 %v2110_v51, %v647_v7  ;;  %1868 = vmatpush3.bf16.msra.mxu1 %v1865_v49 }
 0x2a2   :  { %v711_v11 = vmul.f32 0.01, %v653_v6  ;;  %1870 = vmatprep.subr.bf16.mxu1 %v1869_v3 }
 0x2a3   :  { %v710_v12 = vmul.f32 0.01, %v648_v9  ;;  %v1716_v13 = vpop.f32.mrb[22].mxu0  ;;  %1740 = vmatprep.mubr.msk.f32.mxu1 %vm42_vm0, %v724_v8 }
 0x2a4   :  { %v663_v14 = vadd.f32 %v1716_v13, %v2110_v51  ;;  %v657_v15 = vpop.f32.mrb[23].mxu0  ;;  %1741 = vmatmul.mubr.msk.f32.gmra.mrb[18].mxu1 %vm42_vm0, %v725_v10  ;;  %v727_v18 = vmax.f32 %v653_v6, %v711_v11 }
 0x2a5   :  { %v726_v16 = vmax.f32 %v648_v9, %v710_v12  ;;  %v658_v17 = vadd.f32 %v2110_v51, %v657_v15  ;;  %1872 = vmatpush3.bf16.msra.mxu1 %v1869_v3 }
 0x2a6   :  { %v713_v19 = vmul.f32 0.01, %v663_v14 }
 0x2a7   :  { %v712_v20 = vmul.f32 0.01, %v658_v17  ;;  %v1719_v21 = vpop.f32.mrb[24].mxu0  ;;  %1743 = vmatprep.mubr.msk.f32.mxu1 %vm42_vm0, %v726_v16 }
 0x2a8   :  { %v673_v22 = vadd.f32 %v1719_v21, %v2110_v51  ;;  %v667_v23 = vpop.f32.mrb[25].mxu0  ;;  %1744 = vmatmul.mubr.msk.f32.gmra.mrb[20].mxu1 %vm42_vm0, %v727_v18  ;;  %v729_v26 = vmax.f32 %v663_v14, %v713_v19 }
 0x2a9   :  { %v728_v24 = vmax.f32 %v658_v17, %v712_v20  ;;  %v668_v25 = vadd.f32 %v2110_v51, %v667_v23 }
 0x2aa   :  { %v715_v27 = vmul.f32 0.01, %v673_v22 }
 0x2ab   :  { %v714_v28 = vmul.f32 0.01, %v668_v25  ;;  %v1722_v29 = vpop.f32.mrb[26].mxu0  ;;  %1746 = vmatprep.mubr.msk.f32.mxu1 %vm42_vm0, %v728_v24 }
 0x2ac   :  { %v683_v30 = vadd.f32 %v1722_v29, %v2110_v51  ;;  %v677_v31 = vpop.f32.mrb[27].mxu0  ;;  %1747 = vmatmul.mubr.msk.f32.gmra.mrb[22].mxu1 %vm42_vm0, %v729_v26  ;;  %v731_v35 = vmax.f32 %v673_v22, %v715_v27 }
 0x2ad   :  { %v730_v32 = vmax.f32 %v668_v25, %v714_v28  ;;  %v678_v33 = vadd.f32 %v2110_v51, %v677_v31 }
 0x2ae   :  { %v717_v36 = vmul.f32 0.01, %v683_v30 }
 0x2af   :  { %v716_v34 = vmul.f32 0.01, %v678_v33  ;;  %v1725_v37 = vpop.f32.mrb[28].mxu0  ;;  %1749 = vmatprep.mubr.msk.f32.mxu1 %vm42_vm0, %v730_v32 }
 0x2b0   :  { %v693_v38 = vadd.f32 %v1725_v37, %v2110_v51  ;;  %v687_v39 = vpop.f32.mrb[29].mxu0  ;;  %1750 = vmatmul.mubr.msk.f32.gmra.mrb[24].mxu1 %vm42_vm0, %v731_v35  ;;  %v733_v43 = vmax.f32 %v683_v30, %v717_v36 }
 0x2b1   :  { %v732_v40 = vmax.f32 %v678_v33, %v716_v34  ;;  %v688_v42 = vadd.f32 %v2110_v51, %v687_v39 }
 0x2b2   :  { %v719_v41 = vmul.f32 0.01, %v693_v38 }
 0x2b3   :  { %v718_v44 = vmul.f32 0.01, %v688_v42  ;;  %v1728_v45 = vpop.f32.mrb[30].mxu0  ;;  %1752 = vmatprep.mubr.msk.f32.mxu1 %vm42_vm0, %v732_v40 }
 0x2b4   :  { %v703_v46 = vadd.f32 %v1728_v45, %v2110_v51  ;;  %v697_v47 = vpop.f32.mrb[31].mxu0  ;;  %1753 = vmatmul.mubr.msk.f32.gmra.mrb[26].mxu1 %vm42_vm0, %v733_v43  ;;  %v735_v50 = vmax.f32 %v693_v38, %v719_v41 }
 0x2b5   :  { %v734_v48 = vmax.f32 %v688_v42, %v718_v44  ;;  %v698_v49 = vadd.f32 %v2110_v51, %v697_v47 }
 0x2b6   :  { %v721_v52 = vmul.f32 0.01, %v703_v46 }
 0x2b7   :  { %v720_v53 = vmul.f32 0.01, %v698_v49  ;;  %1755 = vmatprep.mubr.msk.f32.mxu1 %vm42_vm0, %v734_v48 }
 0x2b8   :  { %1756 = vmatmul.mubr.msk.f32.gmra.mrb[28].mxu1 %vm42_vm0, %v735_v50  ;;  %v737_v55 = vmax.f32 %v703_v46, %v721_v52 }
 0x2b9   :  { %v736_v54 = vmax.f32 %v698_v49, %v720_v53 }
 0x2bb   :  { %1758 = vmatprep.mubr.msk.f32.mxu1 %vm42_vm0, %v736_v54 }
 0x2bc   :  { %1759 = vmatmul.mubr.msk.f32.gmra.mrb[30].mxu1 %vm42_vm0, %v737_v55 }
 0x373   :  { %v1739_v57 = vpop.f32.mrb[16].mxu1 }
 0x374   :  { %v868_v51 = vadd.f32 %v1739_v57, %v2153_v56  ;;  %v862_v58 = vpop.f32.mrb[17].mxu1  ;;  %v2270_v57 = vld [vmem:[%s2439_s2 + $0x4] ss:$0 sm:$0xff] }
 0x375   :  { %v863_v59 = vadd.f32 %v2153_v56, %v862_v58 }
 0x376   :  { %v942_v60 = vmul.f32 0.01, %v868_v51 }
 0x377   :  { %v941_v61 = vmul.f32 0.01, %v863_v59  ;;  %v1742_v62 = vpop.f32.mrb[18].mxu1 }
 0x378   :  { %v958_v63 = vmax.f32 %v868_v51, %v942_v60  ;;  %v878_v0 = vadd.f32 %v1742_v62, %v2153_v56  ;;  %v872_v1 = vpop.f32.mrb[19].mxu1  ;;  %v2275_v51 = vld [vmem:[%s2439_s2 + $0x5] ss:$0 sm:$0xff] }
 0x379   :  { %v957_v2 = vmax.f32 %v863_v59, %v941_v61  ;;  %v873_v3 = vadd.f32 %v2153_v56, %v872_v1 }
 0x37a   :  { %974 = vst.msk [vmem:[%s2440_s3 + $0x8] sm:$0xff] %vm42_vm0, %v958_v63  ;;  %v944_v4 = vmul.f32 0.01, %v878_v0 }
 0x37b   :  { %973 = vst.msk [vmem:[%s2440_s3] sm:$0xff] %vm42_vm0, %v957_v2  ;;  %v943_v5 = vmul.f32 0.01, %v873_v3  ;;  %v1745_v6 = vpop.f32.mrb[20].mxu1  ;;  %1769 = vmatprep.mubr.msk.f32.mxu0 %vm42_vm0, %v957_v2  ;;  %1801 = vmatprep.mubr.msk.f32.mxu1 %vm42_vm0, %v957_v2 }
 0x37c   :  { %v960_v7 = vmax.f32 %v878_v0, %v944_v4  ;;  %v888_v8 = vadd.f32 %v1745_v6, %v2153_v56  ;;  %v882_v9 = vpop.f32.mrb[21].mxu1  ;;  %1770 = vmatmul.mubr.msk.f32.vlgmr.msra.gmra.mrb[32].mxu0 %vm42_vm0, %v958_v63  ;;  %1802 = vmatmul.mubr.msk.f32.vlgmr.msra.gmra.mrb[32].mxu1 %vm42_vm0, %v958_v63 }
 0x37d   :  { %v959_v10 = vmax.f32 %v873_v3, %v943_v5  ;;  %v883_v11 = vadd.f32 %v2153_v56, %v882_v9 }
 0x37e   :  { %976 = vst.msk [vmem:[%s2440_s3 + $0x18] sm:$0xff] %vm42_vm0, %v960_v7  ;;  %v946_v12 = vmul.f32 0.01, %v888_v8 }
 0x37f   :  { %975 = vst.msk [vmem:[%s2440_s3 + $0x10] sm:$0xff] %vm42_vm0, %v959_v10  ;;  %v945_v13 = vmul.f32 0.01, %v883_v11  ;;  %v1748_v14 = vpop.f32.mrb[22].mxu1  ;;  %1772 = vmatprep.mubr.msk.f32.mxu0 %vm42_vm0, %v959_v10  ;;  %1804 = vmatprep.mubr.msk.f32.mxu1 %vm42_vm0, %v959_v10 }
 0x380   :  { %v962_v15 = vmax.f32 %v888_v8, %v946_v12  ;;  %v898_v16 = vadd.f32 %v1748_v14, %v2153_v56  ;;  %v892_v17 = vpop.f32.mrb[23].mxu1  ;;  %1773 = vmatmul.mubr.msk.f32.gmra.mrb[34].mxu0 %vm42_vm0, %v960_v7  ;;  %1805 = vmatmul.mubr.msk.f32.gmra.mrb[34].mxu1 %vm42_vm0, %v960_v7 }
 0x381   :  { %v961_v18 = vmax.f32 %v883_v11, %v945_v13  ;;  %v893_v19 = vadd.f32 %v2153_v56, %v892_v17 }
 0x382   :  { %978 = vst.msk [vmem:[%s2440_s3 + $0x28] sm:$0xff] %vm42_vm0, %v962_v15  ;;  %v948_v20 = vmul.f32 0.01, %v898_v16 }
 0x383   :  { %977 = vst.msk [vmem:[%s2440_s3 + $0x20] sm:$0xff] %vm42_vm0, %v961_v18  ;;  %v947_v21 = vmul.f32 0.01, %v893_v19  ;;  %v1751_v22 = vpop.f32.mrb[24].mxu1  ;;  %1775 = vmatprep.mubr.msk.f32.mxu0 %vm42_vm0, %v961_v18  ;;  %1807 = vmatprep.mubr.msk.f32.mxu1 %vm42_vm0, %v961_v18 }
 0x384   :  { %v964_v23 = vmax.f32 %v898_v16, %v948_v20  ;;  %v908_v24 = vadd.f32 %v1751_v22, %v2153_v56  ;;  %v902_v25 = vpop.f32.mrb[25].mxu1  ;;  %1776 = vmatmul.mubr.msk.f32.gmra.mrb[36].mxu0 %vm42_vm0, %v962_v15  ;;  %1808 = vmatmul.mubr.msk.f32.gmra.mrb[36].mxu1 %vm42_vm0, %v962_v15 }
 0x385   :  { %v963_v26 = vmax.f32 %v893_v19, %v947_v21  ;;  %v903_v27 = vadd.f32 %v2153_v56, %v902_v25 }
 0x386   :  { %980 = vst.msk [vmem:[%s2440_s3 + $0x38] sm:$0xff] %vm42_vm0, %v964_v23  ;;  %v950_v28 = vmul.f32 0.01, %v908_v24 }
 0x387   :  { %979 = vst.msk [vmem:[%s2440_s3 + $0x30] sm:$0xff] %vm42_vm0, %v963_v26  ;;  %v949_v29 = vmul.f32 0.01, %v903_v27  ;;  %v1754_v30 = vpop.f32.mrb[26].mxu1  ;;  %1778 = vmatprep.mubr.msk.f32.mxu0 %vm42_vm0, %v963_v26  ;;  %1810 = vmatprep.mubr.msk.f32.mxu1 %vm42_vm0, %v963_v26 }
 0x388   :  { %v966_v31 = vmax.f32 %v908_v24, %v950_v28  ;;  %v918_v32 = vadd.f32 %v1754_v30, %v2153_v56  ;;  %v912_v33 = vpop.f32.mrb[27].mxu1  ;;  %1779 = vmatmul.mubr.msk.f32.gmra.mrb[38].mxu0 %vm42_vm0, %v964_v23  ;;  %1811 = vmatmul.mubr.msk.f32.gmra.mrb[38].mxu1 %vm42_vm0, %v964_v23 }
 0x389   :  { %v965_v35 = vmax.f32 %v903_v27, %v949_v29  ;;  %v913_v36 = vadd.f32 %v2153_v56, %v912_v33 }
 0x38a   :  { %982 = vst.msk [vmem:[%s2440_s3 + $0x48] sm:$0xff] %vm42_vm0, %v966_v31  ;;  %v952_v34 = vmul.f32 0.01, %v918_v32 }
 0x38b   :  { %981 = vst.msk [vmem:[%s2440_s3 + $0x40] sm:$0xff] %vm42_vm0, %v965_v35  ;;  %v951_v37 = vmul.f32 0.01, %v913_v36  ;;  %v1757_v38 = vpop.f32.mrb[28].mxu1  ;;  %1781 = vmatprep.mubr.msk.f32.mxu0 %vm42_vm0, %v965_v35  ;;  %1813 = vmatprep.mubr.msk.f32.mxu1 %vm42_vm0, %v965_v35 }
 0x38c   :  { %v968_v39 = vmax.f32 %v918_v32, %v952_v34  ;;  %v928_v40 = vadd.f32 %v1757_v38, %v2153_v56  ;;  %v922_v42 = vpop.f32.mrb[29].mxu1  ;;  %1782 = vmatmul.mubr.msk.f32.gmra.mrb[40].mxu0 %vm42_vm0, %v966_v31  ;;  %1814 = vmatmul.mubr.msk.f32.gmra.mrb[40].mxu1 %vm42_vm0, %v966_v31 }
 0x38d   :  { %v967_v43 = vmax.f32 %v913_v36, %v951_v37  ;;  %v923_v41 = vadd.f32 %v2153_v56, %v922_v42 }
 0x38e   :  { %984 = vst.msk [vmem:[%s2440_s3 + $0x58] sm:$0xff] %vm42_vm0, %v968_v39  ;;  %v954_v44 = vmul.f32 0.01, %v928_v40 }
 0x38f   :  { %983 = vst.msk [vmem:[%s2440_s3 + $0x50] sm:$0xff] %vm42_vm0, %v967_v43  ;;  %v953_v45 = vmul.f32 0.01, %v923_v41  ;;  %v1760_v46 = vpop.f32.mrb[30].mxu1  ;;  %1784 = vmatprep.mubr.msk.f32.mxu0 %vm42_vm0, %v967_v43  ;;  %1816 = vmatprep.mubr.msk.f32.mxu1 %vm42_vm0, %v967_v43 }
 0x390   :  { %v970_v47 = vmax.f32 %v928_v40, %v954_v44  ;;  %v938_v48 = vadd.f32 %v1760_v46, %v2153_v56  ;;  %v932_v49 = vpop.f32.mrb[31].mxu1  ;;  %1785 = vmatmul.mubr.msk.f32.gmra.mrb[42].mxu0 %vm42_vm0, %v968_v39  ;;  %1817 = vmatmul.mubr.msk.f32.gmra.mrb[42].mxu1 %vm42_vm0, %v968_v39 }
 0x391   :  { %v969_v50 = vmax.f32 %v923_v41, %v953_v45  ;;  %v933_v52 = vadd.f32 %v2153_v56, %v932_v49 }
 0x392   :  { %986 = vst.msk [vmem:[%s2440_s3 + $0x68] sm:$0xff] %vm42_vm0, %v970_v47  ;;  %v956_v53 = vmul.f32 0.01, %v938_v48 }
 0x393   :  { %985 = vst.msk [vmem:[%s2440_s3 + $0x60] sm:$0xff] %vm42_vm0, %v969_v50  ;;  %v955_v54 = vmul.f32 0.01, %v933_v52  ;;  %1787 = vmatprep.mubr.msk.f32.mxu0 %vm42_vm0, %v969_v50  ;;  %1819 = vmatprep.mubr.msk.f32.mxu1 %vm42_vm0, %v969_v50 }
 0x394   :  { %v972_v55 = vmax.f32 %v938_v48, %v956_v53  ;;  %1788 = vmatmul.mubr.msk.f32.gmra.mrb[44].mxu0 %vm42_vm0, %v970_v47  ;;  %1820 = vmatmul.mubr.msk.f32.gmra.mrb[44].mxu1 %vm42_vm0, %v970_v47 }
 0x395   :  { %v971_v56 = vmax.f32 %v933_v52, %v955_v54 }
 0x396   :  { %988 = vst.msk [vmem:[%s2440_s3 + $0x78] sm:$0xff] %vm42_vm0, %v972_v55 }
 0x397   :  { %987 = vst.msk [vmem:[%s2440_s3 + $0x70] sm:$0xff] %vm42_vm0, %v971_v56  ;;  %1790 = vmatprep.mubr.msk.f32.mxu0 %vm42_vm0, %v971_v56  ;;  %1822 = vmatprep.mubr.msk.f32.mxu1 %vm42_vm0, %v971_v56 }
 0x398   :  { %1791 = vmatmul.mubr.msk.f32.gmra.mrb[46].mxu0 %vm42_vm0, %v972_v55  ;;  %1823 = vmatmul.mubr.msk.f32.gmra.mrb[46].mxu1 %vm42_vm0, %v972_v55 }
 0x44f   :  { %v1771_v58 = vpop.f32.mrb[32].mxu0  ;;  %v1803_v59 = vpop.f32.mrb[32].mxu1 }
 0x450   :  { %v1119_v60 = vadd.f32 %v1771_v58, %v2270_v57  ;;  %v1290_v61 = vadd.f32 %v1803_v59, %v2275_v51  ;;  %v1113_v62 = vpop.f32.mrb[33].mxu0  ;;  %v1284_v63 = vpop.f32.mrb[33].mxu1 }
 0x451   :  { %v1114_v0 = vadd.f32 %v2270_v57, %v1113_v62  ;;  %v1285_v1 = vadd.f32 %v2275_v51, %v1284_v63 }
 0x452   :  { %1193 = vst.msk [vmem:[%s2441_s4 + $0x8] sm:$0xff] %vm42_vm0, %v1119_v60  ;;  %1364 = vst.msk [vmem:[%s2442_s5 + $0x8] sm:$0xff] %vm42_vm0, %v1290_v61 }
 0x453   :  { %1192 = vst.msk [vmem:[%s2441_s4] sm:$0xff] %vm42_vm0, %v1114_v0  ;;  %1363 = vst.msk [vmem:[%s2442_s5] sm:$0xff] %vm42_vm0, %v1285_v1  ;;  %v1774_v2 = vpop.f32.mrb[34].mxu0  ;;  %v1806_v3 = vpop.f32.mrb[34].mxu1 }
 0x454   :  { %v1129_v4 = vadd.f32 %v1774_v2, %v2270_v57  ;;  %v1300_v5 = vadd.f32 %v1806_v3, %v2275_v51  ;;  %v1123_v6 = vpop.f32.mrb[35].mxu0  ;;  %v1294_v7 = vpop.f32.mrb[35].mxu1 }
 0x455   :  { %v1124_v8 = vadd.f32 %v2270_v57, %v1123_v6  ;;  %v1295_v9 = vadd.f32 %v2275_v51, %v1294_v7 }
 0x456   :  { %1195 = vst.msk [vmem:[%s2441_s4 + $0x18] sm:$0xff] %vm42_vm0, %v1129_v4  ;;  %1366 = vst.msk [vmem:[%s2442_s5 + $0x18] sm:$0xff] %vm42_vm0, %v1300_v5 }
 0x457   :  { %1194 = vst.msk [vmem:[%s2441_s4 + $0x10] sm:$0xff] %vm42_vm0, %v1124_v8  ;;  %1365 = vst.msk [vmem:[%s2442_s5 + $0x10] sm:$0xff] %vm42_vm0, %v1295_v9  ;;  %v1777_v10 = vpop.f32.mrb[36].mxu0  ;;  %v1809_v11 = vpop.f32.mrb[36].mxu1 }
 0x458   :  { %v1139_v12 = vadd.f32 %v1777_v10, %v2270_v57  ;;  %v1310_v13 = vadd.f32 %v1809_v11, %v2275_v51  ;;  %v1133_v14 = vpop.f32.mrb[37].mxu0  ;;  %v1304_v15 = vpop.f32.mrb[37].mxu1 }
 0x459   :  { %v1134_v16 = vadd.f32 %v2270_v57, %v1133_v14  ;;  %v1305_v17 = vadd.f32 %v2275_v51, %v1304_v15 }
 0x45a   :  { %1197 = vst.msk [vmem:[%s2441_s4 + $0x28] sm:$0xff] %vm42_vm0, %v1139_v12  ;;  %1368 = vst.msk [vmem:[%s2442_s5 + $0x28] sm:$0xff] %vm42_vm0, %v1310_v13 }
 0x45b   :  { %1196 = vst.msk [vmem:[%s2441_s4 + $0x20] sm:$0xff] %vm42_vm0, %v1134_v16  ;;  %1367 = vst.msk [vmem:[%s2442_s5 + $0x20] sm:$0xff] %vm42_vm0, %v1305_v17  ;;  %v1780_v18 = vpop.f32.mrb[38].mxu0  ;;  %v1812_v19 = vpop.f32.mrb[38].mxu1 }
 0x45c   :  { %v1149_v20 = vadd.f32 %v1780_v18, %v2270_v57  ;;  %v1320_v21 = vadd.f32 %v1812_v19, %v2275_v51  ;;  %v1143_v22 = vpop.f32.mrb[39].mxu0  ;;  %v1314_v23 = vpop.f32.mrb[39].mxu1 }
 0x45d   :  { %v1144_v24 = vadd.f32 %v2270_v57, %v1143_v22  ;;  %v1315_v25 = vadd.f32 %v2275_v51, %v1314_v23 }
 0x45e   :  { %1199 = vst.msk [vmem:[%s2441_s4 + $0x38] sm:$0xff] %vm42_vm0, %v1149_v20  ;;  %1370 = vst.msk [vmem:[%s2442_s5 + $0x38] sm:$0xff] %vm42_vm0, %v1320_v21 }
 0x45f   :  { %1198 = vst.msk [vmem:[%s2441_s4 + $0x30] sm:$0xff] %vm42_vm0, %v1144_v24  ;;  %1369 = vst.msk [vmem:[%s2442_s5 + $0x30] sm:$0xff] %vm42_vm0, %v1315_v25  ;;  %v1783_v26 = vpop.f32.mrb[40].mxu0  ;;  %v1815_v27 = vpop.f32.mrb[40].mxu1 }
 0x460   :  { %v1159_v28 = vadd.f32 %v1783_v26, %v2270_v57  ;;  %v1330_v29 = vadd.f32 %v1815_v27, %v2275_v51  ;;  %v1153_v30 = vpop.f32.mrb[41].mxu0  ;;  %v1324_v31 = vpop.f32.mrb[41].mxu1 }
 0x461   :  { %v1154_v32 = vadd.f32 %v2270_v57, %v1153_v30  ;;  %v1325_v33 = vadd.f32 %v2275_v51, %v1324_v31 }
 0x462   :  { %1201 = vst.msk [vmem:[%s2441_s4 + $0x48] sm:$0xff] %vm42_vm0, %v1159_v28  ;;  %1372 = vst.msk [vmem:[%s2442_s5 + $0x48] sm:$0xff] %vm42_vm0, %v1330_v29 }
 0x463   :  { %1200 = vst.msk [vmem:[%s2441_s4 + $0x40] sm:$0xff] %vm42_vm0, %v1154_v32  ;;  %1371 = vst.msk [vmem:[%s2442_s5 + $0x40] sm:$0xff] %vm42_vm0, %v1325_v33  ;;  %v1786_v35 = vpop.f32.mrb[42].mxu0  ;;  %v1818_v36 = vpop.f32.mrb[42].mxu1 }
 0x464   :  { %v1169_v34 = vadd.f32 %v1786_v35, %v2270_v57  ;;  %v1340_v37 = vadd.f32 %v1818_v36, %v2275_v51  ;;  %v1163_v38 = vpop.f32.mrb[43].mxu0  ;;  %v1334_v39 = vpop.f32.mrb[43].mxu1 }
 0x465   :  { %v1164_v40 = vadd.f32 %v2270_v57, %v1163_v38  ;;  %v1335_v42 = vadd.f32 %v2275_v51, %v1334_v39 }
 0x466   :  { %1203 = vst.msk [vmem:[%s2441_s4 + $0x58] sm:$0xff] %vm42_vm0, %v1169_v34  ;;  %1374 = vst.msk [vmem:[%s2442_s5 + $0x58] sm:$0xff] %vm42_vm0, %v1340_v37 }
 0x467   :  { %1202 = vst.msk [vmem:[%s2441_s4 + $0x50] sm:$0xff] %vm42_vm0, %v1164_v40  ;;  %1373 = vst.msk [vmem:[%s2442_s5 + $0x50] sm:$0xff] %vm42_vm0, %v1335_v42  ;;  %v1789_v43 = vpop.f32.mrb[44].mxu0  ;;  %v1821_v41 = vpop.f32.mrb[44].mxu1 }
 0x468   :  { %v1179_v44 = vadd.f32 %v1789_v43, %v2270_v57  ;;  %v1350_v45 = vadd.f32 %v1821_v41, %v2275_v51  ;;  %v1173_v46 = vpop.f32.mrb[45].mxu0  ;;  %v1344_v47 = vpop.f32.mrb[45].mxu1 }
 0x469   :  { %v1174_v48 = vadd.f32 %v2270_v57, %v1173_v46  ;;  %v1345_v49 = vadd.f32 %v2275_v51, %v1344_v47 }
 0x46a   :  { %1205 = vst.msk [vmem:[%s2441_s4 + $0x68] sm:$0xff] %vm42_vm0, %v1179_v44  ;;  %1376 = vst.msk [vmem:[%s2442_s5 + $0x68] sm:$0xff] %vm42_vm0, %v1350_v45 }
 0x46b   :  { %1204 = vst.msk [vmem:[%s2441_s4 + $0x60] sm:$0xff] %vm42_vm0, %v1174_v48  ;;  %1375 = vst.msk [vmem:[%s2442_s5 + $0x60] sm:$0xff] %vm42_vm0, %v1345_v49  ;;  %v1792_v50 = vpop.f32.mrb[46].mxu0  ;;  %v1824_v52 = vpop.f32.mrb[46].mxu1 }
 0x46c   :  { %v1189_v53 = vadd.f32 %v1792_v50, %v2270_v57  ;;  %v1360_v54 = vadd.f32 %v1824_v52, %v2275_v51  ;;  %v1183_v55 = vpop.f32.mrb[47].mxu0  ;;  %v1354_v56 = vpop.f32.mrb[47].mxu1 }
 0x46d   :  { %v1184_v58 = vadd.f32 %v2270_v57, %v1183_v55  ;;  %v1355_v59 = vadd.f32 %v2275_v51, %v1354_v56 }
 0x46e   :  { %1207 = vst.msk [vmem:[%s2441_s4 + $0x78] sm:$0xff] %vm42_vm0, %v1189_v53  ;;  %1378 = vst.msk [vmem:[%s2442_s5 + $0x78] sm:$0xff] %vm42_vm0, %v1360_v54 }
 0x46f   :  { %1206 = vst.msk [vmem:[%s2441_s4 + $0x70] sm:$0xff] %vm42_vm0, %v1184_v58  ;;  %1377 = vst.msk [vmem:[%s2442_s5 + $0x70] sm:$0xff] %vm42_vm0, %v1355_v59 }

// kernel: pfnet7_forward.4
= control target key start
LH: loop header
LB: loop body
LE: loop exit
PB: predicated region body
PF: predicated region fallthrough
CT: control target
= control target key end

     0   :  { %vm89_vm0 = vcmask 261120   ;;  %v6895_v3 = vmov 0.0|0.0   ;;  %vm6896_vm2 = vmmov 0   ;;  %v9594_v4 = vmov 0.0   ;;  %s9587_s2 = inlined_call_operand.vmem [shape: f32[128,32], index: 2, kind: input, shape index: {}]   ;;  %s9588_s3 = inlined_call_operand.vmem [shape: f32[128,32], index: 3, kind: input, shape index: {}]   ;;  %s9589_s4 = inlined_call_operand.vmem [shape: f32[18,32,32], index: 4, kind: input, shape index: {}]   ;;  %s9590_s1 = inlined_call_operand.vmem [shape: f32[128,32], index: 1, kind: input, shape index: {}]   ;;  %s9591_s5 = inlined_call_operand.vmem [shape: f32[18,32], index: 5, kind: input, shape index: {}]   ;;  %s9592_s6 = inlined_call_operand.vmem [shape: f32[128,128], index: 6, kind: output, shape index: {}]   ;;  %s9593_s0 = inlined_call_operand.vmem [shape: f32[128,32], index: 0, kind: input, shape index: {}]  }
   0x1   :  { %v40_v0 = vld [vmem:[%s9587_s2] sm:$0xff]  ;;  %v6941_v1 = vld [vmem:[%s9587_s2 + $0x8] sm:$0xff]  ;;  %vm6945_vm1 = vmpackc.low %vm89_vm0, %vm89_vm0  ;;  %6502 = vmatprep.subr.bf16.mxu1 %v6895_v3  ;;  %5963 = vmatprep.mubr.msk.f32.mxu1 %vm6896_vm2, %v9594_v4 }
   0x2   :  { %v6454_v5 = vpack.c.bf16 %v6941_v1, %v40_v0  ;;  %v395_v6 = vmul.f32 %v40_v0, %v40_v0  ;;  %v396_v7 = vmul.f32 %v6941_v1, %v6941_v1  ;;  %v6957_v8 = vld [vmem:[%s9587_s2 + $0x10] sm:$0xff]  ;;  %v6962_v9 = vld [vmem:[%s9587_s2 + $0x18] sm:$0xff]  ;;  %5907 = vmatprep.mubr.msk.f32.mxu0 %vm89_vm0, %v40_v0  ;;  %v6984_v15 = vld [vmem:[%s9587_s2 + $0x20] sm:$0xff] }
   0x3   :  { %v6460_v10 = vpack.c.bf16 %v6962_v9, %v6957_v8  ;;  %v397_v12 = vmul.f32 %v6957_v8, %v6957_v8  ;;  %v398_v13 = vmul.f32 %v6962_v9, %v6962_v9  ;;  %v6989_v16 = vld [vmem:[%s9587_s2 + $0x28] sm:$0xff]  ;;  %v7000_v22 = vld [vmem:[%s9587_s2 + $0x38] sm:$0xff]  ;;  %v399_v25 = vmul.f32 %v6984_v15, %v6984_v15  ;;  %v7016_v26 = vld [vmem:[%s9587_s2 + $0x30] sm:$0xff] }
   0x4   :  { %6456 = vmatprep.subr.msk.bf16.mxu0 %vm6945_vm1, %v6454_v5  ;;  %v6503_v11 = vpack.c.bf16 %v396_v7, %v395_v6  ;;  %v6466_v18 = vpack.c.bf16 %v6989_v16, %v6984_v15  ;;  %v347_v19 = vsel %vm89_vm0, %v395_v6, 0.0  ;;  %v400_v21 = vmul.f32 %v6989_v16, %v6989_v16  ;;  %v7023_v28 = vld [vmem:[%s9587_s2 + $0x48] sm:$0xff]  ;;  %v7034_v34 = vld [vmem:[%s9587_s2 + $0x40] sm:$0xff]  ;;  %v7041_v36 = vld [vmem:[%s9587_s2 + $0x58] sm:$0xff] }
   0x5   :  { %6459 = vmatpush3.bf16.xpose.msk.msra.mxu0 %vm6945_vm1, %v6454_v5  ;;  %v353_v14 = vsel %vm89_vm0, %v397_v12, 0.0  ;;  %v6507_v17 = vpack.c.bf16 %v398_v13, %v397_v12  ;;  %v356_v20 = vsel %vm89_vm0, %v398_v13, 0.0  ;;  %348 = vadd.xlane.f32.xlu0 %v347_v19  ;;  %v350_v23 = vsel %vm89_vm0, %v396_v7, 0.0  ;;  %v7057_v40 = vld [vmem:[%s9587_s2 + $0x50] sm:$0xff]  ;;  %v7064_v42 = vld [vmem:[%s9587_s2 + $0x68] sm:$0xff]  ;;  %v52_v48 = vld [vmem:[%s9587_s2 + $0x60] sm:$0xff] }
   0x6   :  { %6505 = vmatpush3.bf16.xpose.msk.msra.mxu1 %vm6945_vm1, %v6503_v11  ;;  %6462 = vmatprep.subr.msk.bf16.mxu0 %vm6945_vm1, %v6460_v10  ;;  %v362_v24 = vsel %vm89_vm0, %v400_v21, 0.0  ;;  %v402_v27 = vmul.f32 %v7000_v22, %v7000_v22  ;;  %v359_v29 = vsel %vm89_vm0, %v399_v25, 0.0  ;;  %v6511_v31 = vpack.c.bf16 %v400_v21, %v399_v25  ;;  %v55_v50 = vld [vmem:[%s9587_s2 + $0x78] sm:$0xff]  ;;  %v54_v54 = vld [vmem:[%s9587_s2 + $0x70] sm:$0xff] }
   0x7   :  { %6506 = vmatprep.subr.bf16.mxu1 %v6895_v3  ;;  %354 = vadd.xlane.f32.xlu1 %v353_v14  ;;  %v6472_v32 = vpack.c.bf16 %v7000_v22, %v7016_v26  ;;  %v401_v33 = vmul.f32 %v7016_v26, %v7016_v26  ;;  %v404_v35 = vmul.f32 %v7023_v28, %v7023_v28  ;;  %v9596_v7 = vmov 1.0  }
   0x8   :  { %v368_v30 = vsel %vm89_vm0, %v402_v27, 0.0  ;;  %v403_v39 = vmul.f32 %v7034_v34, %v7034_v34  ;;  %v406_v41 = vmul.f32 %v7041_v36, %v7041_v36  ;;  %v6478_v46 = vpack.c.bf16 %v7023_v28, %v7034_v34 }
   0x9   :  { %351 = vadd.xlane.f32.xlu0 %v350_v23  ;;  %v365_v37 = vsel %vm89_vm0, %v401_v33, 0.0  ;;  %v374_v38 = vsel %vm89_vm0, %v404_v35, 0.0  ;;  %v6515_v45 = vpack.c.bf16 %v402_v27, %v401_v33  ;;  %v405_v47 = vmul.f32 %v7057_v40, %v7057_v40 }
   0xa   :  { %v371_v43 = vsel %vm89_vm0, %v403_v39, 0.0  ;;  %v380_v44 = vsel %vm89_vm0, %v406_v41, 0.0  ;;  %v408_v49 = vmul.f32 %v7064_v42, %v7064_v42  ;;  %v407_v53 = vmul.f32 %v52_v48, %v52_v48 }
   0xb   :  { %357 = vadd.xlane.f32.xlu1 %v356_v20  ;;  %v377_v51 = vsel %vm89_vm0, %v405_v47, 0.0  ;;  %v410_v55 = vmul.f32 %v55_v50, %v55_v50  ;;  %v6519_v58 = vpack.c.bf16 %v404_v35, %v403_v39  ;;  %v6484_v59 = vpack.c.bf16 %v7041_v36, %v7057_v40 }
   0xc   :  { %v386_v52 = vsel %vm89_vm0, %v408_v49, 0.0  ;;  %v383_v56 = vsel %vm89_vm0, %v407_v53, 0.0  ;;  %v409_v60 = vmul.f32 %v54_v54, %v54_v54  ;;  %v6523_v62 = vpack.c.bf16 %v406_v41, %v405_v47 }
   0xd   :  { %6465 = vmatpush3.bf16.xpose.msk.msra.mxu0 %vm6945_vm1, %v6460_v10  ;;  %360 = vadd.xlane.f32.xlu0 %v359_v29  ;;  %v392_v57 = vsel %vm89_vm0, %v410_v55, 0.0  ;;  %v6490_v63 = vpack.c.bf16 %v7064_v42, %v52_v48  ;;  %v6527_v0 = vpack.c.bf16 %v408_v49, %v407_v53  ;;  %v6496_v5 = vpack.c.bf16 %v55_v50, %v54_v54 }
   0xe   :  { %6509 = vmatpush3.bf16.xpose.msk.msra.mxu1 %vm6945_vm1, %v6507_v17  ;;  %6468 = vmatprep.subr.msk.bf16.mxu0 %vm6945_vm1, %v6466_v18  ;;  %v389_v61 = vsel %vm89_vm0, %v409_v60, 0.0  ;;  %v6531_v6 = vpack.c.bf16 %v410_v55, %v409_v60 }
   0xf   :  { %6510 = vmatprep.subr.bf16.mxu1 %v6895_v3  ;;  %363 = vadd.xlane.f32.xlu1 %v362_v24 }
  0x11   :  { %366 = vadd.xlane.f32.xlu0 %v365_v37 }
  0x13   :  { %369 = vadd.xlane.f32.xlu1 %v368_v30 }
  0x15   :  { %6471 = vmatpush3.bf16.xpose.msk.msra.mxu0 %vm6945_vm1, %v6466_v18  ;;  %372 = vadd.xlane.f32.xlu0 %v371_v43 }
  0x16   :  { %6513 = vmatpush3.bf16.xpose.msk.msra.mxu1 %vm6945_vm1, %v6511_v31  ;;  %6474 = vmatprep.subr.msk.bf16.mxu0 %vm6945_vm1, %v6472_v32 }
  0x17   :  { %6514 = vmatprep.subr.bf16.mxu1 %v6895_v3  ;;  %375 = vadd.xlane.f32.xlu1 %v374_v38 }
  0x19   :  { %378 = vadd.xlane.f32.xlu0 %v377_v51 }
  0x1b   :  { %381 = vadd.xlane.f32.xlu1 %v380_v44 }
  0x1d   :  { %6477 = vmatpush3.bf16.xpose.msk.msra.mxu0 %vm6945_vm1, %v6472_v32  ;;  %384 = vadd.xlane.f32.xlu0 %v383_v56 }
  0x1e   :  { %6517 = vmatpush3.bf16.xpose.msk.msra.mxu1 %vm6945_vm1, %v6515_v45  ;;  %6480 = vmatprep.subr.msk.bf16.mxu0 %vm6945_vm1, %v6478_v46 }
  0x1f   :  { %6518 = vmatprep.subr.bf16.mxu1 %v6895_v3  ;;  %387 = vadd.xlane.f32.xlu1 %v386_v52 }
  0x21   :  { %390 = vadd.xlane.f32.xlu0 %v389_v61 }
  0x23   :  { %393 = vadd.xlane.f32.xlu1 %v392_v57 }
  0x25   :  { %6483 = vmatpush3.bf16.xpose.msk.msra.mxu0 %vm6945_vm1, %v6478_v46 }
  0x26   :  { %6521 = vmatpush3.bf16.xpose.msk.msra.mxu1 %vm6945_vm1, %v6519_v58  ;;  %6486 = vmatprep.subr.msk.bf16.mxu0 %vm6945_vm1, %v6484_v59 }
  0x27   :  { %6522 = vmatprep.subr.bf16.mxu1 %v6895_v3 }
  0x2d   :  { %6489 = vmatpush3.bf16.xpose.msk.msra.mxu0 %vm6945_vm1, %v6484_v59 }
  0x2e   :  { %6525 = vmatpush3.bf16.xpose.msk.msra.mxu1 %vm6945_vm1, %v6523_v62  ;;  %6492 = vmatprep.subr.msk.bf16.mxu0 %vm6945_vm1, %v6490_v63 }
  0x2f   :  { %6526 = vmatprep.subr.bf16.mxu1 %v6895_v3 }
  0x35   :  { %6495 = vmatpush3.bf16.xpose.msk.msra.mxu0 %vm6945_vm1, %v6490_v63 }
  0x36   :  { %6529 = vmatpush3.bf16.xpose.msk.msra.mxu1 %vm6945_vm1, %v6527_v0  ;;  %6498 = vmatprep.subr.msk.bf16.mxu0 %vm6945_vm1, %v6496_v5 }
  0x37   :  { %6530 = vmatprep.subr.bf16.mxu1 %v6895_v3 }
  0x3d   :  { %6501 = vmatpush3.bf16.xpose.msk.msra.mxu0 %vm6945_vm1, %v6496_v5 }
  0x3e   :  { %6533 = vmatpush3.bf16.xpose.msk.msra.mxu1 %vm6945_vm1, %v6531_v6 }
  0x44   :  { %5908 = vmatmul.mubr.msk.f32.vlgmr.msra.gmra.mrb[0].mxu0 %vm89_vm0, %v6941_v1 }
  0x45   :  { %5964 = vmatmul.mubr.msk.f32.vlgmr.msra.gmra.mrb[0].mxu1 %vm89_vm0, %v9596_v7  ;;  %5910 = vmatprep.mubr.msk.f32.mxu0 %vm89_vm0, %v6957_v8  ;;  %v532_v8 = vlaneseq }
  0x47   :  { %v533_v10 = vshrl.u32 %v532_v8, 7 }
  0x48   :  { %5911 = vmatmul.mubr.msk.f32.gmra.mrb[2].mxu0 %vm89_vm0, %v6962_v9 }
  0x49   :  { %5913 = vmatprep.mubr.msk.f32.mxu0 %vm89_vm0, %v6984_v15  ;;  %v534_v13 = vsub.s32 0, %v533_v10 }
  0x4c   :  { %5914 = vmatmul.mubr.msk.f32.gmra.mrb[4].mxu0 %vm89_vm0, %v6989_v16 }
  0x4d   :  { %5916 = vmatprep.mubr.msk.f32.mxu0 %vm89_vm0, %v7016_v26 }
  0x50   :  { %5917 = vmatmul.mubr.msk.f32.gmra.mrb[6].mxu0 %vm89_vm0, %v7000_v22 }
  0x51   :  { %5919 = vmatprep.mubr.msk.f32.mxu0 %vm89_vm0, %v7034_v34 }
  0x54   :  { %5920 = vmatmul.mubr.msk.f32.gmra.mrb[8].mxu0 %vm89_vm0, %v7023_v28 }
  0x55   :  { %5922 = vmatprep.mubr.msk.f32.mxu0 %vm89_vm0, %v7057_v40 }
  0x58   :  { %5923 = vmatmul.mubr.msk.f32.gmra.mrb[10].mxu0 %vm89_vm0, %v7041_v36 }
  0x59   :  { %5925 = vmatprep.mubr.msk.f32.mxu0 %vm89_vm0, %v52_v48 }
  0x5c   :  { %5926 = vmatmul.mubr.msk.f32.gmra.mrb[12].mxu0 %vm89_vm0, %v7064_v42 }
  0x5d   :  { %5928 = vmatprep.mubr.msk.f32.mxu0 %vm89_vm0, %v54_v54 }
  0x60   :  { %5929 = vmatmul.mubr.msk.f32.gmra.mrb[14].mxu0 %vm89_vm0, %v55_v50 }
  0x92   :  { %v349_v2 = vpop.xlane.xlu0 %348 }
  0x94   :  { %v355_v1 = vpop.xlane.xlu1 %354 }
  0x96   :  { %v352_v9 = vpop.xlane.xlu0 %351 }
  0x98   :  { %v358_v3 = vpop.xlane.xlu1 %357 }
  0x9a   :  { %v361_v12 = vpop.xlane.xlu0 %360 }
  0x9c   :  { %v364_v11 = vpop.xlane.xlu1 %363 }
  0x9e   :  { %v367_v21 = vpop.xlane.xlu0 %366 }
  0xa0   :  { %v370_v17 = vpop.xlane.xlu1 %369 }
  0xa2   :  { %v373_v38 = vpop.xlane.xlu0 %372 }
  0xa4   :  { %v376_v33 = vpop.xlane.xlu1 %375 }
  0xa6   :  { %v379_v56 = vpop.xlane.xlu0 %378 }
  0xa8   :  { %v382_v52 = vpop.xlane.xlu1 %381 }
 0x117   :  { %v5909_v14 = vpop.f32.mrb[0].mxu0 }
 0x118   :  { %v528_v15 = vpop.f32.mrb[0].mxu1  ;;  %v252_v16 = vpop.f32.mrb[1].mxu0  ;;  %v553_v22 = vmul.f32 2.0, %v5909_v14 }
 0x119   :  { %v7153_v18 = vrot.slane %v528_v15, %v534_v13  ;;  %v552_v19 = vmul.f32 2.0, %v252_v16  ;;  %v5965_v20 = vpop.f32.mrb[1].mxu1 }
 0x11b   :  { %v536_v23 = vadd.f32 %v7153_v18, %v349_v2  ;;  %v5912_v24 = vpop.f32.mrb[2].mxu0  ;;  %v539_v25 = vadd.f32 %v7153_v18, %v358_v3  ;;  %v538_v29 = vadd.f32 %v7153_v18, %v355_v1  ;;  %v537_v31 = vadd.f32 %v7153_v18, %v352_v9  ;;  %v388_v2 = vpop.xlane.xlu1 %387 }
 0x11c   :  { %v555_v26 = vmul.f32 2.0, %v5912_v24  ;;  %v262_v27 = vpop.f32.mrb[3].mxu0  ;;  %v541_v39 = vadd.f32 %v7153_v18, %v364_v11  ;;  %v540_v42 = vadd.f32 %v7153_v18, %v361_v12  ;;  %v543_v49 = vadd.f32 %v7153_v18, %v370_v17  ;;  %v385_v11 = vpop.xlane.xlu0 %384 }
 0x11d   :  { %v568_v28 = vsub.f32 %v536_v23, %v552_v19  ;;  %v554_v30 = vmul.f32 2.0, %v262_v27  ;;  %v569_v37 = vsub.f32 %v537_v31, %v553_v22  ;;  %v542_v54 = vadd.f32 %v7153_v18, %v367_v21 }
 0x11e   :  { %v571_v32 = vsub.f32 %v539_v25, %v555_v26  ;;  %v545_v61 = vadd.f32 %v7153_v18, %v376_v33  ;;  %v544_v5 = vadd.f32 %v7153_v18, %v373_v38  ;;  %v547_v12 = vadd.f32 %v7153_v18, %v382_v52 }
 0x11f   :  { %v7159_v34 = vmax.f32 %v568_v28, 0.0  ;;  %v570_v35 = vsub.f32 %v538_v29, %v554_v30  ;;  %v5915_v36 = vpop.f32.mrb[4].mxu0  ;;  %v7163_v44 = vmax.f32 %v569_v37, 0.0  ;;  %v546_v16 = vadd.f32 %v7153_v18, %v379_v56  ;;  %v394_v26 = vpop.xlane.xlu1 %393 }
 0x120   :  { %v557_v40 = vmul.f32 2.0, %v5915_v36  ;;  %v272_v41 = vpop.f32.mrb[5].mxu0  ;;  %v7170_v53 = vmax.f32 %v571_v32, 0.0  ;;  %v549_v23 = vadd.f32 %v7153_v18, %v388_v2  ;;  %v548_v28 = vadd.f32 %v7153_v18, %v385_v11  ;;  %v391_v30 = vpop.xlane.xlu0 %390 }
 0x121   :  { %v556_v43 = vmul.f32 2.0, %v272_v41  ;;  %602 = vmin.xlane.f32.xlu0 %v7159_v34  ;;  %v7166_v46 = vmax.f32 %v570_v35, 0.0  ;;  %604 = vmin.xlane.f32.xlu1 %v7163_v44  ;;  %v551_v36 = vadd.f32 %v7153_v18, %v394_v26 }
 0x122   :  { %v573_v45 = vsub.f32 %v541_v39, %v557_v40  ;;  %v550_v39 = vadd.f32 %v7153_v18, %v391_v30 }
 0x123   :  { %v572_v47 = vsub.f32 %v540_v42, %v556_v43  ;;  %v5918_v48 = vpop.f32.mrb[6].mxu0 }
 0x124   :  { %v559_v50 = vmul.f32 2.0, %v5918_v48  ;;  %v282_v51 = vpop.f32.mrb[7].mxu0  ;;  %v7178_v0 = vmax.f32 %v573_v45, 0.0 }
 0x125   :  { %v558_v55 = vmul.f32 2.0, %v282_v51  ;;  %606 = vmin.xlane.f32.xlu0 %v7166_v46  ;;  %v7174_v58 = vmax.f32 %v572_v47, 0.0  ;;  %608 = vmin.xlane.f32.xlu1 %v7170_v53 }
 0x126   :  { %v575_v57 = vsub.f32 %v543_v49, %v559_v50  ;;  %v7220_v49 = vand.u32 127, %v532_v8 }
 0x127   :  { %v574_v59 = vsub.f32 %v542_v54, %v558_v55  ;;  %v5921_v60 = vpop.f32.mrb[8].mxu0 }
 0x128   :  { %v561_v62 = vmul.f32 2.0, %v5921_v60  ;;  %v292_v63 = vpop.f32.mrb[9].mxu0  ;;  %v7186_v15 = vmax.f32 %v575_v57, 0.0  ;;  %9666 = vst [vmem:[#allocation2_spill] sm:$0xff] %v7220_v49 }
 0x129   :  { %v560_v6 = vmul.f32 2.0, %v292_v63  ;;  %610 = vmin.xlane.f32.xlu0 %v7174_v58  ;;  %v7182_v3 = vmax.f32 %v574_v59, 0.0  ;;  %612 = vmin.xlane.f32.xlu1 %v7178_v0 }
 0x12a   :  { %v577_v1 = vsub.f32 %v545_v61, %v561_v62 }
 0x12b   :  { %v576_v9 = vsub.f32 %v544_v5, %v560_v6  ;;  %v5924_v10 = vpop.f32.mrb[10].mxu0 }
 0x12c   :  { %v563_v13 = vmul.f32 2.0, %v5924_v10  ;;  %v302_v14 = vpop.f32.mrb[11].mxu0  ;;  %v7194_v27 = vmax.f32 %v577_v1, 0.0 }
 0x12d   :  { %v562_v17 = vmul.f32 2.0, %v302_v14  ;;  %614 = vmin.xlane.f32.xlu0 %v7182_v3  ;;  %v7190_v20 = vmax.f32 %v576_v9, 0.0  ;;  %616 = vmin.xlane.f32.xlu1 %v7186_v15 }
 0x12e   :  { %v579_v19 = vsub.f32 %v547_v12, %v563_v13 }
 0x12f   :  { %v578_v21 = vsub.f32 %v546_v16, %v562_v17  ;;  %v5927_v22 = vpop.f32.mrb[12].mxu0 }
 0x130   :  { %v565_v24 = vmul.f32 2.0, %v5927_v22  ;;  %v312_v25 = vpop.f32.mrb[13].mxu0  ;;  %v7203_v40 = vmax.f32 %v579_v19, 0.0 }
 0x131   :  { %v564_v29 = vmul.f32 2.0, %v312_v25  ;;  %618 = vmin.xlane.f32.xlu0 %v7190_v20  ;;  %v7198_v32 = vmax.f32 %v578_v21, 0.0  ;;  %620 = vmin.xlane.f32.xlu1 %v7194_v27 }
 0x132   :  { %v581_v31 = vsub.f32 %v549_v23, %v565_v24 }
 0x133   :  { %v580_v33 = vsub.f32 %v548_v28, %v564_v29  ;;  %v5930_v35 = vpop.f32.mrb[14].mxu0 }
 0x134   :  { %v567_v37 = vmul.f32 2.0, %v5930_v35  ;;  %v322_v38 = vpop.f32.mrb[15].mxu0  ;;  %v7209_v47 = vmax.f32 %v581_v31, 0.0 }
 0x135   :  { %v566_v41 = vmul.f32 2.0, %v322_v38  ;;  %622 = vmin.xlane.f32.xlu0 %v7198_v32  ;;  %v7206_v43 = vmax.f32 %v580_v33, 0.0  ;;  %624 = vmin.xlane.f32.xlu1 %v7203_v40 }
 0x136   :  { %v583_v42 = vsub.f32 %v551_v36, %v567_v37 }
 0x137   :  { %v582_v45 = vsub.f32 %v550_v39, %v566_v41 }
 0x138   :  { %v7215_v18 = vmax.f32 %v583_v42, 0.0 }
 0x139   :  { %626 = vmin.xlane.f32.xlu0 %v7206_v43  ;;  %v7212_v48 = vmax.f32 %v582_v45, 0.0  ;;  %628 = vmin.xlane.f32.xlu1 %v7209_v47 }
 0x13d   :  { %630 = vmin.xlane.f32.xlu0 %v7212_v48  ;;  %632 = vmin.xlane.f32.xlu1 %v7215_v18 }
 0x1ae   :  { %v7222_v50 = vpop.xlane.xlu0 %602  ;;  %v7226_v51 = vpop.xlane.xlu1 %604 }
 0x1af   :  { %vm634_vm3 = vcmp.eq.f32.partialorder %v7159_v34, %v7222_v50  ;;  %vm635_vm4 = vcmp.eq.f32.partialorder %v7163_v44, %v7226_v51 }
 0x1b0   :  { %v7229_v52 = vsel %vm634_vm3, %v7220_v49, 128  ;;  %v7237_v8 = vsel %vm635_vm4, %v7220_v49, 128 }
 0x1b1   :  { %v667_v54 = vshra.s32 %v7229_v52, 16  ;;  %v681_v57 = vshra.s32 %v7237_v8, 16 }
 0x1b2   :  { %v7234_v55 = vpop.xlane.xlu0 %606  ;;  %v7241_v56 = vpop.xlane.xlu1 %608 }
 0x1b3   :  { %9667 = vst [vmem:[#allocation3_spill] sm:$0xff] %v7234_v55  ;;  %vm636_vm5 = vcmp.eq.f32.partialorder %v7166_v46, %v7234_v55  ;;  %9668 = vst [vmem:[#allocation4_spill] sm:$0xff] %v7241_v56  ;;  %v7244_v59 = vcvt.s32.f32 %v667_v54  ;;  %vm637_vm6 = vcmp.eq.f32.partialorder %v7170_v53, %v7241_v56  ;;  %v7251_v61 = vcvt.s32.f32 %v681_v57 }
 0x1b4   :  { %v7247_v60 = vsel %vm636_vm5, %v7220_v49, 128  ;;  %v7257_v63 = vsel %vm637_vm6, %v7220_v49, 128 }
 0x1b5   :  { %670 = vmin.xlane.f32.xlu0 %v7244_v59  ;;  %v695_v5 = vshra.s32 %v7247_v60, 16  ;;  %684 = vmin.xlane.f32.xlu1 %v7251_v61  ;;  %v709_v1 = vshra.s32 %v7257_v63, 16 }
 0x1b6   :  { %v7254_v62 = vpop.xlane.xlu0 %610  ;;  %v7263_v6 = vpop.xlane.xlu1 %612 }
 0x1b7   :  { %9669 = vst [vmem:[#allocation5_spill] sm:$0xff] %v7254_v62  ;;  %vm638_vm7 = vcmp.eq.f32.partialorder %v7174_v58, %v7254_v62  ;;  %9670 = vst [vmem:[#allocation6_spill] sm:$0xff] %v7263_v6  ;;  %v7266_v2 = vcvt.s32.f32 %v695_v5  ;;  %vm639_vm8 = vcmp.eq.f32.partialorder %v7178_v0, %v7263_v6  ;;  %v7273_v10 = vcvt.s32.f32 %v709_v1 }
 0x1b8   :  { %v7269_v9 = vsel %vm638_vm7, %v7220_v49, 128  ;;  %v7279_v12 = vsel %vm639_vm8, %v7220_v49, 128 }
 0x1b9   :  { %698 = vmin.xlane.f32.xlu0 %v7266_v2  ;;  %v723_v13 = vshra.s32 %v7269_v9, 16  ;;  %712 = vmin.xlane.f32.xlu1 %v7273_v10  ;;  %v737_v16 = vshra.s32 %v7279_v12, 16 }
 0x1ba   :  { %v7276_v11 = vpop.xlane.xlu0 %614  ;;  %v7285_v14 = vpop.xlane.xlu1 %616 }
 0x1bb   :  { %9671 = vst [vmem:[#allocation7_spill] sm:$0xff] %v7276_v11  ;;  %vm640_vm9 = vcmp.eq.f32.partialorder %v7182_v3, %v7276_v11  ;;  %9672 = vst [vmem:[#allocation8_spill] sm:$0xff] %v7285_v14  ;;  %v7288_v17 = vcvt.s32.f32 %v723_v13  ;;  %vm641_vm10 = vcmp.eq.f32.partialorder %v7186_v15, %v7285_v14  ;;  %v7295_v21 = vcvt.s32.f32 %v737_v16  ;;  %v61_v14 = vld [vmem:[%s9588_s3 + $0x28] sm:$0xff] }
 0x1bc   :  { %v7291_v19 = vsel %vm640_vm9, %v7220_v49, 128  ;;  %v7301_v23 = vsel %vm641_vm10, %v7220_v49, 128 }
 0x1bd   :  { %726 = vmin.xlane.f32.xlu0 %v7288_v17  ;;  %v751_v24 = vshra.s32 %v7291_v19, 16  ;;  %740 = vmin.xlane.f32.xlu1 %v7295_v21  ;;  %v765_v26 = vshra.s32 %v7301_v23, 16 }
 0x1be   :  { %v7298_v22 = vpop.xlane.xlu0 %618  ;;  %v7307_v25 = vpop.xlane.xlu1 %620 }
 0x1bf   :  { %9673 = vst [vmem:[#allocation9_spill] sm:$0xff] %v7298_v22  ;;  %vm642_vm11 = vcmp.eq.f32.partialorder %v7190_v20, %v7298_v22  ;;  %9674 = vst [vmem:[#allocation10_spill] sm:$0xff] %v7307_v25  ;;  %v7310_v28 = vcvt.s32.f32 %v751_v24  ;;  %vm643_vm12 = vcmp.eq.f32.partialorder %v7194_v27, %v7307_v25  ;;  %v7317_v30 = vcvt.s32.f32 %v765_v26  ;;  %v60_v22 = vld [vmem:[%s9588_s3 + $0x20] sm:$0xff] }
 0x1c0   :  { %v7313_v29 = vsel %vm642_vm11, %v7220_v49, 128  ;;  %v7323_v33 = vsel %vm643_vm12, %v7220_v49, 128  ;;  %v6542_v11 = vpack.c.bf16 %v61_v14, %v60_v22  ;;  %v66_v22 = vld [vmem:[%s9588_s3 + $0x50] sm:$0xff] }
 0x1c1   :  { %754 = vmin.xlane.f32.xlu0 %v7310_v28  ;;  %v779_v35 = vshra.s32 %v7313_v29, 16  ;;  %768 = vmin.xlane.f32.xlu1 %v7317_v30  ;;  %v793_v37 = vshra.s32 %v7323_v33, 16 }
 0x1c2   :  { %v7320_v31 = vpop.xlane.xlu0 %622  ;;  %v7329_v36 = vpop.xlane.xlu1 %624 }
 0x1c3   :  { %9675 = vst [vmem:[#allocation11_spill] sm:$0xff] %v7320_v31  ;;  %vm644_vm13 = vcmp.eq.f32.partialorder %v7198_v32, %v7320_v31  ;;  %9676 = vst [vmem:[#allocation12_spill] sm:$0xff] %v7329_v36  ;;  %v7332_v38 = vcvt.s32.f32 %v779_v35  ;;  %vm645_vm14 = vcmp.eq.f32.partialorder %v7203_v40, %v7329_v36  ;;  %v7339_v41 = vcvt.s32.f32 %v793_v37  ;;  %v58_v31 = vld [vmem:[%s9588_s3 + $0x10] sm:$0xff] }
 0x1c4   :  { %v7335_v39 = vsel %vm644_vm13, %v7220_v49, 128  ;;  %v7345_v45 = vsel %vm645_vm14, %v7220_v49, 128 }
 0x1c5   :  { %782 = vmin.xlane.f32.xlu0 %v7332_v38  ;;  %v807_v54 = vshra.s32 %v7335_v39, 16  ;;  %796 = vmin.xlane.f32.xlu1 %v7339_v41  ;;  %v821_v5 = vshra.s32 %v7345_v45, 16 }
 0x1c6   :  { %v7342_v42 = vpop.xlane.xlu0 %626  ;;  %v7351_v57 = vpop.xlane.xlu1 %628 }
 0x1c7   :  { %9677 = vst [vmem:[#allocation13_spill] sm:$0xff] %v7342_v42  ;;  %vm646_vm15 = vcmp.eq.f32.partialorder %v7206_v43, %v7342_v42  ;;  %9678 = vst [vmem:[#allocation14_spill] sm:$0xff] %v7351_v57  ;;  %v7354_v1 = vcvt.s32.f32 %v807_v54  ;;  %vm647_vm1 = vcmp.eq.f32.partialorder %v7209_v47, %v7351_v57  ;;  %v7361_v16 = vcvt.s32.f32 %v821_v5 }
 0x1c8   :  { %v7357_v13 = vsel %vm646_vm15, %v7220_v49, 128  ;;  %v7367_v26 = vsel %vm647_vm1, %v7220_v49, 128 }
 0x1c9   :  { %810 = vmin.xlane.f32.xlu0 %v7354_v1  ;;  %v835_v35 = vshra.s32 %v7357_v13, 16  ;;  %824 = vmin.xlane.f32.xlu1 %v7361_v16  ;;  %v849_v54 = vshra.s32 %v7367_v26, 16 }
 0x1ca   :  { %v7364_v24 = vpop.xlane.xlu0 %630  ;;  %v7373_v37 = vpop.xlane.xlu1 %632 }
 0x1cb   :  { %9679 = vst [vmem:[#allocation15_spill] sm:$0xff] %v7364_v24  ;;  %vm648_vm2 = vcmp.eq.f32.partialorder %v7212_v48, %v7364_v24  ;;  %9680 = vst [vmem:[#allocation16_spill] sm:$0xff] %v7373_v37  ;;  %v7376_v5 = vcvt.s32.f32 %v835_v35  ;;  %vm649_vm3 = vcmp.eq.f32.partialorder %v7215_v18, %v7373_v37  ;;  %v7383_v7 = vcvt.s32.f32 %v849_v54  ;;  %v56_v54 = vld [vmem:[%s9588_s3] sm:$0xff]  ;;  %v57_v37 = vld [vmem:[%s9588_s3 + $0x8] sm:$0xff] }
 0x1cc   :  { %v7379_v4 = vsel %vm648_vm2, %v7220_v49, 128  ;;  %v7387_v24 = vsel %vm649_vm3, %v7220_v49, 128 }
 0x1cd   :  { %838 = vmin.xlane.f32.xlu0 %v7376_v5  ;;  %v863_v57 = vshra.s32 %v7379_v4, 16  ;;  %v877_v42 = vshra.s32 %v7387_v24, 16  ;;  %852 = vmin.xlane.f32.xlu1 %v7383_v7 }
 0x1cf   :  { %v7392_v35 = vcvt.s32.f32 %v863_v57  ;;  %v7394_v36 = vcvt.s32.f32 %v877_v42  ;;  %v6534_v57 = vpack.c.bf16 %v57_v37, %v56_v54  ;;  %v59_v42 = vld [vmem:[%s9588_s3 + $0x18] sm:$0xff]  ;;  %v62_v37 = vld [vmem:[%s9588_s3 + $0x30] sm:$0xff] }
 0x1d0   :  { %v6538_v25 = vpack.c.bf16 %v59_v42, %v58_v31  ;;  %v63_v31 = vld [vmem:[%s9588_s3 + $0x38] sm:$0xff]  ;;  %v64_v42 = vld [vmem:[%s9588_s3 + $0x40] sm:$0xff] }
 0x1d1   :  { %866 = vmin.xlane.f32.xlu0 %v7392_v35  ;;  %880 = vmin.xlane.f32.xlu1 %v7394_v36  ;;  %v6546_v54 = vpack.c.bf16 %v63_v31, %v62_v37  ;;  %v68_v31 = vld [vmem:[%s9588_s3 + $0x60] sm:$0xff] }
 0x1d2   :  { %6535 = vmatprep.subr.bf16.mxu0 %v6534_v57 }
 0x1d3   :  { %6537 = vmatpush3.bf16.msra.mxu0 %v6534_v57  ;;  %v65_v57 = vld [vmem:[%s9588_s3 + $0x48] sm:$0xff] }
 0x1d4   :  { %6539 = vmatprep.subr.bf16.mxu0 %v6538_v25  ;;  %v6550_v14 = vpack.c.bf16 %v65_v57, %v64_v42  ;;  %v666_v57 = vand.u32 65535, %v7229_v52 }
 0x1d7   :  { %6541 = vmatpush3.bf16.msra.mxu0 %v6538_v25  ;;  %v67_v25 = vld [vmem:[%s9588_s3 + $0x58] sm:$0xff] }
 0x1d8   :  { %6543 = vmatprep.subr.bf16.mxu0 %v6542_v11  ;;  %v6554_v37 = vpack.c.bf16 %v67_v25, %v66_v22  ;;  %v668_v22 = vcvt.s32.f32 %v666_v57  ;;  %v694_v25 = vand.u32 65535, %v7247_v60 }
 0x1db   :  { %6545 = vmatpush3.bf16.msra.mxu0 %v6542_v11  ;;  %v69_v11 = vld [vmem:[%s9588_s3 + $0x68] sm:$0xff] }
 0x1dc   :  { %6547 = vmatprep.subr.bf16.mxu0 %v6546_v54  ;;  %v6558_v42 = vpack.c.bf16 %v69_v11, %v68_v31  ;;  %v696_v31 = vcvt.s32.f32 %v694_v25  ;;  %v722_v11 = vand.u32 65535, %v7269_v9  ;;  %v750_v9 = vand.u32 65535, %v7291_v19 }
 0x1dd   :  { %v778_v19 = vand.u32 65535, %v7313_v29  ;;  %v806_v29 = vand.u32 65535, %v7335_v39  ;;  %v834_v39 = vand.u32 65535, %v7357_v13  ;;  %v71_v13 = vld [vmem:[%s9588_s3 + $0x78] sm:$0xff] }
 0x1de   :  { %v724_v57 = vcvt.s32.f32 %v722_v11 }
 0x1df   :  { %6549 = vmatpush3.bf16.msra.mxu0 %v6546_v54  ;;  %v680_v54 = vand.u32 65535, %v7237_v8  ;;  %v780_v11 = vcvt.s32.f32 %v778_v19  ;;  %v876_v19 = vand.u32 65535, %v7387_v24 }
 0x1e0   :  { %6551 = vmatprep.subr.bf16.mxu0 %v6550_v14 }
 0x1e3   :  { %6553 = vmatpush3.bf16.msra.mxu0 %v6550_v14  ;;  %v682_v14 = vcvt.s32.f32 %v680_v54 }
 0x1e4   :  { %6555 = vmatprep.subr.bf16.mxu0 %v6554_v37 }
 0x1e7   :  { %6557 = vmatpush3.bf16.msra.mxu0 %v6554_v37  ;;  %v708_v37 = vand.u32 65535, %v7257_v63  ;;  %v736_v63 = vand.u32 65535, %v7279_v12  ;;  %v764_v12 = vand.u32 65535, %v7301_v23  ;;  %v792_v23 = vand.u32 65535, %v7323_v33 }
 0x1e8   :  { %6559 = vmatprep.subr.bf16.mxu0 %v6558_v42  ;;  %v820_v33 = vand.u32 65535, %v7345_v45  ;;  %v848_v45 = vand.u32 65535, %v7367_v26 }
 0x1e9   :  { %v710_v60 = vcvt.s32.f32 %v708_v37  ;;  %v738_v54 = vcvt.s32.f32 %v736_v63  ;;  %v766_v37 = vcvt.s32.f32 %v764_v12  ;;  %v862_v12 = vand.u32 65535, %v7379_v4 }
 0x1ea   :  { %v850_v26 = vcvt.s32.f32 %v848_v45 }
 0x1eb   :  { %6561 = vmatpush3.bf16.msra.mxu0 %v6558_v42  ;;  %v864_v4 = vcvt.s32.f32 %v862_v12 }
 0x242   :  { %v7442_v6 = vpop.xlane.xlu0 %670  ;;  %v7447_v62 = vpop.xlane.xlu1 %684 }
 0x243   :  { %vm672_vm4 = vcmp.eq.f32.partialorder %v7244_v59, %v7442_v6  ;;  %vm686_vm5 = vcmp.eq.f32.partialorder %v7251_v61, %v7447_v62 }
 0x244   :  { %v673_v56 = vsel %vm672_vm4, %v668_v22, inf  ;;  %v687_v52 = vsel %vm686_vm5, %v682_v14, inf  ;;  %v752_v14 = vcvt.s32.f32 %v750_v9 }
 0x245   :  { %674 = vmin.xlane.f32.xlu0 %v673_v56  ;;  %688 = vmin.xlane.f32.xlu1 %v687_v52 }
 0x246   :  { %v7452_v8 = vpop.xlane.xlu0 %698  ;;  %v7457_v59 = vpop.xlane.xlu1 %712 }
 0x247   :  { %vm700_vm6 = vcmp.eq.f32.partialorder %v7266_v2, %v7452_v8  ;;  %vm714_vm7 = vcmp.eq.f32.partialorder %v7273_v10, %v7457_v59 }
 0x248   :  { %v701_v42 = vsel %vm700_vm6, %v696_v31, inf  ;;  %v715_v56 = vsel %vm714_vm7, %v710_v60, inf  ;;  %v794_v60 = vcvt.s32.f32 %v792_v23  ;;  %v878_v23 = vcvt.s32.f32 %v876_v19 }
 0x249   :  { %702 = vmin.xlane.f32.xlu0 %v701_v42  ;;  %716 = vmin.xlane.f32.xlu1 %v715_v56  ;;  %v808_v56 = vcvt.s32.f32 %v806_v29 }
 0x24a   :  { %v7462_v61 = vpop.xlane.xlu0 %726  ;;  %v7467_v2 = vpop.xlane.xlu1 %740 }
 0x24b   :  { %vm728_vm8 = vcmp.eq.f32.partialorder %v7288_v17, %v7462_v61  ;;  %vm742_vm9 = vcmp.eq.f32.partialorder %v7295_v21, %v7467_v2 }
 0x24c   :  { %v729_v22 = vsel %vm728_vm8, %v724_v57, inf  ;;  %v743_v10 = vsel %vm742_vm9, %v738_v54, inf  ;;  %v822_v57 = vcvt.s32.f32 %v820_v33 }
 0x24d   :  { %730 = vmin.xlane.f32.xlu0 %v729_v22  ;;  %744 = vmin.xlane.f32.xlu1 %v743_v10  ;;  %v836_v22 = vcvt.s32.f32 %v834_v39 }
 0x24e   :  { %v7472_v25 = vpop.xlane.xlu0 %754  ;;  %v7477_v17 = vpop.xlane.xlu1 %768 }
 0x24f   :  { %vm756_vm10 = vcmp.eq.f32.partialorder %v7310_v28, %v7472_v25  ;;  %vm770_vm11 = vcmp.eq.f32.partialorder %v7317_v30, %v7477_v17 }
 0x250   :  { %v757_v52 = vsel %vm756_vm10, %v752_v14, inf  ;;  %v771_v21 = vsel %vm770_vm11, %v766_v37, inf }
 0x251   :  { %758 = vmin.xlane.f32.xlu0 %v757_v52  ;;  %772 = vmin.xlane.f32.xlu1 %v771_v21 }
 0x252   :  { %v7482_v31 = vpop.xlane.xlu0 %782  ;;  %v7487_v28 = vpop.xlane.xlu1 %796 }
 0x253   :  { %vm784_vm12 = vcmp.eq.f32.partialorder %v7332_v38, %v7482_v31  ;;  %vm798_vm13 = vcmp.eq.f32.partialorder %v7339_v41, %v7487_v28  ;;  %v70_v41 = vld [vmem:[%s9588_s3 + $0x70] sm:$0xff]  ;;  %s6899_s3 = smov 3  }
 0x254   :  { %v785_v42 = vsel %vm784_vm12, %v780_v11, inf  ;;  %v799_v30 = vsel %vm798_vm13, %v794_v60, inf  ;;  %v6562_v10 = vpack.c.bf16 %v71_v13, %v70_v41  ;;  %v691_v11 = vcvt.f32.s32 %v7447_v62 }
 0x255   :  { %786 = vmin.xlane.f32.xlu0 %v785_v42  ;;  %800 = vmin.xlane.f32.xlu1 %v799_v30  ;;  %v705_v42 = vcvt.f32.s32 %v7452_v8  ;;  %v9681_v8 = vmov 1.0  }
 0x256   :  { %v7492_v63 = vpop.xlane.xlu0 %810  ;;  %v7497_v38 = vpop.xlane.xlu1 %824  ;;  %6563 = vmatprep.subr.bf16.mxu0 %v6562_v10 }
 0x257   :  { %vm812_vm14 = vcmp.eq.f32.partialorder %v7354_v1, %v7492_v63  ;;  %vm826_vm15 = vcmp.eq.f32.partialorder %v7361_v16, %v7497_v38  ;;  %6565 = vmatpush3.bf16.msra.mxu0 %v6562_v10  ;;  %v706_v45 = vshll.u32 %v705_v42, 16 }
 0x258   :  { %v813_v9 = vsel %vm812_vm14, %v808_v56, inf  ;;  %v827_v54 = vsel %vm826_vm15, %v822_v57, inf  ;;  %v692_v56 = vshll.u32 %v691_v11, 16 }
 0x259   :  { %814 = vmin.xlane.f32.xlu0 %v813_v9  ;;  %828 = vmin.xlane.f32.xlu1 %v827_v54 }
 0x25a   :  { %v7508_v1 = vpop.xlane.xlu0 %838  ;;  %v7513_v16 = vpop.xlane.xlu1 %852 }
 0x25b   :  { %vm840_vm1 = vcmp.eq.f32.partialorder %v7376_v5, %v7508_v1  ;;  %vm854_vm2 = vcmp.eq.f32.partialorder %v7383_v7, %v7513_v16  ;;  %v677_v7 = vcvt.f32.s32 %v7442_v6  ;;  %v747_v6 = vcvt.f32.s32 %v7467_v2 }
 0x25c   :  { %v841_v14 = vsel %vm840_vm1, %v836_v22, inf  ;;  %v855_v37 = vsel %vm854_vm2, %v850_v26, inf  ;;  %v9682_v22 = vmov 0.0   ;;  %v761_v26 = vcvt.f32.s32 %v7472_v25 }
 0x25d   :  { %842 = vmin.xlane.f32.xlu0 %v841_v14  ;;  %856 = vmin.xlane.f32.xlu1 %v855_v37  ;;  %v678_v60 = vshll.u32 %v677_v7, 16 }
 0x25e   :  { %v7518_v52 = vpop.xlane.xlu0 %866  ;;  %v7522_v5 = vpop.xlane.xlu1 %880 }
 0x25f   :  { %vm868_vm3 = vcmp.eq.f32.partialorder %v7392_v35, %v7518_v52  ;;  %vm882_vm4 = vcmp.eq.f32.partialorder %v7394_v36, %v7522_v5  ;;  %v719_v35 = vcvt.f32.s32 %v7457_v59  ;;  %v733_v36 = vcvt.f32.s32 %v7462_v61 }
 0x260   :  { %v869_v21 = vsel %vm868_vm3, %v864_v4, inf  ;;  %v883_v24 = vsel %vm882_vm4, %v878_v23, inf  ;;  %v748_v23 = vshll.u32 %v747_v6, 16 }
 0x261   :  { %870 = vmin.xlane.f32.xlu0 %v869_v21  ;;  %884 = vmin.xlane.f32.xlu1 %v883_v24  ;;  %v720_v62 = vshll.u32 %v719_v35, 16  ;;  %v734_v61 = vshll.u32 %v733_v36, 16  ;;  %v775_v21 = vcvt.f32.s32 %v7477_v17 }
 0x2d2   :  { %v675_v29 = vpop.xlane.xlu0 %674  ;;  %v689_v30 = vpop.xlane.xlu1 %688 }
 0x2d3   :  { %v676_v33 = vcvt.f32.s32 %v675_v29  ;;  %v690_v39 = vcvt.f32.s32 %v689_v30  ;;  %v762_v29 = vshll.u32 %v761_v26, 16  ;;  %v776_v30 = vshll.u32 %v775_v21, 16 }
 0x2d4   :  { %v845_v26 = vcvt.f32.s32 %v7508_v1 }
 0x2d5   :  { %v679_v57 = vadd.s32 %v678_v60, %v676_v33  ;;  %v693_v41 = vadd.s32 %v692_v56, %v690_v39  ;;  %v789_v60 = vcvt.f32.s32 %v7482_v31  ;;  %v803_v56 = vcvt.f32.s32 %v7487_v28 }
 0x2d6   :  { %v703_v9 = vpop.xlane.xlu0 %702  ;;  %v717_v54 = vpop.xlane.xlu1 %716 }
 0x2d7   :  { %v704_v13 = vcvt.f32.s32 %v703_v9  ;;  %vm890_vm5 = vcmp.eq.s32.totalorder %v7220_v49, %v679_v57  ;;  %vm891_vm6 = vcmp.eq.s32.totalorder %v7220_v49, %v693_v41  ;;  %v718_v12 = vcvt.f32.s32 %v717_v54 }
 0x2d8   :  { %5998 = vmatprep.mubr.msk.f32.mxu0 %vm890_vm5, %v9681_v8  ;;  %v5174_v59 = vsel %vm890_vm5, 1.0, %v9682_v22  ;;  %v5175_v19 = vsel %vm891_vm6, 1.0, %v9682_v22  ;;  %v790_v9 = vshll.u32 %v789_v60, 16  ;;  %v804_v6 = vshll.u32 %v803_v56, 16 }
 0x2d9   :  { %v707_v10 = vadd.s32 %v706_v45, %v704_v13  ;;  %vm986_vm7 = vcmp.gt.f32.partialorder %v5174_v59, 0.0  ;;  %5999 = vmatmul.mubr.msk.f32.vlgmr.msra.gmra.mrb[16].mxu0 %vm891_vm6, %v9681_v8  ;;  %v721_v37 = vadd.s32 %v720_v62, %v718_v12  ;;  %vm987_vm8 = vcmp.gt.f32.partialorder %v5175_v19, 0.0 }
 0x2da   :  { %v731_v14 = vpop.xlane.xlu0 %730  ;;  %v7540_v2 = vsel %vm986_vm7, 1e+30, %v7159_v34  ;;  %v745_v24 = vpop.xlane.xlu1 %744  ;;  %v7546_v25 = vsel %vm987_vm8, 1e+30, %v7163_v44  ;;  %v817_v45 = vcvt.f32.s32 %v7492_v63  ;;  %v831_v54 = vcvt.f32.s32 %v7497_v38 }
 0x2db   :  { %v732_v4 = vcvt.f32.s32 %v731_v14  ;;  %1018 = vmin.xlane.f32.xlu0 %v7540_v2  ;;  %vm892_vm9 = vcmp.eq.s32.totalorder %v7220_v49, %v707_v10  ;;  %v746_v34 = vcvt.f32.s32 %v745_v24  ;;  %1020 = vmin.xlane.f32.xlu1 %v7546_v25  ;;  %vm893_vm10 = vcmp.eq.s32.totalorder %v7220_v49, %v721_v37 }
 0x2dc   :  { %6001 = vmatprep.mubr.msk.f32.mxu0 %vm892_vm9, %v9681_v8  ;;  %v5176_v7 = vsel %vm892_vm9, 1.0, %v9682_v22  ;;  %v5177_v44 = vsel %vm893_vm10, 1.0, %v9682_v22 }
 0x2dd   :  { %v735_v11 = vadd.s32 %v734_v61, %v732_v4  ;;  %vm988_vm11 = vcmp.gt.f32.partialorder %v5176_v7, 0.0  ;;  %6002 = vmatmul.mubr.msk.f32.gmra.mrb[18].mxu0 %vm893_vm10, %v9681_v8  ;;  %v749_v33 = vadd.s32 %v748_v23, %v746_v34  ;;  %vm989_vm12 = vcmp.gt.f32.partialorder %v5177_v44, 0.0 }
 0x2de   :  { %v759_v17 = vpop.xlane.xlu0 %758  ;;  %v7556_v42 = vsel %vm988_vm11, 1e+30, %v7166_v46  ;;  %v773_v39 = vpop.xlane.xlu1 %772  ;;  %v7562_v31 = vsel %vm989_vm12, 1e+30, %v7170_v53  ;;  %v818_v61 = vshll.u32 %v817_v45, 16  ;;  %v832_v4 = vshll.u32 %v831_v54, 16 }
 0x2df   :  { %v760_v35 = vcvt.f32.s32 %v759_v17  ;;  %1022 = vmin.xlane.f32.xlu0 %v7556_v42  ;;  %vm894_vm13 = vcmp.eq.s32.totalorder %v7220_v49, %v735_v11  ;;  %v774_v46 = vcvt.f32.s32 %v773_v39  ;;  %1024 = vmin.xlane.f32.xlu1 %v7562_v31  ;;  %vm895_vm14 = vcmp.eq.s32.totalorder %v7220_v49, %v749_v33 }
 0x2e0   :  { %6004 = vmatprep.mubr.msk.f32.mxu0 %vm894_vm13, %v9681_v8  ;;  %v5178_v57 = vsel %vm894_vm13, 1.0, %v9682_v22  ;;  %v5179_v53 = vsel %vm895_vm14, 1.0, %v9682_v22  ;;  %v859_v23 = vcvt.f32.s32 %v7513_v16  ;;  %v846_v34 = vshll.u32 %v845_v26, 16 }
 0x2e1   :  { %v763_v36 = vadd.s32 %v762_v29, %v760_v35  ;;  %vm990_vm15 = vcmp.gt.f32.partialorder %v5178_v57, 0.0  ;;  %6005 = vmatmul.mubr.msk.f32.gmra.mrb[20].mxu0 %vm895_vm14, %v9681_v8  ;;  %v777_v13 = vadd.s32 %v776_v30, %v774_v46  ;;  %vm991_vm1 = vcmp.gt.f32.partialorder %v5179_v53, 0.0 }
 0x2e2   :  { %v787_v28 = vpop.xlane.xlu0 %786  ;;  %v7572_v41 = vsel %vm990_vm15, 1e+30, %v7174_v58  ;;  %v801_v59 = vpop.xlane.xlu1 %800  ;;  %v7578_v63 = vsel %vm991_vm1, 1e+30, %v7178_v0  ;;  %v873_v11 = vcvt.f32.s32 %v7518_v52  ;;  %v860_v44 = vshll.u32 %v859_v23, 16 }
 0x2e3   :  { %v788_v62 = vcvt.f32.s32 %v787_v28  ;;  %1026 = vmin.xlane.f32.xlu0 %v7572_v41  ;;  %vm896_vm2 = vcmp.eq.s32.totalorder %v7220_v49, %v763_v36  ;;  %v802_v58 = vcvt.f32.s32 %v801_v59  ;;  %1028 = vmin.xlane.f32.xlu1 %v7578_v63  ;;  %vm897_vm3 = vcmp.eq.s32.totalorder %v7220_v49, %v777_v13 }
 0x2e4   :  { %6007 = vmatprep.mubr.msk.f32.mxu0 %vm896_vm2, %v9681_v8  ;;  %v5180_v12 = vsel %vm896_vm2, 1.0, %v9682_v22  ;;  %v5181_v0 = vsel %vm897_vm3, 1.0, %v9682_v22  ;;  %v887_v33 = vcvt.f32.s32 %v7522_v5  ;;  %v874_v39 = vshll.u32 %v873_v11, 16 }
 0x2e5   :  { %v791_v10 = vadd.s32 %v790_v9, %v788_v62  ;;  %vm992_vm4 = vcmp.gt.f32.partialorder %v5180_v12, 0.0  ;;  %6008 = vmatmul.mubr.msk.f32.gmra.mrb[22].mxu0 %vm897_vm3, %v9681_v8  ;;  %v805_v19 = vadd.s32 %v804_v6, %v802_v58  ;;  %vm993_vm5 = vcmp.gt.f32.partialorder %v5181_v0, 0.0 }
 0x2e6   :  { %v815_v38 = vpop.xlane.xlu0 %814  ;;  %v7588_v14 = vsel %vm992_vm4, 1e+30, %v7182_v3  ;;  %v829_v21 = vpop.xlane.xlu1 %828  ;;  %v7594_v1 = vsel %vm993_vm5, 1e+30, %v7186_v15  ;;  %v888_v9 = vshll.u32 %v887_v33, 16 }
 0x2e7   :  { %v816_v37 = vcvt.f32.s32 %v815_v38  ;;  %1030 = vmin.xlane.f32.xlu0 %v7588_v14  ;;  %vm898_vm6 = vcmp.eq.s32.totalorder %v7220_v49, %v791_v10  ;;  %v830_v3 = vcvt.f32.s32 %v829_v21  ;;  %1032 = vmin.xlane.f32.xlu1 %v7594_v1  ;;  %vm899_vm7 = vcmp.eq.s32.totalorder %v7220_v49, %v805_v19 }
 0x2e8   :  { %6010 = vmatprep.mubr.msk.f32.mxu0 %vm898_vm6, %v9681_v8  ;;  %v5182_v24 = vsel %vm898_vm6, 1.0, %v9682_v22  ;;  %v5183_v15 = vsel %vm899_vm7, 1.0, %v9682_v22 }
 0x2e9   :  { %v819_v7 = vadd.s32 %v818_v61, %v816_v37  ;;  %vm994_vm8 = vcmp.gt.f32.partialorder %v5182_v24, 0.0  ;;  %6011 = vmatmul.mubr.msk.f32.gmra.mrb[24].mxu0 %vm899_vm7, %v9681_v8  ;;  %v833_v60 = vadd.s32 %v832_v4, %v830_v3  ;;  %vm995_vm9 = vcmp.gt.f32.partialorder %v5183_v15, 0.0 }
 0x2ea   :  { %v843_v16 = vpop.xlane.xlu0 %842  ;;  %v7604_v29 = vsel %vm994_vm8, 1e+30, %v7190_v20  ;;  %v857_v35 = vpop.xlane.xlu1 %856  ;;  %v7610_v52 = vsel %vm995_vm9, 1e+30, %v7194_v27 }
 0x2eb   :  { %v844_v17 = vcvt.f32.s32 %v843_v16  ;;  %1034 = vmin.xlane.f32.xlu0 %v7604_v29  ;;  %vm900_vm10 = vcmp.eq.s32.totalorder %v7220_v49, %v819_v7  ;;  %v858_v20 = vcvt.f32.s32 %v857_v35  ;;  %1036 = vmin.xlane.f32.xlu1 %v7610_v52  ;;  %vm901_vm11 = vcmp.eq.s32.totalorder %v7220_v49, %v833_v60 }
 0x2ec   :  { %6013 = vmatprep.mubr.msk.f32.mxu0 %vm900_vm10, %v9681_v8  ;;  %v5184_v30 = vsel %vm900_vm10, 1.0, %v9682_v22  ;;  %v5185_v5 = vsel %vm901_vm11, 1.0, %v9682_v22 }
 0x2ed   :  { %v847_v56 = vadd.s32 %v846_v34, %v844_v17  ;;  %vm996_vm12 = vcmp.gt.f32.partialorder %v5184_v30, 0.0  ;;  %6014 = vmatmul.mubr.msk.f32.gmra.mrb[26].mxu0 %vm901_vm11, %v9681_v8  ;;  %v861_v46 = vadd.s32 %v860_v44, %v858_v20  ;;  %vm997_vm13 = vcmp.gt.f32.partialorder %v5185_v5, 0.0 }
 0x2ee   :  { %v871_v57 = vpop.xlane.xlu0 %870  ;;  %v7619_v27 = vsel %vm996_vm12, 1e+30, %v7198_v32  ;;  %v885_v45 = vpop.xlane.xlu1 %884  ;;  %v7624_v28 = vsel %vm997_vm13, 1e+30, %v7203_v40 }
 0x2ef   :  { %v872_v36 = vcvt.f32.s32 %v871_v57  ;;  %1038 = vmin.xlane.f32.xlu0 %v7619_v27  ;;  %vm902_vm14 = vcmp.eq.s32.totalorder %v7220_v49, %v847_v56  ;;  %v886_v13 = vcvt.f32.s32 %v885_v45  ;;  %1040 = vmin.xlane.f32.xlu1 %v7624_v28  ;;  %vm903_vm15 = vcmp.eq.s32.totalorder %v7220_v49, %v861_v46 }
 0x2f0   :  { %6016 = vmatprep.mubr.msk.f32.mxu0 %vm902_vm14, %v9681_v8  ;;  %v5186_v53 = vsel %vm902_vm14, 1.0, %v9682_v22  ;;  %v5187_v32 = vsel %vm903_vm15, 1.0, %v9682_v22 }
 0x2f1   :  { %v875_v62 = vadd.s32 %v874_v39, %v872_v36  ;;  %vm998_vm1 = vcmp.gt.f32.partialorder %v5186_v53, 0.0  ;;  %6017 = vmatmul.mubr.msk.f32.gmra.mrb[28].mxu0 %vm903_vm15, %v9681_v8  ;;  %v889_v40 = vadd.s32 %v888_v9, %v886_v13  ;;  %vm999_vm2 = vcmp.gt.f32.partialorder %v5187_v32, 0.0 }
 0x2f2   :  { %v7633_v6 = vsel %vm998_vm1, 1e+30, %v7206_v43  ;;  %v7638_v54 = vsel %vm999_vm2, 1e+30, %v7209_v47 }
 0x2f3   :  { %1042 = vmin.xlane.f32.xlu0 %v7633_v6  ;;  %vm904_vm3 = vcmp.eq.s32.totalorder %v7220_v49, %v875_v62  ;;  %1044 = vmin.xlane.f32.xlu1 %v7638_v54  ;;  %vm905_vm4 = vcmp.eq.s32.totalorder %v7220_v49, %v889_v40 }
 0x2f4   :  { %6019 = vmatprep.mubr.msk.f32.mxu0 %vm904_vm3, %v9681_v8  ;;  %v5188_v59 = vsel %vm904_vm3, 1.0, %v9682_v22  ;;  %v5189_v43 = vsel %vm905_vm4, 1.0, %v9682_v22 }
 0x2f5   :  { %vm1000_vm5 = vcmp.gt.f32.partialorder %v5188_v59, 0.0  ;;  %6020 = vmatmul.mubr.msk.f32.gmra.mrb[30].mxu0 %vm905_vm4, %v9681_v8  ;;  %vm1001_vm6 = vcmp.gt.f32.partialorder %v5189_v43, 0.0 }
 0x2f6   :  { %v7647_v12 = vsel %vm1000_vm5, 1e+30, %v7212_v48  ;;  %v7651_v47 = vsel %vm1001_vm6, 1e+30, %v7215_v18 }
 0x2f7   :  { %1046 = vmin.xlane.f32.xlu0 %v7647_v12  ;;  %1048 = vmin.xlane.f32.xlu1 %v7651_v47 }
 0x368   :  { %v7654_v58 = vpop.xlane.xlu0 %1018  ;;  %v7658_v10 = vpop.xlane.xlu1 %1020 }
 0x369   :  { %9683 = vst [vmem:[#allocation17_spill] sm:$0xff] %v7654_v58  ;;  %vm1050_vm7 = vcmp.eq.f32.partialorder %v7540_v2, %v7654_v58  ;;  %9684 = vst [vmem:[#allocation18_spill] sm:$0xff] %v7658_v10  ;;  %vm1051_vm8 = vcmp.eq.f32.partialorder %v7546_v25, %v7658_v10 }
 0x36a   :  { %v7661_v61 = vsel %vm1050_vm7, %v7220_v49, 128  ;;  %v7669_v18 = vsel %vm1051_vm8, %v7220_v49, 128 }
 0x36b   :  { %v1083_v48 = vshra.s32 %v7661_v61, 16  ;;  %v1097_v0 = vshra.s32 %v7669_v18, 16 }
 0x36c   :  { %v7666_v26 = vpop.xlane.xlu0 %1022  ;;  %v7673_v38 = vpop.xlane.xlu1 %1024 }
 0x36d   :  { %9685 = vst [vmem:[#allocation19_spill] sm:$0xff] %v7666_v26  ;;  %vm1052_vm9 = vcmp.eq.f32.partialorder %v7556_v42, %v7666_v26  ;;  %9686 = vst [vmem:[#allocation20_spill] sm:$0xff] %v7673_v38  ;;  %v7676_v19 = vcvt.s32.f32 %v1083_v48  ;;  %vm1053_vm10 = vcmp.eq.f32.partialorder %v7562_v31, %v7673_v38  ;;  %v7683_v4 = vcvt.s32.f32 %v1097_v0 }
 0x36e   :  { %v7679_v37 = vsel %vm1052_vm9, %v7220_v49, 128  ;;  %v7689_v21 = vsel %vm1053_vm10, %v7220_v49, 128 }
 0x36f   :  { %1086 = vmin.xlane.f32.xlu0 %v7676_v19  ;;  %v1111_v24 = vshra.s32 %v7679_v37, 16  ;;  %1100 = vmin.xlane.f32.xlu1 %v7683_v4  ;;  %v1125_v7 = vshra.s32 %v7689_v21, 16 }
 0x370   :  { %v7686_v23 = vpop.xlane.xlu0 %1026  ;;  %v7695_v3 = vpop.xlane.xlu1 %1028 }
 0x371   :  { %9687 = vst [vmem:[#allocation21_spill] sm:$0xff] %v7686_v23  ;;  %vm1054_vm11 = vcmp.eq.f32.partialorder %v7572_v41, %v7686_v23  ;;  %9688 = vst [vmem:[#allocation22_spill] sm:$0xff] %v7695_v3  ;;  %v7698_v34 = vcvt.s32.f32 %v1111_v24  ;;  %vm1055_vm12 = vcmp.eq.f32.partialorder %v7578_v63, %v7695_v3  ;;  %v7705_v16 = vcvt.s32.f32 %v1125_v7 }
 0x372   :  { %v7701_v11 = vsel %vm1054_vm11, %v7220_v49, 128  ;;  %v7711_v60 = vsel %vm1055_vm12, %v7220_v49, 128 }
 0x373   :  { %1114 = vmin.xlane.f32.xlu0 %v7698_v34  ;;  %v1139_v17 = vshra.s32 %v7701_v11, 16  ;;  %1128 = vmin.xlane.f32.xlu1 %v7705_v16  ;;  %v1153_v33 = vshra.s32 %v7711_v60, 16 }
 0x374   :  { %v7708_v15 = vpop.xlane.xlu0 %1030  ;;  %v7717_v44 = vpop.xlane.xlu1 %1032 }
 0x375   :  { %9689 = vst [vmem:[#allocation23_spill] sm:$0xff] %v7708_v15  ;;  %vm1056_vm13 = vcmp.eq.f32.partialorder %v7588_v14, %v7708_v15  ;;  %9690 = vst [vmem:[#allocation24_spill] sm:$0xff] %v7717_v44  ;;  %v7720_v35 = vcvt.s32.f32 %v1139_v17  ;;  %vm1057_vm14 = vcmp.eq.f32.partialorder %v7594_v1, %v7717_v44  ;;  %v7727_v20 = vcvt.s32.f32 %v1153_v33 }
 0x376   :  { %v7723_v30 = vsel %vm1056_vm13, %v7220_v49, 128  ;;  %v7733_v39 = vsel %vm1057_vm14, %v7220_v49, 128 }
 0x377   :  { %1142 = vmin.xlane.f32.xlu0 %v7720_v35  ;;  %v1167_v57 = vshra.s32 %v7723_v30, 16  ;;  %1156 = vmin.xlane.f32.xlu1 %v7727_v20  ;;  %v1181_v46 = vshra.s32 %v7733_v39, 16 }
 0x378   :  { %v7730_v56 = vpop.xlane.xlu0 %1034  ;;  %v7739_v5 = vpop.xlane.xlu1 %1036 }
 0x379   :  { %9691 = vst [vmem:[#allocation25_spill] sm:$0xff] %v7730_v56  ;;  %vm1058_vm15 = vcmp.eq.f32.partialorder %v7604_v29, %v7730_v56  ;;  %9692 = vst [vmem:[#allocation26_spill] sm:$0xff] %v7739_v5  ;;  %v7742_v36 = vcvt.s32.f32 %v1167_v57  ;;  %vm1059_vm1 = vcmp.eq.f32.partialorder %v7610_v52, %v7739_v5  ;;  %v7749_v45 = vcvt.s32.f32 %v1181_v46 }
 0x37a   :  { %v7745_v9 = vsel %vm1058_vm15, %v7220_v49, 128  ;;  %v7755_v13 = vsel %vm1059_vm1, %v7220_v49, 128 }
 0x37b   :  { %1170 = vmin.xlane.f32.xlu0 %v7742_v36  ;;  %v1195_v62 = vshra.s32 %v7745_v9, 16  ;;  %1184 = vmin.xlane.f32.xlu1 %v7749_v45  ;;  %v1209_v40 = vshra.s32 %v7755_v13, 16 }
 0x37c   :  { %v7752_v53 = vpop.xlane.xlu0 %1038  ;;  %v7761_v32 = vpop.xlane.xlu1 %1040 }
 0x37d   :  { %9693 = vst [vmem:[#allocation27_spill] sm:$0xff] %v7752_v53  ;;  %vm1060_vm2 = vcmp.eq.f32.partialorder %v7619_v27, %v7752_v53  ;;  %9694 = vst [vmem:[#allocation28_spill] sm:$0xff] %v7761_v32  ;;  %v7764_v59 = vcvt.s32.f32 %v1195_v62  ;;  %vm1061_vm3 = vcmp.eq.f32.partialorder %v7624_v28, %v7761_v32  ;;  %v7771_v48 = vcvt.s32.f32 %v1209_v40 }
 0x37e   :  { %v7767_v43 = vsel %vm1060_vm2, %v7220_v49, 128  ;;  %v7777_v24 = vsel %vm1061_vm3, %v7220_v49, 128 }
 0x37f   :  { %1198 = vmin.xlane.f32.xlu0 %v7764_v59  ;;  %v1223_v7 = vshra.s32 %v7767_v43, 16  ;;  %1212 = vmin.xlane.f32.xlu1 %v7771_v48  ;;  %v1237_v33 = vshra.s32 %v7777_v24, 16 }
 0x380   :  { %v7774_v0 = vpop.xlane.xlu0 %1042  ;;  %v7783_v17 = vpop.xlane.xlu1 %1044 }
 0x381   :  { %9695 = vst [vmem:[#allocation29_spill] sm:$0xff] %v7774_v0  ;;  %vm1062_vm4 = vcmp.eq.f32.partialorder %v7633_v6, %v7774_v0  ;;  %9696 = vst [vmem:[#allocation30_spill] sm:$0xff] %v7783_v17  ;;  %v7786_v57 = vcvt.s32.f32 %v1223_v7  ;;  %vm1063_vm5 = vcmp.eq.f32.partialorder %v7638_v54, %v7783_v17  ;;  %v7793_v62 = vcvt.s32.f32 %v1237_v33 }
 0x382   :  { %v7789_v46 = vsel %vm1062_vm4, %v7220_v49, 128  ;;  %v7799_v0 = vsel %vm1063_vm5, %v7220_v49, 128 }
 0x383   :  { %1226 = vmin.xlane.f32.xlu0 %v7786_v57  ;;  %v1251_v32 = vshra.s32 %v7789_v46, 16  ;;  %1240 = vmin.xlane.f32.xlu1 %v7793_v62  ;;  %v1265_v17 = vshra.s32 %v7799_v0, 16 }
 0x384   :  { %v7796_v40 = vpop.xlane.xlu0 %1046  ;;  %v7805_v7 = vpop.xlane.xlu1 %1048 }
 0x385   :  { %9697 = vst [vmem:[#allocation31_spill] sm:$0xff] %v7796_v40  ;;  %vm1064_vm6 = vcmp.eq.f32.partialorder %v7647_v12, %v7796_v40  ;;  %9698 = vst [vmem:[#allocation32_spill] sm:$0xff] %v7805_v7  ;;  %v7808_v33 = vcvt.s32.f32 %v1251_v32  ;;  %vm1065_vm7 = vcmp.eq.f32.partialorder %v7651_v47, %v7805_v7  ;;  %v7815_v56 = vcvt.s32.f32 %v1265_v17 }
 0x386   :  { %v7811_v53 = vsel %vm1064_vm6, %v7220_v49, 128  ;;  %v7819_v40 = vsel %vm1065_vm7, %v7220_v49, 128 }
 0x387   :  { %1254 = vmin.xlane.f32.xlu0 %v7808_v33  ;;  %v1279_v5 = vshra.s32 %v7811_v53, 16  ;;  %v1293_v15 = vshra.s32 %v7819_v40, 16  ;;  %1268 = vmin.xlane.f32.xlu1 %v7815_v56 }
 0x389   :  { %v7824_v32 = vcvt.s32.f32 %v1279_v5  ;;  %v7826_v44 = vcvt.s32.f32 %v1293_v15 }
 0x38b   :  { %1282 = vmin.xlane.f32.xlu0 %v7824_v32  ;;  %1296 = vmin.xlane.f32.xlu1 %v7826_v44 }
 0x3ac   :  { %v7830_v17 = vpop.f32.mrb[16].mxu0 }
 0x3ad   :  { %9699 = vst [vmem:[#allocation33_spill] sm:$0xff] %v7830_v17  ;;  %v7832_v7 = vpop.f32.mrb[17].mxu0 }
 0x3ae   :  { %9700 = vst [vmem:[#allocation34_spill] sm:$0xff] %v7832_v7 }
 0x3b0   :  { %v7834_v23 = vpop.f32.mrb[18].mxu0 }
 0x3b1   :  { %9701 = vst [vmem:[#allocation35_spill] sm:$0xff] %v7834_v23  ;;  %v7836_v3 = vpop.f32.mrb[19].mxu0 }
 0x3b2   :  { %9702 = vst [vmem:[#allocation36_spill] sm:$0xff] %v7836_v3 }
 0x3b4   :  { %v7838_v26 = vpop.f32.mrb[20].mxu0 }
 0x3b5   :  { %9703 = vst [vmem:[#allocation37_spill] sm:$0xff] %v7838_v26  ;;  %v7840_v38 = vpop.f32.mrb[21].mxu0 }
 0x3b6   :  { %9704 = vst [vmem:[#allocation38_spill] sm:$0xff] %v7840_v38 }
 0x3b8   :  { %v7842_v5 = vpop.f32.mrb[22].mxu0 }
 0x3b9   :  { %9705 = vst [vmem:[#allocation39_spill] sm:$0xff] %v7842_v5  ;;  %v7844_v15 = vpop.f32.mrb[23].mxu0  ;;  %v1082_v5 = vand.u32 65535, %v7661_v61  ;;  %v1138_v61 = vand.u32 65535, %v7701_v11 }
 0x3ba   :  { %9706 = vst [vmem:[#allocation40_spill] sm:$0xff] %v7844_v15  ;;  %v1096_v15 = vand.u32 65535, %v7669_v18 }
 0x3bc   :  { %v7846_v58 = vpop.f32.mrb[24].mxu0 }
 0x3bd   :  { %9707 = vst [vmem:[#allocation41_spill] sm:$0xff] %v7846_v58  ;;  %v7848_v10 = vpop.f32.mrb[25].mxu0  ;;  %v1110_v58 = vand.u32 65535, %v7679_v37 }
 0x3be   :  { %9708 = vst [vmem:[#allocation42_spill] sm:$0xff] %v7848_v10  ;;  %v1084_v10 = vcvt.s32.f32 %v1082_v5 }
 0x3c0   :  { %v7850_v55 = vpop.f32.mrb[26].mxu0 }
 0x3c1   :  { %v7852_v17 = vpop.f32.mrb[27].mxu0 }
 0x3c2   :  { %9709 = vst [vmem:[#allocation43_spill] sm:$0xff] %v7852_v17 }
 0x3c4   :  { %v7854_v7 = vpop.f32.mrb[28].mxu0 }
 0x3c5   :  { %9710 = vst [vmem:[#allocation44_spill] sm:$0xff] %v7854_v7  ;;  %v7856_v23 = vpop.f32.mrb[29].mxu0  ;;  %v1124_v7 = vand.u32 65535, %v7689_v21 }
 0x3c6   :  { %9711 = vst [vmem:[#allocation45_spill] sm:$0xff] %v7856_v23  ;;  %v1098_v23 = vcvt.s32.f32 %v1096_v15 }
 0x3c7   :  { %v1126_v5 = vcvt.s32.f32 %v1124_v7 }
 0x3c8   :  { %v7858_v3 = vpop.f32.mrb[30].mxu0 }
 0x3c9   :  { %9712 = vst [vmem:[#allocation46_spill] sm:$0xff] %v7858_v3  ;;  %v7860_v26 = vpop.f32.mrb[31].mxu0 }
 0x3ca   :  { %9713 = vst [vmem:[#allocation47_spill] sm:$0xff] %v7860_v26  ;;  %v1112_v26 = vcvt.s32.f32 %v1110_v58  ;;  %v1140_v58 = vcvt.s32.f32 %v1138_v61 }
 0x3fc   :  { %v7865_v38 = vpop.xlane.xlu0 %1086  ;;  %v7870_v17 = vpop.xlane.xlu1 %1100 }
 0x3fd   :  { %vm1088_vm8 = vcmp.eq.f32.partialorder %v7676_v19, %v7865_v38  ;;  %vm1102_vm9 = vcmp.eq.f32.partialorder %v7683_v4, %v7870_v17  ;;  %v1152_v19 = vand.u32 65535, %v7711_v60  ;;  %v1166_v4 = vand.u32 65535, %v7723_v30 }
 0x3fe   :  { %v1089_v3 = vsel %vm1088_vm8, %v1084_v10, inf  ;;  %v1103_v18 = vsel %vm1102_vm9, %v1098_v23, inf }
 0x3ff   :  { %1090 = vmin.xlane.f32.xlu0 %v1089_v3  ;;  %1104 = vmin.xlane.f32.xlu1 %v1103_v18  ;;  %v1154_v60 = vcvt.s32.f32 %v1152_v19  ;;  %v1168_v15 = vcvt.s32.f32 %v1166_v4 }
 0x400   :  { %v7875_v37 = vpop.xlane.xlu0 %1114  ;;  %v7880_v21 = vpop.xlane.xlu1 %1128 }
 0x401   :  { %vm1116_vm10 = vcmp.eq.f32.partialorder %v7698_v34, %v7875_v37  ;;  %vm1130_vm11 = vcmp.eq.f32.partialorder %v7705_v16, %v7880_v21  ;;  %v1180_v34 = vand.u32 65535, %v7733_v39  ;;  %v1194_v16 = vand.u32 65535, %v7745_v9 }
 0x402   :  { %v1117_v10 = vsel %vm1116_vm10, %v1112_v26, inf  ;;  %v1131_v23 = vsel %vm1130_vm11, %v1126_v5, inf }
 0x403   :  { %1118 = vmin.xlane.f32.xlu0 %v1117_v10  ;;  %1132 = vmin.xlane.f32.xlu1 %v1131_v23  ;;  %v1182_v61 = vcvt.s32.f32 %v1180_v34  ;;  %v1196_v5 = vcvt.s32.f32 %v1194_v16 }
 0x404   :  { %v7885_v3 = vpop.xlane.xlu0 %1142  ;;  %v7890_v11 = vpop.xlane.xlu1 %1156 }
 0x405   :  { %vm1144_vm12 = vcmp.eq.f32.partialorder %v7720_v35, %v7885_v3  ;;  %vm1158_vm13 = vcmp.eq.f32.partialorder %v7727_v20, %v7890_v11  ;;  %v1208_v35 = vand.u32 65535, %v7755_v13  ;;  %v1222_v20 = vand.u32 65535, %v7767_v43 }
 0x406   :  { %v1145_v26 = vsel %vm1144_vm12, %v1140_v58, inf  ;;  %v1159_v30 = vsel %vm1158_vm13, %v1154_v60, inf }
 0x407   :  { %1146 = vmin.xlane.f32.xlu0 %v1145_v26  ;;  %1160 = vmin.xlane.f32.xlu1 %v1159_v30  ;;  %v1210_v10 = vcvt.s32.f32 %v1208_v35  ;;  %v1224_v58 = vcvt.s32.f32 %v1222_v20  ;;  %v1107_v20 = vcvt.f32.s32 %v7870_v17  ;;  %v1163_v17 = vcvt.f32.s32 %v7890_v11 }
 0x408   :  { %v7895_v7 = vpop.xlane.xlu0 %1170  ;;  %v7900_v39 = vpop.xlane.xlu1 %1184 }
 0x409   :  { %vm1172_vm14 = vcmp.eq.f32.partialorder %v7742_v36, %v7895_v7  ;;  %vm1186_vm15 = vcmp.eq.f32.partialorder %v7749_v45, %v7900_v39  ;;  %v1236_v36 = vand.u32 65535, %v7777_v24  ;;  %v1250_v45 = vand.u32 65535, %v7789_v46 }
 0x40a   :  { %v1173_v18 = vsel %vm1172_vm14, %v1168_v15, inf  ;;  %v1187_v9 = vsel %vm1186_vm15, %v1182_v61, inf }
 0x40b   :  { %1174 = vmin.xlane.f32.xlu0 %v1173_v18  ;;  %1188 = vmin.xlane.f32.xlu1 %v1187_v9  ;;  %v1238_v34 = vcvt.s32.f32 %v1236_v36  ;;  %v1252_v16 = vcvt.s32.f32 %v1250_v45  ;;  %v1121_v36 = vcvt.f32.s32 %v7875_v37  ;;  %v1108_v45 = vshll.u32 %v1107_v20, 16 }
 0x40c   :  { %v7905_v19 = vpop.xlane.xlu0 %1198  ;;  %v7910_v13 = vpop.xlane.xlu1 %1212 }
 0x40d   :  { %vm1200_vm1 = vcmp.eq.f32.partialorder %v7764_v59, %v7905_v19  ;;  %vm1214_vm2 = vcmp.eq.f32.partialorder %v7771_v48, %v7910_v13  ;;  %v1264_v59 = vand.u32 65535, %v7799_v0  ;;  %v1278_v48 = vand.u32 65535, %v7811_v53 }
 0x40e   :  { %v1201_v4 = vsel %vm1200_vm1, %v1196_v5, inf  ;;  %v1215_v43 = vsel %vm1214_vm2, %v1210_v10, inf  ;;  %v1292_v0 = vand.u32 65535, %v7819_v40 }
 0x40f   :  { %1202 = vmin.xlane.f32.xlu0 %v1201_v4  ;;  %1216 = vmin.xlane.f32.xlu1 %v1215_v43  ;;  %v1266_v30 = vcvt.s32.f32 %v1264_v59  ;;  %v1280_v35 = vcvt.s32.f32 %v1278_v48 }
 0x410   :  { %v7915_v23 = vpop.xlane.xlu0 %1226  ;;  %v7920_v24 = vpop.xlane.xlu1 %1240 }
 0x411   :  { %vm1228_vm3 = vcmp.eq.f32.partialorder %v7786_v57, %v7915_v23  ;;  %vm1242_vm4 = vcmp.eq.f32.partialorder %v7793_v62, %v7920_v24 }
 0x412   :  { %v1229_v60 = vsel %vm1228_vm3, %v1224_v58, inf  ;;  %v1243_v46 = vsel %vm1242_vm4, %v1238_v34, inf  ;;  %v1122_v34 = vshll.u32 %v1121_v36, 16 }
 0x413   :  { %1230 = vmin.xlane.f32.xlu0 %v1229_v60  ;;  %1244 = vmin.xlane.f32.xlu1 %v1243_v46 }
 0x414   :  { %v7925_v26 = vpop.xlane.xlu0 %1254  ;;  %v7930_v57 = vpop.xlane.xlu1 %1268 }
 0x415   :  { %vm1256_vm5 = vcmp.eq.f32.partialorder %v7808_v33, %v7925_v26  ;;  %vm1270_vm6 = vcmp.eq.f32.partialorder %v7815_v56, %v7930_v57  ;;  %v1294_v33 = vcvt.s32.f32 %v1292_v0  ;;  %v1093_v56 = vcvt.f32.s32 %v7865_v38 }
 0x416   :  { %v1257_v15 = vsel %vm1256_vm5, %v1252_v16, inf  ;;  %v1271_v62 = vsel %vm1270_vm6, %v1266_v30, inf  ;;  %v1177_v0 = vcvt.f32.s32 %v7895_v7 }
 0x417   :  { %1258 = vmin.xlane.f32.xlu0 %v1257_v15  ;;  %1272 = vmin.xlane.f32.xlu1 %v1271_v62  ;;  %v1094_v5 = vshll.u32 %v1093_v56, 16 }
 0x418   :  { %v7934_v53 = vpop.xlane.xlu0 %1282  ;;  %v7938_v61 = vpop.xlane.xlu1 %1296 }
 0x419   :  { %vm1284_vm7 = vcmp.eq.f32.partialorder %v7824_v32, %v7934_v53  ;;  %vm1298_vm8 = vcmp.eq.f32.partialorder %v7826_v44, %v7938_v61  ;;  %v1135_v32 = vcvt.f32.s32 %v7880_v21  ;;  %v1149_v44 = vcvt.f32.s32 %v7885_v3 }
 0x41a   :  { %v1285_v40 = vsel %vm1284_vm7, %v1280_v35, inf  ;;  %v1299_v18 = vsel %vm1298_vm8, %v1294_v33, inf  ;;  %v1164_v33 = vshll.u32 %v1163_v17, 16 }
 0x41b   :  { %1286 = vmin.xlane.f32.xlu0 %v1285_v40  ;;  %1300 = vmin.xlane.f32.xlu1 %v1299_v18  ;;  %v1136_v38 = vshll.u32 %v1135_v32, 16  ;;  %v1150_v3 = vshll.u32 %v1149_v44, 16  ;;  %v1191_v40 = vcvt.f32.s32 %v7900_v39 }
 0x48c   :  { %v1091_v9 = vpop.xlane.xlu0 %1090  ;;  %v1105_v4 = vpop.xlane.xlu1 %1104 }
 0x48d   :  { %v1092_v10 = vcvt.f32.s32 %v1091_v9  ;;  %v1106_v43 = vcvt.f32.s32 %v1105_v4  ;;  %v1178_v9 = vshll.u32 %v1177_v0, 16  ;;  %v1192_v4 = vshll.u32 %v1191_v40, 16 }
 0x48e   :  { %v1261_v0 = vcvt.f32.s32 %v7925_v26 }
 0x48f   :  { %v1095_v58 = vadd.s32 %v1094_v5, %v1092_v10  ;;  %v1109_v60 = vadd.s32 %v1108_v45, %v1106_v43  ;;  %v1205_v5 = vcvt.f32.s32 %v7905_v19  ;;  %v1219_v45 = vcvt.f32.s32 %v7910_v13 }
 0x490   :  { %v1119_v59 = vpop.xlane.xlu0 %1118  ;;  %v1133_v46 = vpop.xlane.xlu1 %1132 }
 0x491   :  { %v1120_v48 = vcvt.f32.s32 %v1119_v59  ;;  %vm1306_vm9 = vcmp.eq.s32.totalorder %v7220_v49, %v1095_v58  ;;  %v1134_v21 = vcvt.f32.s32 %v1133_v46  ;;  %vm1307_vm10 = vcmp.eq.s32.totalorder %v7220_v49, %v1109_v60 }
 0x492   :  { %6022 = vmatprep.mubr.msk.f32.mxu0 %vm1306_vm9, %v9681_v8  ;;  %v5190_v37 = vsel %vm1306_vm9, 1.0, %v9682_v22  ;;  %v5191_v15 = vsel %vm1307_vm10, 1.0, %v9682_v22  ;;  %v1206_v59 = vshll.u32 %v1205_v5, 16  ;;  %v1220_v17 = vshll.u32 %v1219_v45, 16 }
 0x493   :  { %v1123_v16 = vadd.s32 %v1122_v34, %v1120_v48  ;;  %vm1402_vm11 = vcmp.gt.f32.partialorder %v5190_v37, 0.0  ;;  %6023 = vmatmul.mubr.msk.f32.gmra.mrb[32].mxu0 %vm1307_vm10, %v9681_v8  ;;  %v1137_v62 = vadd.s32 %v1136_v38, %v1134_v21  ;;  %vm1403_vm12 = vcmp.gt.f32.partialorder %v5191_v15, 0.0 }
 0x494   :  { %v1147_v30 = vpop.xlane.xlu0 %1146  ;;  %v7956_v11 = vsel %vm1402_vm11, 1e+30, %v7540_v2  ;;  %v1161_v18 = vpop.xlane.xlu1 %1160  ;;  %v7962_v7 = vsel %vm1403_vm12, 1e+30, %v7546_v25  ;;  %v1233_v34 = vcvt.f32.s32 %v7915_v23  ;;  %v1247_v46 = vcvt.f32.s32 %v7920_v24 }
 0x495   :  { %v1148_v35 = vcvt.f32.s32 %v1147_v30  ;;  %1434 = vmin.xlane.f32.xlu0 %v7956_v11  ;;  %vm1308_vm13 = vcmp.eq.s32.totalorder %v7220_v49, %v1123_v16  ;;  %v1162_v2 = vcvt.f32.s32 %v1161_v18  ;;  %1436 = vmin.xlane.f32.xlu1 %v7962_v7  ;;  %vm1309_vm14 = vcmp.eq.s32.totalorder %v7220_v49, %v1137_v62 }
 0x496   :  { %6025 = vmatprep.mubr.msk.f32.mxu0 %vm1308_vm13, %v9681_v8  ;;  %v5192_v56 = vsel %vm1308_vm13, 1.0, %v9682_v22  ;;  %v5193_v25 = vsel %vm1309_vm14, 1.0, %v9682_v22 }
 0x497   :  { %v1151_v20 = vadd.s32 %v1150_v3, %v1148_v35  ;;  %vm1404_vm15 = vcmp.gt.f32.partialorder %v5192_v56, 0.0  ;;  %6026 = vmatmul.mubr.msk.f32.gmra.mrb[34].mxu0 %vm1309_vm14, %v9681_v8  ;;  %v1165_v10 = vadd.s32 %v1164_v33, %v1162_v2  ;;  %vm1405_vm1 = vcmp.gt.f32.partialorder %v5193_v25, 0.0 }
 0x498   :  { %v1175_v39 = vpop.xlane.xlu0 %1174  ;;  %v7972_v36 = vsel %vm1404_vm15, 1e+30, %v7556_v42  ;;  %v1189_v43 = vpop.xlane.xlu1 %1188  ;;  %v7978_v19 = vsel %vm1405_vm1, 1e+30, %v7562_v31  ;;  %v1234_v3 = vshll.u32 %v1233_v34, 16  ;;  %v1248_v35 = vshll.u32 %v1247_v46, 16 }
 0x499   :  { %v1176_v32 = vcvt.f32.s32 %v1175_v39  ;;  %1438 = vmin.xlane.f32.xlu0 %v7972_v36  ;;  %vm1310_vm2 = vcmp.eq.s32.totalorder %v7220_v49, %v1151_v20  ;;  %v1190_v42 = vcvt.f32.s32 %v1189_v43  ;;  %1440 = vmin.xlane.f32.xlu1 %v7978_v19  ;;  %vm1311_vm3 = vcmp.eq.s32.totalorder %v7220_v49, %v1165_v10 }
 0x49a   :  { %6028 = vmatprep.mubr.msk.f32.mxu0 %vm1310_vm2, %v9681_v8  ;;  %v5194_v58 = vsel %vm1310_vm2, 1.0, %v9682_v22  ;;  %v5195_v31 = vsel %vm1311_vm3, 1.0, %v9682_v22  ;;  %v1275_v33 = vcvt.f32.s32 %v7930_v57  ;;  %v1262_v2 = vshll.u32 %v1261_v0, 16 }
 0x49b   :  { %v1179_v44 = vadd.s32 %v1178_v9, %v1176_v32  ;;  %vm1406_vm4 = vcmp.gt.f32.partialorder %v5194_v58, 0.0  ;;  %6029 = vmatmul.mubr.msk.f32.gmra.mrb[36].mxu0 %vm1311_vm3, %v9681_v8  ;;  %v1193_v48 = vadd.s32 %v1192_v4, %v1190_v42  ;;  %vm1407_vm5 = vcmp.gt.f32.partialorder %v5195_v31, 0.0 }
 0x49c   :  { %v1203_v13 = vpop.xlane.xlu0 %1202  ;;  %v7988_v60 = vsel %vm1406_vm4, 1e+30, %v7572_v41  ;;  %v1217_v37 = vpop.xlane.xlu1 %1216  ;;  %v7994_v23 = vsel %vm1407_vm5, 1e+30, %v7578_v63  ;;  %v1289_v20 = vcvt.f32.s32 %v7934_v53  ;;  %v1276_v25 = vshll.u32 %v1275_v33, 16 }
 0x49d   :  { %v1204_v38 = vcvt.f32.s32 %v1203_v13  ;;  %1442 = vmin.xlane.f32.xlu0 %v7988_v60  ;;  %vm1312_vm6 = vcmp.eq.s32.totalorder %v7220_v49, %v1179_v44  ;;  %v1218_v41 = vcvt.f32.s32 %v1217_v37  ;;  %1444 = vmin.xlane.f32.xlu1 %v7994_v23  ;;  %vm1313_vm7 = vcmp.eq.s32.totalorder %v7220_v49, %v1193_v48 }
 0x49e   :  { %6031 = vmatprep.mubr.msk.f32.mxu0 %vm1312_vm6, %v9681_v8  ;;  %v5196_v21 = vsel %vm1312_vm6, 1.0, %v9682_v22  ;;  %v5197_v63 = vsel %vm1313_vm7, 1.0, %v9682_v22  ;;  %v1303_v10 = vcvt.f32.s32 %v7938_v61  ;;  %v1290_v43 = vshll.u32 %v1289_v20, 16 }
 0x49f   :  { %v1207_v16 = vadd.s32 %v1206_v59, %v1204_v38  ;;  %vm1408_vm8 = vcmp.gt.f32.partialorder %v5196_v21, 0.0  ;;  %6032 = vmatmul.mubr.msk.f32.gmra.mrb[38].mxu0 %vm1313_vm7, %v9681_v8  ;;  %v1221_v15 = vadd.s32 %v1220_v17, %v1218_v41  ;;  %vm1409_vm9 = vcmp.gt.f32.partialorder %v5197_v63, 0.0 }
 0x4a0   :  { %v1231_v24 = vpop.xlane.xlu0 %1230  ;;  %v8004_v30 = vsel %vm1408_vm8, 1e+30, %v7588_v14  ;;  %v1245_v40 = vpop.xlane.xlu1 %1244  ;;  %v8010_v26 = vsel %vm1409_vm9, 1e+30, %v7594_v1  ;;  %v1304_v59 = vshll.u32 %v1303_v10, 16 }
 0x4a1   :  { %v1232_v62 = vcvt.f32.s32 %v1231_v24  ;;  %1446 = vmin.xlane.f32.xlu0 %v8004_v30  ;;  %vm1314_vm10 = vcmp.eq.s32.totalorder %v7220_v49, %v1207_v16  ;;  %v1246_v14 = vcvt.f32.s32 %v1245_v40  ;;  %1448 = vmin.xlane.f32.xlu1 %v8010_v26  ;;  %vm1315_vm11 = vcmp.eq.s32.totalorder %v7220_v49, %v1221_v15 }
 0x4a2   :  { %6034 = vmatprep.mubr.msk.f32.mxu0 %vm1314_vm10, %v9681_v8  ;;  %v5198_v18 = vsel %vm1314_vm10, 1.0, %v9682_v22  ;;  %v5199_v1 = vsel %vm1315_vm11, 1.0, %v9682_v22 }
 0x4a3   :  { %v1235_v56 = vadd.s32 %v1234_v3, %v1232_v62  ;;  %vm1410_vm12 = vcmp.gt.f32.partialorder %v5198_v18, 0.0  ;;  %6035 = vmatmul.mubr.msk.f32.gmra.mrb[40].mxu0 %vm1315_vm11, %v9681_v8  ;;  %v1249_v5 = vadd.s32 %v1248_v35, %v1246_v14  ;;  %vm1411_vm13 = vcmp.gt.f32.partialorder %v5199_v1, 0.0 }
 0x4a4   :  { %v1259_v57 = vpop.xlane.xlu0 %1258  ;;  %v8020_v9 = vsel %vm1410_vm12, 1e+30, %v7604_v29  ;;  %v1273_v32 = vpop.xlane.xlu1 %1272  ;;  %v8026_v53 = vsel %vm1411_vm13, 1e+30, %v7610_v52 }
 0x4a5   :  { %v1260_v39 = vcvt.f32.s32 %v1259_v57  ;;  %1450 = vmin.xlane.f32.xlu0 %v8020_v9  ;;  %vm1316_vm14 = vcmp.eq.s32.totalorder %v7220_v49, %v1235_v56  ;;  %v1274_v29 = vcvt.f32.s32 %v1273_v32  ;;  %1452 = vmin.xlane.f32.xlu1 %v8026_v53  ;;  %vm1317_vm15 = vcmp.eq.s32.totalorder %v7220_v49, %v1249_v5 }
 0x4a6   :  { %6037 = vmatprep.mubr.msk.f32.mxu0 %vm1316_vm14, %v9681_v8  ;;  %v5200_v4 = vsel %vm1316_vm14, 1.0, %v9682_v22  ;;  %v5201_v61 = vsel %vm1317_vm15, 1.0, %v9682_v22 }
 0x4a7   :  { %v1263_v45 = vadd.s32 %v1262_v2, %v1260_v39  ;;  %vm1412_vm1 = vcmp.gt.f32.partialorder %v5200_v4, 0.0  ;;  %6038 = vmatmul.mubr.msk.f32.gmra.mrb[42].mxu0 %vm1317_vm15, %v9681_v8  ;;  %v1277_v42 = vadd.s32 %v1276_v25, %v1274_v29  ;;  %vm1413_vm2 = vcmp.gt.f32.partialorder %v5201_v61, 0.0 }
 0x4a8   :  { %v1287_v58 = vpop.xlane.xlu0 %1286  ;;  %v8035_v52 = vsel %vm1412_vm1, 1e+30, %v7619_v27  ;;  %v1301_v34 = vpop.xlane.xlu1 %1300  ;;  %v8040_v13 = vsel %vm1413_vm2, 1e+30, %v7624_v28 }
 0x4a9   :  { %v1288_v44 = vcvt.f32.s32 %v1287_v58  ;;  %1454 = vmin.xlane.f32.xlu0 %v8035_v52  ;;  %vm1318_vm3 = vcmp.eq.s32.totalorder %v7220_v49, %v1263_v45  ;;  %v1302_v48 = vcvt.f32.s32 %v1301_v34  ;;  %1456 = vmin.xlane.f32.xlu1 %v8040_v13  ;;  %vm1319_vm4 = vcmp.eq.s32.totalorder %v7220_v49, %v1277_v42 }
 0x4aa   :  { %6040 = vmatprep.mubr.msk.f32.mxu0 %vm1318_vm3, %v9681_v8  ;;  %v5202_v31 = vsel %vm1318_vm3, 1.0, %v9682_v22  ;;  %v5203_v27 = vsel %vm1319_vm4, 1.0, %v9682_v22 }
 0x4ab   :  { %v1291_v38 = vadd.s32 %v1290_v43, %v1288_v44  ;;  %vm1414_vm5 = vcmp.gt.f32.partialorder %v5202_v31, 0.0  ;;  %6041 = vmatmul.mubr.msk.f32.gmra.mrb[44].mxu0 %vm1319_vm4, %v9681_v8  ;;  %v1305_v28 = vadd.s32 %v1304_v59, %v1302_v48  ;;  %vm1415_vm6 = vcmp.gt.f32.partialorder %v5203_v27, 0.0 }
 0x4ac   :  { %v8049_v17 = vsel %vm1414_vm5, 1e+30, %v7633_v6  ;;  %v8054_v46 = vsel %vm1415_vm6, 1e+30, %v7638_v54 }
 0x4ad   :  { %1458 = vmin.xlane.f32.xlu0 %v8049_v17  ;;  %vm1320_vm7 = vcmp.eq.s32.totalorder %v7220_v49, %v1291_v38  ;;  %1460 = vmin.xlane.f32.xlu1 %v8054_v46  ;;  %vm1321_vm8 = vcmp.eq.s32.totalorder %v7220_v49, %v1305_v28 }
 0x4ae   :  { %6043 = vmatprep.mubr.msk.f32.mxu0 %vm1320_vm7, %v9681_v8  ;;  %v5204_v37 = vsel %vm1320_vm7, 1.0, %v9682_v22  ;;  %v5205_v6 = vsel %vm1321_vm8, 1.0, %v9682_v22 }
 0x4af   :  { %vm1416_vm9 = vcmp.gt.f32.partialorder %v5204_v37, 0.0  ;;  %6044 = vmatmul.mubr.msk.f32.gmra.mrb[46].mxu0 %vm1321_vm8, %v9681_v8  ;;  %vm1417_vm10 = vcmp.gt.f32.partialorder %v5205_v6, 0.0 }
 0x4b0   :  { %v8063_v21 = vsel %vm1416_vm9, 1e+30, %v7647_v12  ;;  %v8067_v54 = vsel %vm1417_vm10, 1e+30, %v7651_v47 }
 0x4b1   :  { %1462 = vmin.xlane.f32.xlu0 %v8063_v21  ;;  %1464 = vmin.xlane.f32.xlu1 %v8067_v54 }
 0x522   :  { %v8070_v41 = vpop.xlane.xlu0 %1434  ;;  %v8074_v16 = vpop.xlane.xlu1 %1436 }
 0x523   :  { %9714 = vst [vmem:[#allocation48_spill] sm:$0xff] %v8070_v41  ;;  %vm1466_vm11 = vcmp.eq.f32.partialorder %v7956_v11, %v8070_v41  ;;  %9715 = vst [vmem:[#allocation49_spill] sm:$0xff] %v8074_v16  ;;  %vm1467_vm12 = vcmp.eq.f32.partialorder %v7962_v7, %v8074_v16  ;;  %v9754_v41 = vld [vmem:[#allocation33_spill] sm:$0xff] }
 0x524   :  { %v8077_v3 = vsel %vm1466_vm11, %v7220_v49, 128  ;;  %v8083_v47 = vsel %vm1467_vm12, %v7220_v49, 128 }
 0x525   :  { %v1499_v12 = vshra.s32 %v8077_v3, 16  ;;  %v1513_v24 = vshra.s32 %v8083_v47, 16 }
 0x526   :  { %v8085_v0 = vpop.xlane.xlu0 %1438  ;;  %v8090_v11 = vpop.xlane.xlu1 %1440 }
 0x527   :  { %9716 = vst [vmem:[#allocation50_spill] sm:$0xff] %v8085_v0  ;;  %vm1468_vm13 = vcmp.eq.f32.partialorder %v7972_v36, %v8085_v0  ;;  %9717 = vst [vmem:[#allocation51_spill] sm:$0xff] %v8090_v11  ;;  %v8095_v15 = vcvt.s32.f32 %v1499_v12  ;;  %vm1469_vm14 = vcmp.eq.f32.partialorder %v7978_v19, %v8090_v11  ;;  %v8103_v35 = vcvt.s32.f32 %v1513_v24 }
 0x528   :  { %v8093_v63 = vsel %vm1468_vm13, %v7220_v49, 128  ;;  %v8100_v7 = vsel %vm1469_vm14, %v7220_v49, 128 }
 0x529   :  { %v1527_v62 = vshra.s32 %v8093_v63, 16  ;;  %1502 = vmin.xlane.f32.xlu0 %v8095_v15  ;;  %v1541_v33 = vshra.s32 %v8100_v7, 16  ;;  %1516 = vmin.xlane.f32.xlu1 %v8103_v35 }
 0x52a   :  { %v8106_v36 = vpop.xlane.xlu0 %1442  ;;  %v8112_v40 = vpop.xlane.xlu1 %1444 }
 0x52b   :  { %9718 = vst [vmem:[#allocation52_spill] sm:$0xff] %v8106_v36  ;;  %vm1470_vm15 = vcmp.eq.f32.partialorder %v7988_v60, %v8106_v36  ;;  %9719 = vst [vmem:[#allocation53_spill] sm:$0xff] %v8112_v40  ;;  %v8117_v18 = vcvt.s32.f32 %v1527_v62  ;;  %vm1471_vm1 = vcmp.eq.f32.partialorder %v7994_v23, %v8112_v40  ;;  %v8125_v2 = vcvt.s32.f32 %v1541_v33 }
 0x52c   :  { %v8115_v19 = vsel %vm1470_vm15, %v7220_v49, 128  ;;  %v8122_v14 = vsel %vm1471_vm1, %v7220_v49, 128 }
 0x52d   :  { %v1555_v56 = vshra.s32 %v8115_v19, 16  ;;  %1530 = vmin.xlane.f32.xlu0 %v8117_v18  ;;  %v1569_v20 = vshra.s32 %v8122_v14, 16  ;;  %1544 = vmin.xlane.f32.xlu1 %v8125_v2 }
 0x52e   :  { %v8128_v60 = vpop.xlane.xlu0 %1446  ;;  %v8134_v57 = vpop.xlane.xlu1 %1448 }
 0x52f   :  { %9720 = vst [vmem:[#allocation54_spill] sm:$0xff] %v8128_v60  ;;  %vm1472_vm2 = vcmp.eq.f32.partialorder %v8004_v30, %v8128_v60  ;;  %9721 = vst [vmem:[#allocation55_spill] sm:$0xff] %v8134_v57  ;;  %v8139_v1 = vcvt.s32.f32 %v1555_v56  ;;  %vm1473_vm3 = vcmp.eq.f32.partialorder %v8010_v26, %v8134_v57  ;;  %v8147_v25 = vcvt.s32.f32 %v1569_v20  ;;  %v9737_v60 = vld [vmem:[#allocation8_spill] sm:$0xff] }
 0x530   :  { %v8137_v23 = vsel %vm1472_vm2, %v7220_v49, 128  ;;  %v8144_v5 = vsel %vm1473_vm3, %v7220_v49, 128 }
 0x531   :  { %v1583_v39 = vshra.s32 %v8137_v23, 16  ;;  %1558 = vmin.xlane.f32.xlu0 %v8139_v1  ;;  %v1597_v10 = vshra.s32 %v8144_v5, 16  ;;  %1572 = vmin.xlane.f32.xlu1 %v8147_v25 }
 0x532   :  { %v8150_v30 = vpop.xlane.xlu0 %1450  ;;  %v8156_v32 = vpop.xlane.xlu1 %1452 }
 0x533   :  { %9722 = vst [vmem:[#allocation56_spill] sm:$0xff] %v8150_v30  ;;  %vm1474_vm4 = vcmp.eq.f32.partialorder %v8020_v9, %v8150_v30  ;;  %9723 = vst [vmem:[#allocation57_spill] sm:$0xff] %v8156_v32  ;;  %v8161_v4 = vcvt.s32.f32 %v1583_v39  ;;  %vm1475_vm5 = vcmp.eq.f32.partialorder %v8026_v53, %v8156_v32  ;;  %v8169_v43 = vcvt.s32.f32 %v1597_v10  ;;  %v9736_v30 = vld [vmem:[#allocation17_spill] sm:$0xff] }
 0x534   :  { %v8159_v26 = vsel %vm1474_vm4, %v7220_v49, 128  ;;  %v8166_v29 = vsel %vm1475_vm5, %v7220_v49, 128  ;;  %v939_v10 = vmul.f32 -10.0, %v7226_v51  ;;  %v1354_v51 = vmul.f32 -10.0, %v9736_v30 }
 0x535   :  { %v1611_v45 = vshra.s32 %v8159_v26, 16  ;;  %1586 = vmin.xlane.f32.xlu0 %v8161_v4  ;;  %v1625_v58 = vshra.s32 %v8166_v29, 16  ;;  %1600 = vmin.xlane.f32.xlu1 %v8169_v43 }
 0x536   :  { %v8172_v9 = vpop.xlane.xlu0 %1454  ;;  %v8178_v61 = vpop.xlane.xlu1 %1456 }
 0x537   :  { %9724 = vst [vmem:[#allocation58_spill] sm:$0xff] %v8172_v9  ;;  %vm1476_vm6 = vcmp.eq.f32.partialorder %v8035_v52, %v8172_v9  ;;  %9725 = vst [vmem:[#allocation59_spill] sm:$0xff] %v8178_v61  ;;  %v8183_v42 = vcvt.s32.f32 %v1611_v45  ;;  %vm1477_vm7 = vcmp.eq.f32.partialorder %v8040_v13, %v8178_v61  ;;  %v8191_v34 = vcvt.s32.f32 %v1625_v58  ;;  %v9730_v45 = vld [vmem:[#allocation3_spill] sm:$0xff]  ;;  %v9735_v9 = vld [vmem:[#allocation18_spill] sm:$0xff] }
 0x538   :  { %v8181_v53 = vsel %vm1476_vm6, %v7220_v49, 128  ;;  %v8188_v44 = vsel %vm1477_vm7, %v7220_v49, 128  ;;  %v940_v58 = vmul.f32 -10.0, %v9730_v45  ;;  %v1355_v32 = vmul.f32 -10.0, %v9735_v9 }
 0x539   :  { %v1639_v59 = vshra.s32 %v8181_v53, 16  ;;  %1614 = vmin.xlane.f32.xlu0 %v8183_v42  ;;  %v1653_v31 = vshra.s32 %v8188_v44, 16  ;;  %1628 = vmin.xlane.f32.xlu1 %v8191_v34 }
 0x53a   :  { %v8194_v52 = vpop.xlane.xlu0 %1458  ;;  %v8200_v48 = vpop.xlane.xlu1 %1460 }
 0x53b   :  { %9726 = vst [vmem:[#allocation60_spill] sm:$0xff] %v8194_v52  ;;  %vm1478_vm8 = vcmp.eq.f32.partialorder %v8049_v17, %v8194_v52  ;;  %9727 = vst [vmem:[#allocation61_spill] sm:$0xff] %v8200_v48  ;;  %v8205_v38 = vcvt.s32.f32 %v1639_v59  ;;  %vm1479_vm9 = vcmp.eq.f32.partialorder %v8054_v46, %v8200_v48  ;;  %v8213_v37 = vcvt.s32.f32 %v1653_v31  ;;  %v9731_v59 = vld [vmem:[#allocation4_spill] sm:$0xff]  ;;  %v9734_v52 = vld [vmem:[#allocation7_spill] sm:$0xff] }
 0x53c   :  { %v8203_v13 = vsel %vm1478_vm8, %v7220_v49, 128  ;;  %v8210_v27 = vsel %vm1479_vm9, %v7220_v49, 128  ;;  %v941_v31 = vmul.f32 -10.0, %v9731_v59  ;;  %v944_v48 = vmul.f32 -10.0, %v9734_v52 }
 0x53d   :  { %v1667_v28 = vshra.s32 %v8203_v13, 16  ;;  %1642 = vmin.xlane.f32.xlu0 %v8205_v38  ;;  %v1681_v6 = vshra.s32 %v8210_v27, 16  ;;  %1656 = vmin.xlane.f32.xlu1 %v8213_v37  ;;  %v945_v59 = vmul.f32 -10.0, %v9737_v60  ;;  %v1370_v52 = vmul.f32 1.442695, %v1354_v51  ;;  %v9745_v51 = vld [vmem:[#allocation12_spill] sm:$0xff] }
 0x53e   :  { %v8216_v17 = vpop.xlane.xlu0 %1462  ;;  %v8222_v12 = vpop.xlane.xlu1 %1464  ;;  %v960_v61 = vmul.f32 1.442695, %v941_v31  ;;  %v9740_v31 = vld [vmem:[#allocation19_spill] sm:$0xff] }
 0x53f   :  { %9728 = vst [vmem:[#allocation62_spill] sm:$0xff] %v8216_v17  ;;  %vm1480_vm10 = vcmp.eq.f32.partialorder %v8063_v21, %v8216_v17  ;;  %9729 = vst [vmem:[#allocation63_spill] sm:$0xff] %v8222_v12  ;;  %v8227_v24 = vcvt.s32.f32 %v1667_v28  ;;  %vm1481_vm11 = vcmp.eq.f32.partialorder %v8067_v54, %v8222_v12  ;;  %v8235_v56 = vcvt.s32.f32 %v1681_v6  ;;  %v9732_v6 = vld [vmem:[#allocation5_spill] sm:$0xff] }
 0x540   :  { %v8225_v46 = vsel %vm1480_vm10, %v7220_v49, 128  ;;  %v8232_v62 = vsel %vm1481_vm11, %v7220_v49, 128  ;;  %v938_v54 = vmul.f32 -10.0, %v7222_v50  ;;  %v942_v22 = vmul.f32 -10.0, %v9732_v6  ;;  %v9738_v6 = vld [vmem:[#allocation9_spill] sm:$0xff] }
 0x541   :  { %v1695_v33 = vshra.s32 %v8225_v46, 16  ;;  %1670 = vmin.xlane.f32.xlu0 %v8227_v24  ;;  %v1709_v21 = vshra.s32 %v8232_v62, 16  ;;  %1684 = vmin.xlane.f32.xlu1 %v8235_v56  ;;  %v956_v17 = vmul.f32 1.442695, %v939_v10  ;;  %v946_v10 = vmul.f32 -10.0, %v9738_v6 }
 0x542   :  { %v954_v28 = vmul.f32 1.442695, %v938_v54  ;;  %v962_v50 = vmul.f32 1.442695, %v942_v22  ;;  %v966_v54 = vmul.f32 1.442695, %v944_v48 }
 0x543   :  { %v8240_v20 = vcvt.s32.f32 %v1695_v33  ;;  %v8242_v39 = vcvt.s32.f32 %v1709_v21  ;;  %v9733_v33 = vld [vmem:[#allocation6_spill] sm:$0xff]  ;;  %v958_v21 = vmul.f32 1.442695, %v940_v58  ;;  %v9739_v58 = vld [vmem:[#allocation20_spill] sm:$0xff]  ;;  %v1356_v9 = vmul.f32 -10.0, %v9740_v31 }
 0x544   :  { %v943_v12 = vmul.f32 -10.0, %v9733_v33  ;;  %6799 = vpow2.f32 %v954_v28  ;;  %v1372_v33 = vmul.f32 1.442695, %v1355_v32  ;;  %v1357_v57 = vmul.f32 -10.0, %v9739_v58  ;;  %v9741_v28 = vld [vmem:[#allocation10_spill] sm:$0xff] }
 0x545   :  { %1698 = vmin.xlane.f32.xlu0 %v8240_v20  ;;  %1712 = vmin.xlane.f32.xlu1 %v8242_v39  ;;  %6801 = vpow2.f32 %v956_v17  ;;  %v968_v22 = vmul.f32 1.442695, %v945_v59  ;;  %v947_v30 = vmul.f32 -10.0, %v9741_v28  ;;  %v970_v17 = vmul.f32 1.442695, %v946_v10  ;;  %v9746_v10 = vld [vmem:[#allocation24_spill] sm:$0xff] }
 0x546   :  { %v964_v45 = vmul.f32 1.442695, %v943_v12  ;;  %6803 = vpow2.f32 %v958_v21  ;;  %v9742_v12 = vld [vmem:[#allocation11_spill] sm:$0xff]  ;;  %v1376_v48 = vmul.f32 1.442695, %v1357_v57  ;;  %v9743_v21 = vld [vmem:[#allocation22_spill] sm:$0xff] }
 0x547   :  { %6805 = vpow2.f32 %v960_v61  ;;  %v948_v60 = vmul.f32 -10.0, %v9742_v12  ;;  %v1359_v6 = vmul.f32 -10.0, %v9743_v21  ;;  %v1374_v32 = vmul.f32 1.442695, %v1356_v9  ;;  %v9744_v61 = vld [vmem:[#allocation21_spill] sm:$0xff]  ;;  %v9747_v21 = vld [vmem:[#allocation23_spill] sm:$0xff] }
 0x548   :  { %6807 = vpow2.f32 %v962_v50  ;;  %v1358_v58 = vmul.f32 -10.0, %v9744_v61  ;;  %v972_v50 = vmul.f32 1.442695, %v947_v30  ;;  %v949_v31 = vmul.f32 -10.0, %v9745_v51 }
 0x549   :  { %6809 = vpow2.f32 %v964_v45  ;;  %v974_v59 = vmul.f32 1.442695, %v948_v60  ;;  %v1361_v12 = vmul.f32 -10.0, %v9746_v10  ;;  %v9748_v60 = vld [vmem:[#allocation26_spill] sm:$0xff]  ;;  %v9749_v10 = vld [vmem:[#allocation25_spill] sm:$0xff] }
 0x54a   :  { %6811 = vpow2.f32 %v966_v54  ;;  %v1380_v54 = vmul.f32 1.442695, %v1359_v6  ;;  %v1378_v57 = vmul.f32 1.442695, %v1358_v58  ;;  %v976_v61 = vmul.f32 1.442695, %v949_v31 }
 0x54b   :  { %6813 = vpow2.f32 %v1372_v33  ;;  %v1363_v51 = vmul.f32 -10.0, %v9748_v60 }
 0x54c   :  { %6815 = vpow2.f32 %v1370_v52  ;;  %v1360_v52 = vmul.f32 -10.0, %v9747_v21  ;;  %v9750_v21 = vld [vmem:[#allocation13_spill] sm:$0xff] }
 0x54d   :  { %6817 = vpow2.f32 %v968_v22  ;;  %v950_v36 = vmul.f32 -10.0, %v9750_v21 }
 0x54e   :  { %v6800_v45 = vpop.eup %6799  ;;  %6819 = vpow2.f32 %v970_v17  ;;  %v1384_v17 = vmul.f32 1.442695, %v1361_v12  ;;  %v1382_v6 = vmul.f32 1.442695, %v1360_v52 }
 0x54f   :  { %v6802_v28 = vpop.eup %6801  ;;  %6821 = vpow2.f32 %v1376_v48 }
 0x550   :  { %v6804_v33 = vpop.eup %6803  ;;  %6823 = vpow2.f32 %v1374_v32  ;;  %v1362_v32 = vmul.f32 -10.0, %v9749_v10  ;;  %v8277_v60 = vmul.f32 %v6802_v28, %v9754_v41  ;;  %v1388_v10 = vmul.f32 1.442695, %v1363_v51 }
 0x551   :  { %v6806_v9 = vpop.eup %6805  ;;  %6825 = vpow2.f32 %v972_v50  ;;  %v9751_v50 = vld [vmem:[#allocation27_spill] sm:$0xff]  ;;  %v978_v28 = vmul.f32 1.442695, %v950_v36  ;;  %v9765_v36 = vld [vmem:[#allocation30_spill] sm:$0xff] }
 0x552   :  { %v8266_v22 = vpop.eup %6807  ;;  %6827 = vpow2.f32 %v974_v59  ;;  %v1364_v31 = vmul.f32 -10.0, %v9751_v50  ;;  %v9752_v59 = vld [vmem:[#allocation14_spill] sm:$0xff]  ;;  %9755 = vst [vmem:[#allocation3_spill] sm:$0xff] %v8277_v60 }
 0x553   :  { %v6810_v30 = vpop.eup %6809  ;;  %6829 = vpow2.f32 %v1380_v54  ;;  %v951_v11 = vmul.f32 -10.0, %v9752_v59  ;;  %v9753_v54 = vld [vmem:[#allocation28_spill] sm:$0xff]  ;;  %v1386_v59 = vmul.f32 1.442695, %v1362_v32 }
 0x554   :  { %v8269_v48 = vpop.eup %6811  ;;  %6831 = vpow2.f32 %v1378_v57  ;;  %v1365_v12 = vmul.f32 -10.0, %v9753_v54 }
 0x555   :  { %v6814_v58 = vpop.eup %6813  ;;  %6833 = vpow2.f32 %v976_v61  ;;  %v9757_v61 = vld [vmem:[#allocation34_spill] sm:$0xff]  ;;  %v980_v32 = vmul.f32 1.442695, %v951_v11  ;;  %v9769_v11 = vld [vmem:[#allocation29_spill] sm:$0xff] }
 0x556   :  { %v6816_v0 = vpop.eup %6815  ;;  %6835 = vpow2.f32 %v1384_v17  ;;  %v8282_v8 = vmul.f32 %v6800_v45, %v9757_v61  ;;  %v1390_v17 = vmul.f32 1.442695, %v1364_v31  ;;  %v1367_v31 = vmul.f32 -10.0, %v9765_v36 }
 0x557   :  { %v6818_v52 = vpop.eup %6817  ;;  %6837 = vpow2.f32 %v1382_v6 }
 0x558   :  { %9758 = vst [vmem:[#allocation5_spill] sm:$0xff] %v8282_v8  ;;  %v8286_v50 = vpop.eup %6819  ;;  %6839 = vpow2.f32 %v1388_v10 }
 0x559   :  { %6841 = vpow2.f32 %v1386_v59 }
 0x55a   :  { %6843 = vpow2.f32 %v1390_v17  ;;  %v1396_v17 = vmul.f32 1.442695, %v1367_v31 }
 0x566   :  { %v6024_v40 = vpop.f32.mrb[32].mxu0 }
 0x567   :  { %v8279_v16 = vmul.f32 %v6814_v58, %v6024_v40  ;;  %v1964_v57 = vpop.f32.mrb[33].mxu0  ;;  %v6822_v40 = vpop.eup %6821  ;;  %v1392_v58 = vmul.f32 1.442695, %v1365_v12  ;;  %v1366_v12 = vmul.f32 -10.0, %v9769_v11  ;;  %v9774_v11 = vld [vmem:[#allocation37_spill] sm:$0xff] }
 0x568   :  { %v8284_v21 = vmul.f32 %v6816_v0, %v1964_v57  ;;  %v6824_v6 = vpop.eup %6823  ;;  %v9762_v57 = vld [vmem:[#allocation35_spill] sm:$0xff] }
 0x569   :  { %9756 = vst [vmem:[#allocation4_spill] sm:$0xff] %v8279_v16  ;;  %v8290_v54 = vadd.f32 %v8279_v16, %v8277_v60  ;;  %v8301_v61 = vmul.f32 %v6806_v9, %v9762_v57  ;;  %v6826_v16 = vpop.eup %6825  ;;  %v9766_v60 = vld [vmem:[#allocation36_spill] sm:$0xff]  ;;  %6845 = vpow2.f32 %v1392_v58 }
 0x56a   :  { %9759 = vst [vmem:[#allocation6_spill] sm:$0xff] %v8284_v21  ;;  %v8296_v45 = vadd.f32 %v8284_v21, %v8282_v8  ;;  %v6027_v51 = vpop.f32.mrb[34].mxu0  ;;  %v8307_v49 = vmul.f32 %v6804_v33, %v9766_v60  ;;  %v8311_v0 = vpop.eup %6827  ;;  %v9776_v8 = vld [vmem:[#allocation38_spill] sm:$0xff]  ;;  %6847 = vpow2.f32 %v978_v28 }
 0x56b   :  { %9760 = vst [vmem:[#allocation7_spill] sm:$0xff] %v8290_v54  ;;  %9763 = vst [vmem:[#allocation17_spill] sm:$0xff] %v8301_v61  ;;  %v8303_v54 = vmul.f32 %v6822_v40, %v6027_v51  ;;  %v1974_v41 = vpop.f32.mrb[35].mxu0  ;;  %v6830_v10 = vpop.eup %6829  ;;  %v9771_v51 = vld [vmem:[#allocation15_spill] sm:$0xff]  ;;  %6849 = vpow2.f32 %v980_v32 }
 0x56c   :  { %9761 = vst [vmem:[#allocation18_spill] sm:$0xff] %v8296_v45  ;;  %9767 = vst [vmem:[#allocation9_spill] sm:$0xff] %v8307_v49  ;;  %v8309_v45 = vmul.f32 %v6824_v6, %v1974_v41  ;;  %v952_v57 = vmul.f32 -10.0, %v9771_v51  ;;  %v6832_v41 = vpop.eup %6831  ;;  %v9773_v6 = vld [vmem:[#allocation16_spill] sm:$0xff]  ;;  %6851 = vpow2.f32 %v1396_v17 }
 0x56d   :  { %9764 = vst [vmem:[#allocation8_spill] sm:$0xff] %v8303_v54  ;;  %v8316_v9 = vadd.f32 %v8303_v54, %v8301_v61  ;;  %v953_v36 = vmul.f32 -10.0, %v9773_v6  ;;  %v6834_v51 = vpop.eup %6833  ;;  %v9775_v61 = vld [vmem:[#allocation32_spill] sm:$0xff] }
 0x56e   :  { %9768 = vst [vmem:[#allocation20_spill] sm:$0xff] %v8309_v45  ;;  %v8323_v33 = vadd.f32 %v8309_v45, %v8307_v49  ;;  %v6030_v59 = vpop.f32.mrb[36].mxu0  ;;  %v1369_v21 = vmul.f32 -10.0, %v9775_v61  ;;  %v1394_v45 = vmul.f32 1.442695, %v1366_v12  ;;  %v9777_v49 = vld [vmem:[#allocation31_spill] sm:$0xff] }
 0x56f   :  { %9770 = vst [vmem:[#allocation19_spill] sm:$0xff] %v8316_v9  ;;  %v8329_v9 = vmul.f32 %v6810_v30, %v9774_v11  ;;  %v8331_v40 = vmul.f32 %v6830_v10, %v6030_v59  ;;  %v1984_v54 = vpop.f32.mrb[37].mxu0  ;;  %v1368_v6 = vmul.f32 -10.0, %v9777_v49  ;;  %v6836_v10 = vpop.eup %6835  ;;  %v982_v31 = vmul.f32 1.442695, %v952_v57  ;;  %v9779_v12 = vld [vmem:[#allocation39_spill] sm:$0xff] }
 0x570   :  { %9772 = vst [vmem:[#allocation10_spill] sm:$0xff] %v8323_v33  ;;  %v8336_v33 = vmul.f32 %v8266_v22, %v9776_v8  ;;  %v8338_v60 = vmul.f32 %v6832_v41, %v1984_v54  ;;  %v6838_v54 = vpop.eup %6837  ;;  %v984_v49 = vmul.f32 1.442695, %v953_v36  ;;  %v8354_v59 = vmul.f32 %v6818_v52, %v9779_v12  ;;  %v9780_v57 = vld [vmem:[#allocation40_spill] sm:$0xff] }
 0x571   :  { %v8343_v30 = vadd.f32 %v8331_v40, %v8329_v9  ;;  %v1400_v28 = vmul.f32 1.442695, %v1369_v21  ;;  %v8360_v58 = vmul.f32 %v8269_v48, %v9780_v57  ;;  %6853 = vpow2.f32 %v1394_v45  ;;  %v6840_v36 = vpop.eup %6839  ;;  %v9781_v45 = vld [vmem:[#allocation41_spill] sm:$0xff] }
 0x572   :  { %v8349_v61 = vadd.f32 %v8338_v60, %v8336_v33  ;;  %v6033_v22 = vpop.f32.mrb[38].mxu0  ;;  %v1398_v8 = vmul.f32 1.442695, %v1368_v6  ;;  %6855 = vpow2.f32 %v982_v31  ;;  %v8377_v6 = vmul.f32 %v6826_v16, %v9781_v45  ;;  %v9788_v45 = vld [vmem:[#allocation43_spill] sm:$0xff] }
 0x573   :  { %v8356_v41 = vmul.f32 %v6836_v10, %v6033_v22  ;;  %v1994_v11 = vpop.f32.mrb[39].mxu0  ;;  %v6842_v10 = vpop.eup %6841  ;;  %6857 = vpow2.f32 %v984_v49 }
 0x574   :  { %9778 = vst [vmem:[#allocation11_spill] sm:$0xff] %v8349_v61  ;;  %v8362_v61 = vmul.f32 %v6838_v54, %v1994_v11  ;;  %v6844_v12 = vpop.eup %6843  ;;  %6859 = vpow2.f32 %v1400_v28  ;;  %v9783_v11 = vld [vmem:[#allocation42_spill] sm:$0xff] }
 0x575   :  { %v8366_v32 = vadd.f32 %v8356_v41, %v8354_v59  ;;  %v8383_v31 = vmul.f32 %v8286_v50, %v9783_v11  ;;  %v6846_v52 = vpop.eup %6845  ;;  %6861 = vpow2.f32 %v1398_v8 }
 0x576   :  { %v8372_v21 = vadd.f32 %v8362_v61, %v8360_v58  ;;  %v6036_v17 = vpop.f32.mrb[40].mxu0 }
 0x577   :  { %v8379_v22 = vmul.f32 %v6840_v36, %v6036_v17  ;;  %v2004_v54 = vpop.f32.mrb[41].mxu0  ;;  %9784 = vst [vmem:[#allocation21_spill] sm:$0xff] %v8383_v31  ;;  %v8400_v36 = vmul.f32 %v6834_v51, %v7850_v55 }
 0x578   :  { %v8385_v57 = vmul.f32 %v6842_v10, %v2004_v54  ;;  %v6848_v10 = vpop.eup %6847  ;;  %v8406_v54 = vmul.f32 %v8311_v0, %v9788_v45 }
 0x579   :  { %9782 = vst [vmem:[#allocation22_spill] sm:$0xff] %v8379_v22  ;;  %v8389_v48 = vadd.f32 %v8379_v22, %v8377_v6  ;;  %v6850_v16 = vpop.eup %6849 }
 0x57a   :  { %9785 = vst [vmem:[#allocation12_spill] sm:$0xff] %v8385_v57  ;;  %v8395_v49 = vadd.f32 %v8385_v57, %v8383_v31  ;;  %v6039_v50 = vpop.f32.mrb[42].mxu0  ;;  %9789 = vst [vmem:[#allocation26_spill] sm:$0xff] %v8406_v54  ;;  %v6852_v55 = vpop.eup %6851  ;;  %v9795_v31 = vld [vmem:[#allocation45_spill] sm:$0xff] }
 0x57b   :  { %v8402_v17 = vmul.f32 %v6846_v52, %v6039_v50  ;;  %v2014_v8 = vpop.f32.mrb[43].mxu0  ;;  %v6854_v50 = vpop.eup %6853  ;;  %v8428_v22 = vmul.f32 %v6848_v10, %v9795_v31 }
 0x57c   :  { %9786 = vst [vmem:[#allocation24_spill] sm:$0xff] %v8395_v49  ;;  %v8408_v11 = vmul.f32 %v6844_v12, %v2014_v8  ;;  %v9793_v12 = vld [vmem:[#allocation44_spill] sm:$0xff] }
 0x57d   :  { %9787 = vst [vmem:[#allocation23_spill] sm:$0xff] %v8402_v17  ;;  %v8412_v49 = vadd.f32 %v8402_v17, %v8400_v36  ;;  %v8423_v8 = vmul.f32 %v6850_v16, %v9793_v12 }
 0x57e   :  { %9790 = vst [vmem:[#allocation25_spill] sm:$0xff] %v8408_v11  ;;  %v8418_v51 = vadd.f32 %v8408_v11, %v8406_v54  ;;  %v6042_v0 = vpop.f32.mrb[44].mxu0 }
 0x57f   :  { %9791 = vst [vmem:[#allocation13_spill] sm:$0xff] %v8412_v49  ;;  %v8425_v45 = vmul.f32 %v6852_v55, %v6042_v0  ;;  %v2024_v57 = vpop.f32.mrb[45].mxu0  ;;  %v6856_v49 = vpop.eup %6855 }
 0x580   :  { %9792 = vst [vmem:[#allocation27_spill] sm:$0xff] %v8418_v51  ;;  %v8430_v28 = vmul.f32 %v6854_v50, %v2024_v57  ;;  %v6858_v17 = vpop.eup %6857  ;;  %v9798_v57 = vld [vmem:[#allocation46_spill] sm:$0xff] }
 0x581   :  { %9794 = vst [vmem:[#allocation14_spill] sm:$0xff] %v8425_v45  ;;  %v8434_v51 = vadd.f32 %v8425_v45, %v8423_v8  ;;  %v6860_v11 = vpop.eup %6859  ;;  %v8445_v0 = vmul.f32 %v6858_v17, %v9798_v57  ;;  %v1540_v57 = vand.u32 65535, %v8100_v7 }
 0x582   :  { %9796 = vst [vmem:[#allocation28_spill] sm:$0xff] %v8430_v28  ;;  %v8440_v16 = vadd.f32 %v8430_v28, %v8428_v22  ;;  %v6045_v31 = vpop.f32.mrb[46].mxu0  ;;  %v6862_v10 = vpop.eup %6861 }
 0x583   :  { %9797 = vst [vmem:[#allocation33_spill] sm:$0xff] %v8434_v51  ;;  %v8447_v50 = vmul.f32 %v6860_v11, %v6045_v31  ;;  %v2034_v12 = vpop.f32.mrb[47].mxu0  ;;  %v9799_v51 = vld [vmem:[#allocation47_spill] sm:$0xff]  ;;  %v1498_v11 = vand.u32 65535, %v8077_v3  ;;  %v1554_v3 = vand.u32 65535, %v8115_v19 }
 0x584   :  { %v8450_v54 = vmul.f32 %v6856_v49, %v9799_v51  ;;  %v8452_v52 = vmul.f32 %v6862_v10, %v2034_v12  ;;  %v1512_v49 = vand.u32 65535, %v8083_v47  ;;  %v1526_v51 = vand.u32 65535, %v8093_v63 }
 0x585   :  { %v8456_v45 = vadd.f32 %v8447_v50, %v8445_v0  ;;  %v1500_v10 = vcvt.s32.f32 %v1498_v11  ;;  %v1542_v11 = vcvt.s32.f32 %v1540_v57 }
 0x586   :  { %v8462_v28 = vadd.f32 %v8452_v52, %v8450_v54  ;;  %v1514_v55 = vcvt.s32.f32 %v1512_v49  ;;  %v1528_v17 = vcvt.s32.f32 %v1526_v51 }
 0x588   :  { %9800 = vst [vmem:[#allocation34_spill] sm:$0xff] %v8462_v28 }
 0x5b6   :  { %v8469_v31 = vpop.xlane.xlu0 %1502  ;;  %v8474_v12 = vpop.xlane.xlu1 %1516 }
 0x5b7   :  { %vm1504_vm12 = vcmp.eq.f32.partialorder %v8095_v15, %v8469_v31  ;;  %vm1518_vm13 = vcmp.eq.f32.partialorder %v8103_v35, %v8474_v12  ;;  %v1568_v15 = vand.u32 65535, %v8122_v14  ;;  %v1582_v35 = vand.u32 65535, %v8137_v23 }
 0x5b8   :  { %v1505_v28 = vsel %vm1504_vm12, %v1500_v10, inf  ;;  %v1519_v47 = vsel %vm1518_vm13, %v1514_v55, inf  ;;  %v1556_v55 = vcvt.s32.f32 %v1554_v3 }
 0x5b9   :  { %1506 = vmin.xlane.f32.xlu0 %v1505_v28  ;;  %1520 = vmin.xlane.f32.xlu1 %v1519_v47  ;;  %v1570_v51 = vcvt.s32.f32 %v1568_v15  ;;  %v1584_v57 = vcvt.s32.f32 %v1582_v35 }
 0x5ba   :  { %v8479_v63 = vpop.xlane.xlu0 %1530  ;;  %v8484_v7 = vpop.xlane.xlu1 %1544 }
 0x5bb   :  { %vm1532_vm14 = vcmp.eq.f32.partialorder %v8117_v18, %v8479_v63  ;;  %vm1546_vm15 = vcmp.eq.f32.partialorder %v8125_v2, %v8484_v7  ;;  %v1596_v18 = vand.u32 65535, %v8144_v5  ;;  %v1610_v2 = vand.u32 65535, %v8159_v26 }
 0x5bc   :  { %v1533_v49 = vsel %vm1532_vm14, %v1528_v17, inf  ;;  %v1547_v19 = vsel %vm1546_vm15, %v1542_v11, inf }
 0x5bd   :  { %1534 = vmin.xlane.f32.xlu0 %v1533_v49  ;;  %1548 = vmin.xlane.f32.xlu1 %v1547_v19  ;;  %v1598_v3 = vcvt.s32.f32 %v1596_v18  ;;  %v1612_v11 = vcvt.s32.f32 %v1610_v2 }
 0x5be   :  { %v8489_v28 = vpop.xlane.xlu0 %1558  ;;  %v8494_v14 = vpop.xlane.xlu1 %1572 }
 0x5bf   :  { %vm1560_vm1 = vcmp.eq.f32.partialorder %v8139_v1, %v8489_v28  ;;  %vm1574_vm2 = vcmp.eq.f32.partialorder %v8147_v25, %v8494_v14  ;;  %v1624_v1 = vand.u32 65535, %v8166_v29  ;;  %v1638_v25 = vand.u32 65535, %v8181_v53 }
 0x5c0   :  { %v1561_v17 = vsel %vm1560_vm1, %v1556_v55, inf  ;;  %v1575_v23 = vsel %vm1574_vm2, %v1570_v51, inf }
 0x5c1   :  { %1562 = vmin.xlane.f32.xlu0 %v1561_v17  ;;  %1576 = vmin.xlane.f32.xlu1 %v1575_v23  ;;  %v1626_v49 = vcvt.s32.f32 %v1624_v1  ;;  %v1640_v55 = vcvt.s32.f32 %v1638_v25  ;;  %v5271_v25 = vld [vmem:[%s9589_s4 + $0xc8] sm:$0xff] }
 0x5c2   :  { %v8499_v10 = vpop.xlane.xlu0 %1586  ;;  %v8504_v5 = vpop.xlane.xlu1 %1600 }
 0x5c3   :  { %vm1588_vm3 = vcmp.eq.f32.partialorder %v8161_v4, %v8499_v10  ;;  %vm1602_vm4 = vcmp.eq.f32.partialorder %v8169_v43, %v8504_v5  ;;  %v1652_v4 = vand.u32 65535, %v8188_v44  ;;  %v1666_v43 = vand.u32 65535, %v8203_v13 }
 0x5c4   :  { %v1589_v47 = vsel %vm1588_vm3, %v1584_v57, inf  ;;  %v1603_v26 = vsel %vm1602_vm4, %v1598_v3, inf }
 0x5c5   :  { %1590 = vmin.xlane.f32.xlu0 %v1589_v47  ;;  %1604 = vmin.xlane.f32.xlu1 %v1603_v26  ;;  %v1654_v18 = vcvt.s32.f32 %v1652_v4  ;;  %v1668_v2 = vcvt.s32.f32 %v1666_v43 }
 0x5c6   :  { %v8509_v15 = vpop.xlane.xlu0 %1614  ;;  %v8514_v29 = vpop.xlane.xlu1 %1628 }
 0x5c7   :  { %vm1616_vm5 = vcmp.eq.f32.partialorder %v8183_v42, %v8509_v15  ;;  %vm1630_vm6 = vcmp.eq.f32.partialorder %v8191_v34, %v8514_v29  ;;  %v1680_v42 = vand.u32 65535, %v8210_v27  ;;  %v1694_v34 = vand.u32 65535, %v8225_v46 }
 0x5c8   :  { %v1617_v35 = vsel %vm1616_vm5, %v1612_v11, inf  ;;  %v1631_v53 = vsel %vm1630_vm6, %v1626_v49, inf  ;;  %v24_v11 = vld [vmem:[%s9590_s1] sm:$0xff] }
 0x5c9   :  { %1618 = vmin.xlane.f32.xlu0 %v1617_v35  ;;  %1632 = vmin.xlane.f32.xlu1 %v1631_v53  ;;  %v1682_v23 = vcvt.s32.f32 %v1680_v42  ;;  %v1696_v1 = vcvt.s32.f32 %v1694_v34  ;;  %v5291_v49 = vld [vmem:[%s9589_s4 + $0xe0] sm:$0xff]  ;;  %v5292_v35 = vld [vmem:[%s9589_s4 + $0xe8] sm:$0xff]  ;;  %v5293_v53 = vld [vmem:[%s9589_s4 + $0xf0] sm:$0xff] }
 0x5ca   :  { %v8519_v19 = vpop.xlane.xlu0 %1642  ;;  %v8524_v44 = vpop.xlane.xlu1 %1656  ;;  %6078 = vmatprep.mubr.msk.f32.mxu1 %vm89_vm0, %v24_v11  ;;  %v6574_v43 = vpack.c.bf16 %v5292_v35, %v5291_v49  ;;  %v25_v42 = vld [vmem:[%s9590_s1 + $0x8] sm:$0xff]  ;;  %v27_v34 = vld [vmem:[%s9590_s1 + $0x18] sm:$0xff] }
 0x5cb   :  { %vm1644_vm7 = vcmp.eq.f32.partialorder %v8205_v38, %v8519_v19  ;;  %vm1658_vm8 = vcmp.eq.f32.partialorder %v8213_v37, %v8524_v44  ;;  %v1708_v38 = vand.u32 65535, %v8232_v62 }
 0x5cc   :  { %v1645_v51 = vsel %vm1644_vm7, %v1640_v55, inf  ;;  %v1659_v13 = vsel %vm1658_vm8, %v1654_v18, inf  ;;  %v5294_v55 = vld [vmem:[%s9589_s4 + $0xf8] sm:$0xff]  ;;  %v26_v18 = vld [vmem:[%s9590_s1 + $0x10] sm:$0xff] }
 0x5cd   :  { %1646 = vmin.xlane.f32.xlu0 %v1645_v51  ;;  %1660 = vmin.xlane.f32.xlu1 %v1659_v13  ;;  %v6578_v51 = vpack.c.bf16 %v5294_v55, %v5293_v53  ;;  %v28_v13 = vld [vmem:[%s9590_s1 + $0x20] sm:$0xff] }
 0x5ce   :  { %v8529_v17 = vpop.xlane.xlu0 %1670  ;;  %v8534_v27 = vpop.xlane.xlu1 %1684 }
 0x5cf   :  { %vm1672_vm9 = vcmp.eq.f32.partialorder %v8227_v24, %v8529_v17  ;;  %vm1686_vm10 = vcmp.eq.f32.partialorder %v8235_v56, %v8534_v27  ;;  %v1710_v24 = vcvt.s32.f32 %v1708_v38  ;;  %v5270_v56 = vld [vmem:[%s9589_s4 + $0xc0] sm:$0xff]  ;;  %v30_v38 = vld [vmem:[%s9590_s1 + $0x30] sm:$0xff] }
 0x5d0   :  { %v1673_v57 = vsel %vm1672_vm9, %v1668_v2, inf  ;;  %v1687_v37 = vsel %vm1686_vm10, %v1682_v23, inf  ;;  %v6566_v26 = vpack.c.bf16 %v5271_v25, %v5270_v56  ;;  %v29_v2 = vld [vmem:[%s9590_s1 + $0x28] sm:$0xff]  ;;  %v31_v23 = vld [vmem:[%s9590_s1 + $0x38] sm:$0xff] }
 0x5d1   :  { %1674 = vmin.xlane.f32.xlu0 %v1673_v57  ;;  %1688 = vmin.xlane.f32.xlu1 %v1687_v37  ;;  %v32_v57 = vld [vmem:[%s9590_s1 + $0x40] sm:$0xff]  ;;  %v33_v37 = vld [vmem:[%s9590_s1 + $0x48] sm:$0xff] }
 0x5d2   :  { %v8538_v46 = vpop.xlane.xlu0 %1698  ;;  %v8542_v3 = vpop.xlane.xlu1 %1712  ;;  %6567 = vmatprep.subr.bf16.mxu1 %v6566_v26 }
 0x5d3   :  { %vm1700_vm11 = vcmp.eq.f32.partialorder %v8240_v20, %v8538_v46  ;;  %vm1714_vm12 = vcmp.eq.f32.partialorder %v8242_v39, %v8542_v3  ;;  %v5272_v20 = vld [vmem:[%s9589_s4 + $0xd0] sm:$0xff]  ;;  %v5273_v39 = vld [vmem:[%s9589_s4 + $0xd8] sm:$0xff]  ;;  %6569 = vmatpush3.bf16.msra.mxu1 %v6566_v26 }
 0x5d4   :  { %v1701_v62 = vsel %vm1700_vm11, %v1696_v1, inf  ;;  %v1715_v47 = vsel %vm1714_vm12, %v1710_v24, inf  ;;  %v6570_v4 = vpack.c.bf16 %v5273_v39, %v5272_v20  ;;  %v34_v1 = vld [vmem:[%s9590_s1 + $0x50] sm:$0xff]  ;;  %v35_v24 = vld [vmem:[%s9590_s1 + $0x58] sm:$0xff]  ;;  %v1537_v20 = vcvt.f32.s32 %v8479_v63 }
 0x5d5   :  { %1702 = vmin.xlane.f32.xlu0 %v1701_v62  ;;  %1716 = vmin.xlane.f32.xlu1 %v1715_v47  ;;  %v1509_v62 = vcvt.f32.s32 %v8469_v31  ;;  %v1523_v47 = vcvt.f32.s32 %v8474_v12  ;;  %v9801_v31 = vld [vmem:[#allocation2_spill] sm:$0xff]  ;;  %v1579_v12 = vcvt.f32.s32 %v8494_v14 }
 0x5d6   :  { %6571 = vmatprep.subr.bf16.mxu1 %v6570_v4  ;;  %v1538_v55 = vshll.u32 %v1537_v20, 16 }
 0x5d7   :  { %6573 = vmatpush3.bf16.msra.mxu1 %v6570_v4  ;;  %v1510_v25 = vshll.u32 %v1509_v62, 16  ;;  %v1524_v11 = vshll.u32 %v1523_v47, 16  ;;  %v1551_v4 = vcvt.f32.s32 %v8484_v7  ;;  %v1621_v47 = vcvt.f32.s32 %v8509_v15 }
 0x5d8   :  { %6575 = vmatprep.subr.bf16.mxu1 %v6574_v43 }
 0x5d9   :  { %v1552_v63 = vshll.u32 %v1551_v4, 16 }
 0x5da   :  { %6079 = vmatmul.mubr.msk.f32.vlgmr.msra.gmra.mrb[2].mxu1 %vm89_vm0, %v25_v42 }
 0x5db   :  { %6577 = vmatpush3.bf16.msra.mxu1 %v6574_v43  ;;  %6081 = vmatprep.mubr.msk.f32.mxu1 %vm89_vm0, %v26_v18  ;;  %v1565_v43 = vcvt.f32.s32 %v8489_v28 }
 0x5dc   :  { %6579 = vmatprep.subr.bf16.mxu1 %v6578_v51 }
 0x5dd   :  { %v1566_v7 = vshll.u32 %v1565_v43, 16 }
 0x5de   :  { %6082 = vmatmul.mubr.msk.f32.gmra.mrb[4].mxu1 %vm89_vm0, %v27_v34  ;;  %v9802_v34 = vmov 1.0  }
 0x5df   :  { %6084 = vmatprep.mubr.msk.f32.mxu1 %vm89_vm0, %v28_v13  ;;  %6581 = vmatpush3.bf16.msra.mxu1 %v6578_v51 }
 0x5e2   :  { %6085 = vmatmul.mubr.msk.f32.gmra.mrb[6].mxu1 %vm89_vm0, %v29_v2 }
 0x5e3   :  { %6087 = vmatprep.mubr.msk.f32.mxu1 %vm89_vm0, %v30_v38  ;;  %v1593_v38 = vcvt.f32.s32 %v8499_v10 }
 0x5e5   :  { %v1594_v10 = vshll.u32 %v1593_v38, 16 }
 0x5e6   :  { %6088 = vmatmul.mubr.msk.f32.gmra.mrb[8].mxu1 %vm89_vm0, %v31_v23 }
 0x5e7   :  { %6090 = vmatprep.mubr.msk.f32.mxu1 %vm89_vm0, %v32_v57 }
 0x5ea   :  { %6091 = vmatmul.mubr.msk.f32.gmra.mrb[10].mxu1 %vm89_vm0, %v33_v37  ;;  %v1580_v37 = vshll.u32 %v1579_v12, 16 }
 0x5eb   :  { %6093 = vmatprep.mubr.msk.f32.mxu1 %vm89_vm0, %v34_v1  ;;  %v1607_v1 = vcvt.f32.s32 %v8504_v5 }
 0x5ed   :  { %v1608_v5 = vshll.u32 %v1607_v1, 16 }
 0x5ee   :  { %6094 = vmatmul.mubr.msk.f32.gmra.mrb[12].mxu1 %vm89_vm0, %v35_v24 }
 0x646   :  { %v1507_v56 = vpop.xlane.xlu0 %1506  ;;  %v1521_v39 = vpop.xlane.xlu1 %1520 }
 0x647   :  { %v1508_v26 = vcvt.f32.s32 %v1507_v56  ;;  %v1522_v49 = vcvt.f32.s32 %v1521_v39 }
 0x649   :  { %v1511_v35 = vadd.s32 %v1510_v25, %v1508_v26  ;;  %v1525_v42 = vadd.s32 %v1524_v11, %v1522_v49  ;;  %v1635_v26 = vcvt.f32.s32 %v8514_v29  ;;  %v1622_v49 = vshll.u32 %v1621_v47, 16 }
 0x64a   :  { %v1535_v53 = vpop.xlane.xlu0 %1534  ;;  %v1549_v51 = vpop.xlane.xlu1 %1548 }
 0x64b   :  { %v1536_v18 = vcvt.f32.s32 %v1535_v53  ;;  %vm1722_vm13 = vcmp.eq.s32.totalorder %v9801_v31, %v1511_v35  ;;  %v1550_v13 = vcvt.f32.s32 %v1549_v51  ;;  %vm1723_vm14 = vcmp.eq.s32.totalorder %v9801_v31, %v1525_v42 }
 0x64c   :  { %6046 = vmatprep.mubr.msk.f32.mxu0 %vm1722_vm13, %v9802_v34  ;;  %v1649_v35 = vcvt.f32.s32 %v8519_v19  ;;  %v1663_v42 = vcvt.f32.s32 %v8524_v44  ;;  %v1677_v51 = vcvt.f32.s32 %v8529_v17 }
 0x64d   :  { %v1539_v2 = vadd.s32 %v1538_v55, %v1536_v18  ;;  %6047 = vmatmul.mubr.msk.f32.gmra.mrb[48].mxu0 %vm1723_vm14, %v9802_v34  ;;  %v1553_v23 = vadd.s32 %v1552_v63, %v1550_v13  ;;  %v1636_v55 = vshll.u32 %v1635_v26, 16  ;;  %vm5023_vm14 = vcmask 48128  }
 0x64e   :  { %v1563_v28 = vpop.xlane.xlu0 %1562  ;;  %v1577_v14 = vpop.xlane.xlu1 %1576  ;;  %v1650_v19 = vshll.u32 %v1649_v35, 16  ;;  %v1664_v44 = vshll.u32 %v1663_v42, 16  ;;  %v5313_v35 = vld [vmem:[%s9589_s4 + $0x108] sm:$0xff] }
 0x64f   :  { %v1564_v57 = vcvt.f32.s32 %v1563_v28  ;;  %vm1724_vm15 = vcmp.eq.s32.totalorder %v9801_v31, %v1539_v2  ;;  %v1578_v24 = vcvt.f32.s32 %v1577_v14  ;;  %vm1725_vm1 = vcmp.eq.s32.totalorder %v9801_v31, %v1553_v23 }
 0x650   :  { %6049 = vmatprep.mubr.msk.f32.mxu0 %vm1724_vm15, %v9802_v34 }
 0x651   :  { %v1567_v62 = vadd.s32 %v1566_v7, %v1564_v57  ;;  %6050 = vmatmul.mubr.msk.f32.gmra.mrb[50].mxu0 %vm1725_vm1, %v9802_v34  ;;  %v1581_v25 = vadd.s32 %v1580_v37, %v1578_v24  ;;  %v1691_v7 = vcvt.f32.s32 %v8534_v27  ;;  %v1678_v57 = vshll.u32 %v1677_v51, 16 }
 0x652   :  { %v1591_v56 = vpop.xlane.xlu0 %1590  ;;  %v1605_v39 = vpop.xlane.xlu1 %1604  ;;  %v1705_v37 = vcvt.f32.s32 %v8538_v46 }
 0x653   :  { %v1592_v20 = vcvt.f32.s32 %v1591_v56  ;;  %vm1726_vm2 = vcmp.eq.s32.totalorder %v9801_v31, %v1567_v62  ;;  %v1606_v11 = vcvt.f32.s32 %v1605_v39  ;;  %vm1727_vm3 = vcmp.eq.s32.totalorder %v9801_v31, %v1581_v25 }
 0x654   :  { %6052 = vmatprep.mubr.msk.f32.mxu0 %vm1726_vm2, %v9802_v34  ;;  %v1692_v24 = vshll.u32 %v1691_v7, 16  ;;  %v1719_v62 = vcvt.f32.s32 %v8542_v3  ;;  %v1706_v25 = vshll.u32 %v1705_v37, 16  ;;  %v9807_v7 = vld [vmem:[#allocation53_spill] sm:$0xff] }
 0x655   :  { %v1595_v4 = vadd.s32 %v1594_v10, %v1592_v20  ;;  %6053 = vmatmul.mubr.msk.f32.gmra.mrb[52].mxu0 %vm1727_vm3, %v9802_v34  ;;  %v1609_v43 = vadd.s32 %v1608_v5, %v1606_v11 }
 0x656   :  { %v1619_v15 = vpop.xlane.xlu0 %1618  ;;  %v1633_v29 = vpop.xlane.xlu1 %1632  ;;  %v1720_v39 = vshll.u32 %v1719_v62, 16 }
 0x657   :  { %v1620_v53 = vcvt.f32.s32 %v1619_v15  ;;  %vm1728_vm4 = vcmp.eq.s32.totalorder %v9801_v31, %v1595_v4  ;;  %v1634_v18 = vcvt.f32.s32 %v1633_v29  ;;  %vm1729_vm5 = vcmp.eq.s32.totalorder %v9801_v31, %v1609_v43  ;;  %v36_v4 = vld [vmem:[%s9590_s1 + $0x60] sm:$0xff]  ;;  %v38_v15 = vld [vmem:[%s9590_s1 + $0x70] sm:$0xff] }
 0x658   :  { %6055 = vmatprep.mubr.msk.f32.mxu0 %vm1728_vm4, %v9802_v34  ;;  %6096 = vmatprep.mubr.msk.f32.mxu1 %vm89_vm0, %v36_v4  ;;  %v9804_v29 = vld [vmem:[#allocation48_spill] sm:$0xff] }
 0x659   :  { %v1623_v12 = vadd.s32 %v1622_v49, %v1620_v53  ;;  %6056 = vmatmul.mubr.msk.f32.gmra.mrb[54].mxu0 %vm1729_vm5, %v9802_v34  ;;  %v1637_v13 = vadd.s32 %v1636_v55, %v1634_v18  ;;  %v37_v49 = vld [vmem:[%s9590_s1 + $0x68] sm:$0xff]  ;;  %v9803_v53 = vld [vmem:[#allocation49_spill] sm:$0xff]  ;;  %v1770_v42 = vmul.f32 -10.0, %v9804_v29  ;;  %v9817_v29 = vld [vmem:[#allocation4_spill] sm:$0xff] }
 0x65a   :  { %v1647_v63 = vpop.xlane.xlu0 %1646  ;;  %v1661_v28 = vpop.xlane.xlu1 %1660  ;;  %6097 = vmatmul.mubr.msk.f32.gmra.mrb[14].mxu1 %vm89_vm0, %v37_v49  ;;  %v1771_v55 = vmul.f32 -10.0, %v9803_v53 }
 0x65b   :  { %v1648_v2 = vcvt.f32.s32 %v1647_v63  ;;  %vm1730_vm6 = vcmp.eq.s32.totalorder %v9801_v31, %v1623_v12  ;;  %v1662_v38 = vcvt.f32.s32 %v1661_v28  ;;  %vm1731_vm7 = vcmp.eq.s32.totalorder %v9801_v31, %v1637_v13  ;;  %6099 = vmatprep.mubr.msk.f32.mxu1 %vm89_vm0, %v38_v15  ;;  %v9805_v12 = vld [vmem:[#allocation51_spill] sm:$0xff] }
 0x65c   :  { %6058 = vmatprep.mubr.msk.f32.mxu0 %vm1730_vm6, %v9802_v34  ;;  %v1788_v18 = vmul.f32 1.442695, %v1771_v55  ;;  %v1773_v51 = vmul.f32 -10.0, %v9805_v12  ;;  %v1786_v63 = vmul.f32 1.442695, %v1770_v42  ;;  %v1775_v28 = vmul.f32 -10.0, %v9807_v7 }
 0x65d   :  { %v1651_v23 = vadd.s32 %v1650_v19, %v1648_v2  ;;  %6059 = vmatmul.mubr.msk.f32.gmra.mrb[56].mxu0 %vm1731_vm7, %v9802_v34  ;;  %v1665_v14 = vadd.s32 %v1664_v44, %v1662_v38  ;;  %v9806_v19 = vld [vmem:[#allocation50_spill] sm:$0xff]  ;;  %v9808_v38 = vld [vmem:[#allocation52_spill] sm:$0xff]  ;;  %v9816_v55 = vld [vmem:[#allocation3_spill] sm:$0xff] }
 0x65e   :  { %v1675_v17 = vpop.xlane.xlu0 %1674  ;;  %v1689_v27 = vpop.xlane.xlu1 %1688  ;;  %v1772_v13 = vmul.f32 -10.0, %v9806_v19  ;;  %6863 = vpow2.f32 %v1788_v18  ;;  %v1792_v2 = vmul.f32 1.442695, %v1773_v51  ;;  %v9818_v42 = vmax.f32 %v9816_v55, %v9817_v29  ;;  %v5334_v29 = vld [vmem:[%s9589_s4 + $0x128] sm:$0xff] }
 0x65f   :  { %v1676_v1 = vcvt.f32.s32 %v1675_v17  ;;  %vm1732_vm8 = vcmp.eq.s32.totalorder %v9801_v31, %v1651_v23  ;;  %v1690_v47 = vcvt.f32.s32 %v1689_v27  ;;  %vm1733_vm9 = vcmp.eq.s32.totalorder %v9801_v31, %v1665_v14  ;;  %v9809_v17 = vld [vmem:[#allocation55_spill] sm:$0xff]  ;;  %v9811_v27 = vld [vmem:[#allocation56_spill] sm:$0xff] }
 0x660   :  { %6061 = vmatprep.mubr.msk.f32.mxu0 %vm1732_vm8, %v9802_v34  ;;  %6865 = vpow2.f32 %v1786_v63  ;;  %v1790_v44 = vmul.f32 1.442695, %v1772_v13  ;;  %v1774_v23 = vmul.f32 -10.0, %v9808_v38  ;;  %v1777_v37 = vmul.f32 -10.0, %v9809_v17  ;;  %v9819_v63 = vld [vmem:[#allocation18_spill] sm:$0xff]  ;;  %v9820_v13 = vld [vmem:[#allocation5_spill] sm:$0xff] }
 0x661   :  { %v1679_v56 = vadd.s32 %v1678_v57, %v1676_v1  ;;  %6062 = vmatmul.mubr.msk.f32.gmra.mrb[58].mxu0 %vm1733_vm9, %v9802_v34  ;;  %v1693_v20 = vadd.s32 %v1692_v24, %v1690_v47  ;;  %6867 = vpow2.f32 %v1792_v2  ;;  %v1796_v57 = vmul.f32 1.442695, %v1775_v28  ;;  %v9810_v1 = vld [vmem:[#allocation54_spill] sm:$0xff]  ;;  %v5314_v38 = vld [vmem:[%s9589_s4 + $0x110] sm:$0xff] }
 0x662   :  { %v1703_v10 = vpop.xlane.xlu0 %1702  ;;  %v1717_v26 = vpop.xlane.xlu1 %1716  ;;  %6869 = vpow2.f32 %v1790_v44  ;;  %v1794_v14 = vmul.f32 1.442695, %v1774_v23  ;;  %v1776_v24 = vmul.f32 -10.0, %v9810_v1  ;;  %v1778_v62 = vmul.f32 -10.0, %v9811_v27  ;;  %v9821_v2 = vld [vmem:[#allocation6_spill] sm:$0xff]  ;;  %v5315_v23 = vld [vmem:[%s9589_s4 + $0x118] sm:$0xff] }
 0x663   :  { %v1704_v46 = vcvt.f32.s32 %v1703_v10  ;;  %vm1734_vm10 = vcmp.eq.s32.totalorder %v9801_v31, %v1679_v56  ;;  %v1718_v5 = vcvt.f32.s32 %v1717_v26  ;;  %vm1735_vm11 = vcmp.eq.s32.totalorder %v9801_v31, %v1693_v20  ;;  %v9812_v56 = vld [vmem:[#allocation57_spill] sm:$0xff]  ;;  %v9813_v26 = vld [vmem:[#allocation58_spill] sm:$0xff]  ;;  %v9824_v1 = vld [vmem:[#allocation60_spill] sm:$0xff] }
 0x664   :  { %6064 = vmatprep.mubr.msk.f32.mxu0 %vm1734_vm10, %v9802_v34  ;;  %6871 = vpow2.f32 %v1796_v57  ;;  %v1800_v47 = vmul.f32 1.442695, %v1777_v37  ;;  %v1779_v10 = vmul.f32 -10.0, %v9812_v56  ;;  %v9822_v7 = vmax.f32 %v9820_v13, %v9821_v2  ;;  %v9823_v37 = vld [vmem:[#allocation61_spill] sm:$0xff]  ;;  %v9833_v13 = vld [vmem:[#allocation63_spill] sm:$0xff] }
 0x665   :  { %v1707_v11 = vadd.s32 %v1706_v25, %v1704_v46  ;;  %6065 = vmatmul.mubr.msk.f32.gmra.mrb[60].mxu0 %vm1735_vm11, %v9802_v34  ;;  %v1721_v3 = vadd.s32 %v1720_v39, %v1718_v5  ;;  %6873 = vpow2.f32 %v1794_v14  ;;  %v1798_v25 = vmul.f32 1.442695, %v1776_v24 }
 0x666   :  { %v1802_v46 = vmul.f32 1.442695, %v1778_v62  ;;  %v1780_v39 = vmul.f32 -10.0, %v9813_v26  ;;  %6875 = vpow2.f32 %v1800_v47  ;;  %v1783_v14 = vmul.f32 -10.0, %v9823_v37  ;;  %v9827_v26 = vld [vmem:[#allocation8_spill] sm:$0xff] }
 0x667   :  { %vm1736_vm12 = vcmp.eq.s32.totalorder %v9801_v31, %v1707_v11  ;;  %vm1737_vm13 = vcmp.eq.s32.totalorder %v9801_v31, %v1721_v3  ;;  %v39_v31 = vld [vmem:[%s9590_s1 + $0x78] sm:$0xff]  ;;  %v9814_v3 = vld [vmem:[#allocation59_spill] sm:$0xff]  ;;  %6877 = vpow2.f32 %v1798_v25  ;;  %v1782_v24 = vmul.f32 -10.0, %v9824_v1 }
 0x668   :  { %6067 = vmatprep.mubr.msk.f32.mxu0 %vm1736_vm12, %v9802_v34  ;;  %6100 = vmatmul.mubr.msk.f32.gmra.mrb[16].mxu1 %vm89_vm0, %v39_v31  ;;  %v6864_v20 = vpop.eup %6863  ;;  %v1781_v4 = vmul.f32 -10.0, %v9814_v3  ;;  %v1804_v31 = vmul.f32 1.442695, %v1779_v10  ;;  %6879 = vpow2.f32 %v1802_v46  ;;  %v1806_v51 = vmul.f32 1.442695, %v1780_v39  ;;  %v9825_v25 = vld [vmem:[#allocation19_spill] sm:$0xff] }
 0x669   :  { %6068 = vmatmul.mubr.msk.f32.gmra.mrb[62].mxu0 %vm1737_vm13, %v9802_v34  ;;  %v5312_v34 = vld [vmem:[%s9589_s4 + $0x100] sm:$0xff]  ;;  %v9826_v46 = vld [vmem:[#allocation17_spill] sm:$0xff]  ;;  %v1785_v2 = vmul.f32 -10.0, %v9833_v13 }
 0x66a   :  { %v8688_v43 = vpack.c.bf16 %v5313_v35, %v5312_v34  ;;  %v6866_v11 = vpop.eup %6865  ;;  %v9815_v35 = vld [vmem:[#allocation7_spill] sm:$0xff]  ;;  %v1808_v17 = vmul.f32 1.442695, %v1781_v4  ;;  %6881 = vpow2.f32 %v1804_v31  ;;  %v9828_v39 = vmax.f32 %v9826_v46, %v9827_v26  ;;  %v9829_v4 = vld [vmem:[#allocation10_spill] sm:$0xff] }
 0x66b   :  { %v6868_v12 = vpop.eup %6867  ;;  %6883 = vpow2.f32 %v1806_v51  ;;  %v1810_v51 = vmul.f32 1.442695, %v1782_v24 }
 0x66c   :  { %6583 = vmatprep.subr.bf16.mxu1 %v8688_v43  ;;  %v6870_v57 = vpop.eup %6869  ;;  %6885 = vpow2.f32 %v1808_v17  ;;  %v9835_v17 = vmax.f32 %v8329_v9, %v8331_v40 }
 0x66d   :  { %6887 = vpow2.f32 %v1810_v51 }
 0x66e   :  { %v6872_v3 = vpop.eup %6871 }
 0x720   :  { %v6048_v5 = vpop.f32.mrb[48].mxu0 }
 0x721   :  { %v2188_v49 = vmul.f32 %v6864_v20, %v6048_v5  ;;  %v2044_v15 = vpop.f32.mrb[49].mxu0 }
 0x722   :  { %v2187_v34 = vmul.f32 %v6866_v11, %v2044_v15  ;;  %v6586_v11 = vpack.c.bf16 %v5315_v23, %v5314_v38  ;;  %v9830_v15 = vld [vmem:[#allocation9_spill] sm:$0xff] }
 0x723   :  { %v2204_v53 = vadd.f32 %v2188_v49, %v9815_v35  ;;  %v8707_v18 = vmax.f32 %v9818_v42, %v2188_v49  ;;  %v6874_v42 = vpop.eup %6873 }
 0x724   :  { %v2203_v19 = vadd.f32 %v2187_v34, %v9819_v63  ;;  %v8713_v28 = vmax.f32 %v9822_v7, %v2187_v34  ;;  %v6051_v44 = vpop.f32.mrb[50].mxu0  ;;  %v9831_v34 = vld [vmem:[#allocation20_spill] sm:$0xff]  ;;  %v9834_v7 = vld [vmem:[#allocation62_spill] sm:$0xff]  ;;  %v6876_v24 = vpop.eup %6875 }
 0x725   :  { %v2190_v27 = vmul.f32 %v6868_v12, %v6051_v44  ;;  %v2054_v62 = vpop.f32.mrb[51].mxu0  ;;  %v2236_v10 = vmul.f32 0.33333334, %v2204_v53  ;;  %v9832_v35 = vmax.f32 %v9830_v15, %v9831_v34  ;;  %v5333_v53 = vld [vmem:[%s9589_s4 + $0x120] sm:$0xff]  ;;  %v1812_v12 = vmul.f32 1.442695, %v1783_v14 }
 0x726   :  { %v2235_v47 = vmul.f32 0.33333334, %v2203_v19  ;;  %v2189_v56 = vmul.f32 %v6870_v57, %v2054_v62  ;;  %v1784_v44 = vmul.f32 -10.0, %v9834_v7  ;;  %v8752_v1 = vpack.c.bf16 %v5334_v29, %v5333_v53 }
 0x727   :  { %v2206_v20 = vadd.f32 %v2190_v27, %v9825_v25  ;;  %v8727_v5 = vmax.f32 %v9828_v39, %v2190_v27  ;;  %v9836_v27 = vld [vmem:[#allocation11_spill] sm:$0xff]  ;;  %6889 = vpow2.f32 %v1812_v12  ;;  %v1816_v25 = vmul.f32 1.442695, %v1785_v2  ;;  %v9842_v12 = vld [vmem:[#allocation24_spill] sm:$0xff] }
 0x728   :  { %v2205_v49 = vadd.f32 %v2189_v56, %v9829_v4  ;;  %v8733_v55 = vmax.f32 %v9832_v35, %v2189_v56  ;;  %v6054_v31 = vpop.f32.mrb[52].mxu0  ;;  %6110 = vmatprep.mubr.msk.f32.mxu1 %vm89_vm0, %v2235_v47  ;;  %v9837_v47 = vmax.f32 %v8336_v33, %v8338_v60  ;;  %v1814_v26 = vmul.f32 1.442695, %v1784_v44 }
 0x729   :  { %v2192_v63 = vmul.f32 %v6872_v3, %v6054_v31  ;;  %v2064_v19 = vpop.f32.mrb[53].mxu0  ;;  %6111 = vmatmul.mubr.msk.f32.vlgmr.msra.gmra.mrb[2].mxu1 %vm89_vm0, %v2236_v10  ;;  %v2238_v57 = vmul.f32 0.33333334, %v2206_v20  ;;  %v9838_v60 = vmax.f32 %v8354_v59, %v8356_v41  ;;  %v9839_v15 = vmax.f32 %v8360_v58, %v8362_v61  ;;  %v9840_v58 = vld [vmem:[#allocation22_spill] sm:$0xff] }
 0x72a   :  { %v2237_v38 = vmul.f32 0.33333334, %v2205_v49  ;;  %v2191_v23 = vmul.f32 %v6874_v42, %v2064_v19  ;;  %6585 = vmatpush3.bf16.msra.mxu1 %v8688_v43  ;;  %6891 = vpow2.f32 %v1816_v25  ;;  %v9841_v61 = vmax.f32 %v8377_v6, %v9840_v58  ;;  %v9844_v19 = vld [vmem:[#allocation12_spill] sm:$0xff]  ;;  %v9846_v6 = vld [vmem:[#allocation13_spill] sm:$0xff] }
 0x72b   :  { %v2208_v37 = vadd.f32 %v2192_v63, %v8343_v30  ;;  %v8750_v14 = vmax.f32 %v9835_v17, %v2192_v63  ;;  %6587 = vmatprep.subr.bf16.mxu1 %v6586_v11  ;;  %v6878_v30 = vpop.eup %6877  ;;  %6893 = vpow2.f32 %v1814_v26  ;;  %v9843_v63 = vld [vmem:[#allocation21_spill] sm:$0xff] }
 0x72c   :  { %v2207_v62 = vadd.f32 %v2191_v23, %v9836_v27  ;;  %v8758_v56 = vmax.f32 %v9837_v47, %v2191_v23  ;;  %v6057_v43 = vpop.f32.mrb[54].mxu0  ;;  %6113 = vmatprep.mubr.msk.f32.mxu1 %vm89_vm0, %v2237_v38  ;;  %v6880_v40 = vpop.eup %6879  ;;  %v9845_v13 = vmax.f32 %v9843_v63, %v9844_v19  ;;  %v9859_v19 = vld [vmem:[#allocation34_spill] sm:$0xff] }
 0x72d   :  { %v2194_v10 = vmul.f32 %v6876_v24, %v6057_v43  ;;  %v2074_v9 = vpop.f32.mrb[55].mxu0  ;;  %6114 = vmatmul.mubr.msk.f32.gmra.mrb[4].mxu1 %vm89_vm0, %v2238_v57  ;;  %v2240_v39 = vmul.f32 0.33333334, %v2208_v37  ;;  %v6882_v4 = vpop.eup %6881  ;;  %v9847_v24 = vld [vmem:[#allocation23_spill] sm:$0xff] }
 0x72e   :  { %v2239_v20 = vmul.f32 0.33333334, %v2207_v62  ;;  %v2193_v46 = vmul.f32 %v6878_v30, %v2074_v9  ;;  %6589 = vmatpush3.bf16.msra.mxu1 %v6586_v11  ;;  %v6884_v59 = vpop.eup %6883  ;;  %v9848_v27 = vmax.f32 %v8400_v36, %v9847_v24  ;;  %v9849_v43 = vld [vmem:[#allocation27_spill] sm:$0xff]  ;;  %v9851_v9 = vld [vmem:[#allocation25_spill] sm:$0xff] }
 0x72f   :  { %v2210_v33 = vadd.f32 %v2194_v10, %v8366_v32  ;;  %v8766_v3 = vmax.f32 %v9838_v60, %v2194_v10  ;;  %6591 = vmatprep.subr.bf16.mxu1 %v8752_v1  ;;  %v6886_v53 = vpop.eup %6885  ;;  %v9850_v10 = vld [vmem:[#allocation26_spill] sm:$0xff] }
 0x730   :  { %v2209_v49 = vadd.f32 %v2193_v46, %v8372_v21  ;;  %v8773_v34 = vmax.f32 %v9839_v15, %v2193_v46  ;;  %v6060_v11 = vpop.f32.mrb[56].mxu0  ;;  %6116 = vmatprep.mubr.msk.f32.mxu1 %vm89_vm0, %v2239_v20  ;;  %v6888_v57 = vpop.eup %6887 }
 0x731   :  { %v2196_v35 = vmul.f32 %v6882_v4, %v6060_v11  ;;  %v2084_v32 = vpop.f32.mrb[57].mxu0  ;;  %6117 = vmatmul.mubr.msk.f32.gmra.mrb[6].mxu1 %vm89_vm0, %v2240_v39  ;;  %v2242_v29 = vmul.f32 0.33333334, %v2210_v33  ;;  %v6890_v47 = vpop.eup %6889  ;;  %v9853_v4 = vld [vmem:[#allocation33_spill] sm:$0xff] }
 0x732   :  { %v2241_v41 = vmul.f32 0.33333334, %v2209_v49  ;;  %v2195_v31 = vmul.f32 %v6880_v40, %v2084_v32  ;;  %v9852_v40 = vmax.f32 %v9850_v10, %v9851_v9  ;;  %v9854_v49 = vld [vmem:[#allocation14_spill] sm:$0xff] }
 0x733   :  { %v2212_v21 = vadd.f32 %v2196_v35, %v8389_v48  ;;  %v8781_v42 = vmax.f32 %v9841_v61, %v2196_v35  ;;  %v9855_v15 = vmax.f32 %v8423_v8, %v9854_v49 }
 0x734   :  { %v2211_v51 = vadd.f32 %v2195_v31, %v9842_v12  ;;  %v2227_v2 = vmax.f32 %v9845_v13, %v2195_v31  ;;  %v6063_v7 = vpop.f32.mrb[58].mxu0  ;;  %6119 = vmatprep.mubr.msk.f32.mxu1 %vm89_vm0, %v2241_v41  ;;  %v6892_v35 = vpop.eup %6891  ;;  %v9860_v13 = vmax.f32 %v8450_v54, %v8452_v52  ;;  %v5354_v52 = vld [vmem:[%s9589_s4 + $0x140] sm:$0xff] }
 0x735   :  { %v2198_v44 = vmul.f32 %v6886_v53, %v6063_v7  ;;  %v2094_v38 = vpop.f32.mrb[59].mxu0  ;;  %6120 = vmatmul.mubr.msk.f32.gmra.mrb[8].mxu1 %vm89_vm0, %v2242_v29  ;;  %v2244_v37 = vmul.f32 0.33333334, %v2212_v21  ;;  %v6894_v29 = vpop.eup %6893 }
 0x736   :  { %v2243_v23 = vmul.f32 0.33333334, %v2211_v51  ;;  %v2197_v48 = vmul.f32 %v6884_v59, %v2094_v38  ;;  %v9856_v59 = vld [vmem:[#allocation28_spill] sm:$0xff] }
 0x737   :  { %v2214_v17 = vadd.f32 %v2198_v44, %v9846_v6  ;;  %v2230_v62 = vmax.f32 %v9848_v27, %v2198_v44  ;;  %v9857_v41 = vmax.f32 %v8428_v22, %v9856_v59 }
 0x738   :  { %v2213_v30 = vadd.f32 %v2197_v48, %v9849_v43  ;;  %v2229_v25 = vmax.f32 %v9852_v40, %v2197_v48  ;;  %v6066_v20 = vpop.f32.mrb[60].mxu0  ;;  %6122 = vmatprep.mubr.msk.f32.mxu1 %vm89_vm0, %v2243_v23 }
 0x739   :  { %v2200_v46 = vmul.f32 %v6890_v47, %v6066_v20  ;;  %v2104_v26 = vpop.f32.mrb[61].mxu0  ;;  %6123 = vmatmul.mubr.msk.f32.gmra.mrb[10].mxu1 %vm89_vm0, %v2244_v37  ;;  %v2246_v60 = vmul.f32 0.33333334, %v2214_v17 }
 0x73a   :  { %v2245_v39 = vmul.f32 0.33333334, %v2213_v30  ;;  %v2199_v33 = vmul.f32 %v6888_v57, %v2104_v26 }
 0x73b   :  { %v2216_v36 = vadd.f32 %v2200_v46, %v9853_v4  ;;  %v2232_v11 = vmax.f32 %v9855_v15, %v2200_v46 }
 0x73c   :  { %v2215_v32 = vadd.f32 %v2199_v33, %v8440_v16  ;;  %v2231_v31 = vmax.f32 %v9857_v41, %v2199_v33  ;;  %v6069_v53 = vpop.f32.mrb[62].mxu0  ;;  %6125 = vmatprep.mubr.msk.f32.mxu1 %vm89_vm0, %v2245_v39  ;;  %v9858_v16 = vmax.f32 %v8445_v0, %v8447_v50  ;;  %v5336_v0 = vld [vmem:[%s9589_s4 + $0x138] sm:$0xff]  ;;  %v5355_v50 = vld [vmem:[%s9589_s4 + $0x148] sm:$0xff] }
 0x73d   :  { %v2202_v21 = vmul.f32 %v6892_v35, %v6069_v53  ;;  %v2114_v58 = vpop.f32.mrb[63].mxu0  ;;  %6126 = vmatmul.mubr.msk.f32.gmra.mrb[12].mxu1 %vm89_vm0, %v2246_v60  ;;  %v2248_v51 = vmul.f32 0.33333334, %v2216_v36 }
 0x73e   :  { %v2247_v61 = vmul.f32 0.33333334, %v2215_v32  ;;  %v2201_v12 = vmul.f32 %v6894_v29, %v2114_v58 }
 0x73f   :  { %v2218_v8 = vadd.f32 %v2202_v21, %v8456_v45  ;;  %v2234_v63 = vmax.f32 %v9858_v16, %v2202_v21  ;;  %v5335_v45 = vld [vmem:[%s9589_s4 + $0x130] sm:$0xff] }
 0x740   :  { %v2217_v22 = vadd.f32 %v2201_v12, %v9859_v19  ;;  %v2233_v7 = vmax.f32 %v9860_v13, %v2201_v12  ;;  %6128 = vmatprep.mubr.msk.f32.mxu1 %vm89_vm0, %v2247_v61  ;;  %v6594_v54 = vpack.c.bf16 %v5336_v0, %v5335_v45 }
 0x741   :  { %6129 = vmatmul.mubr.msk.f32.gmra.mrb[14].mxu1 %vm89_vm0, %v2248_v51  ;;  %v2250_v38 = vmul.f32 0.33333334, %v2218_v8 }
 0x742   :  { %v2249_v44 = vmul.f32 0.33333334, %v2217_v22 }
 0x744   :  { %6131 = vmatprep.mubr.msk.f32.mxu1 %vm89_vm0, %v2249_v44 }
 0x745   :  { %6132 = vmatmul.mubr.msk.f32.gmra.mrb[16].mxu1 %vm89_vm0, %v2250_v38 }
 0x746   :  { %6142 = vmatprep.mubr.msk.f32.mxu1 %vm89_vm0, %v8713_v28  ;;  %v6598_v28 = vpack.c.bf16 %v5355_v50, %v5354_v52 }
 0x748   :  { %6599 = vmatprep.subr.bf16.mxu0 %v6598_v28 }
 0x749   :  { %6143 = vmatmul.mubr.msk.f32.vlgmr.msra.gmra.mrb[2].mxu1 %vm89_vm0, %v8707_v18  ;;  %v5356_v18 = vld [vmem:[%s9589_s4 + $0x150] sm:$0xff]  ;;  %6601 = vmatpush3.bf16.msra.mxu0 %v6598_v28 }
 0x74a   :  { %6145 = vmatprep.mubr.msk.f32.mxu1 %vm89_vm0, %v8733_v55  ;;  %6593 = vmatpush3.bf16.msra.mxu1 %v8752_v1  ;;  %v5295_v1 = vld [vmem:[%s9591_s5 + $0x7] ss:$0 sm:$0xff] }
 0x74b   :  { %6595 = vmatprep.subr.bf16.mxu1 %v6594_v54 }
 0x74d   :  { %6146 = vmatmul.mubr.msk.f32.gmra.mrb[4].mxu1 %vm89_vm0, %v8727_v5  ;;  %v5357_v5 = vld [vmem:[%s9589_s4 + $0x158] sm:$0xff] }
 0x74e   :  { %6148 = vmatprep.mubr.msk.f32.mxu1 %vm89_vm0, %v8758_v56  ;;  %6597 = vmatpush3.bf16.msra.mxu1 %v6594_v54  ;;  %v6602_v55 = vpack.c.bf16 %v5357_v5, %v5356_v18 }
 0x750   :  { %6603 = vmatprep.subr.bf16.mxu0 %v6602_v55 }
 0x751   :  { %6149 = vmatmul.mubr.msk.f32.gmra.mrb[6].mxu1 %vm89_vm0, %v8750_v14  ;;  %6605 = vmatpush3.bf16.msra.mxu0 %v6602_v55  ;;  %v5274_v14 = vld [vmem:[%s9591_s5 + $0x6] ss:$0 sm:$0xff] }
 0x752   :  { %6151 = vmatprep.mubr.msk.f32.mxu1 %vm89_vm0, %v8773_v34  ;;  %v6669_v56 = vadd.f32 %v5295_v1, %v5274_v14 }
 0x755   :  { %6152 = vmatmul.mubr.msk.f32.gmra.mrb[8].mxu1 %vm89_vm0, %v8766_v3  ;;  %v5316_v3 = vld [vmem:[%s9591_s5 + $0x8] ss:$0 sm:$0xff] }
 0x756   :  { %6154 = vmatprep.mubr.msk.f32.mxu1 %vm89_vm0, %v2227_v2  ;;  %v8874_v2 = vadd.f32 %v6669_v56, %v5316_v3 }
 0x759   :  { %6155 = vmatmul.mubr.msk.f32.gmra.mrb[10].mxu1 %vm89_vm0, %v8781_v42 }
 0x75a   :  { %6157 = vmatprep.mubr.msk.f32.mxu1 %vm89_vm0, %v2229_v25 }
 0x75d   :  { %6158 = vmatmul.mubr.msk.f32.gmra.mrb[12].mxu1 %vm89_vm0, %v2230_v62 }
 0x75e   :  { %6160 = vmatprep.mubr.msk.f32.mxu1 %vm89_vm0, %v2231_v31 }
 0x761   :  { %6161 = vmatmul.mubr.msk.f32.gmra.mrb[14].mxu1 %vm89_vm0, %v2232_v11 }
 0x762   :  { %6163 = vmatprep.mubr.msk.f32.mxu1 %vm89_vm0, %v2233_v7 }
 0x765   :  { %6164 = vmatmul.mubr.msk.f32.gmra.mrb[16].mxu1 %vm89_vm0, %v2234_v63 }
 0x81c   :  { %v6144_v34 = vpop.f32.mrb[2].mxu1 }
 0x81d   :  { %v6667_v42 = vadd.f32 %v6669_v56, %v6144_v34  ;;  %v2797_v23 = vpop.f32.mrb[3].mxu1 }
 0x81e   :  { %v6670_v48 = vadd.f32 %v6669_v56, %v2797_v23 }
 0x81f   :  { %v6668_v57 = vadd.f32 %v6667_v42, %v5316_v3 }
 0x820   :  { %v6671_v37 = vadd.f32 %v6670_v48, %v5316_v3  ;;  %v6147_v6 = vpop.f32.mrb[4].mxu1  ;;  %v5376_v48 = vld [vmem:[%s9589_s4 + $0x168] sm:$0xff] }
 0x821   :  { %v2893_v17 = vmul.f32 0.01, %v6668_v57  ;;  %v6674_v24 = vadd.f32 %v8874_v2, %v6147_v6  ;;  %v2807_v27 = vpop.f32.mrb[5].mxu1  ;;  %v5378_v6 = vld [vmem:[%s9589_s4 + $0x178] sm:$0xff] }
 0x822   :  { %v2892_v62 = vmul.f32 0.01, %v6671_v37  ;;  %v6677_v47 = vadd.f32 %v8874_v2, %v2807_v27 }
 0x823   :  { %v8880_v9 = vmax.f32 %v6668_v57, %v2893_v17  ;;  %v2895_v40 = vmul.f32 0.01, %v6674_v24  ;;  %v5377_v57 = vld [vmem:[%s9589_s4 + $0x170] sm:$0xff] }
 0x824   :  { %v8878_v43 = vmax.f32 %v6671_v37, %v2892_v62  ;;  %v2894_v30 = vmul.f32 0.01, %v6677_v47  ;;  %v6150_v10 = vpop.f32.mrb[6].mxu1  ;;  %v6610_v17 = vpack.c.bf16 %v5378_v6, %v5377_v57 }
 0x825   :  { %v6680_v25 = vadd.f32 %v8874_v2, %v6150_v10  ;;  %v2817_v20 = vpop.f32.mrb[7].mxu1  ;;  %v8892_v60 = vmax.f32 %v6674_v24, %v2895_v40  ;;  %v8969_v24 = vld [vmem:[%s9591_s5 + $0x9] ss:$0 sm:$0xff] }
 0x826   :  { %v8883_v46 = vmax.f32 %v6677_v47, %v2894_v30  ;;  %v6683_v26 = vadd.f32 %v8874_v2, %v2817_v20  ;;  %6174 = vmatprep.mubr.msk.f32.mxu1 %vm89_vm0, %v8878_v43 }
 0x827   :  { %6175 = vmatmul.mubr.msk.f32.vlgmr.msra.gmra.mrb[18].mxu1 %vm89_vm0, %v8880_v9  ;;  %v2897_v4 = vmul.f32 0.01, %v6680_v25 }
 0x828   :  { %v2896_v39 = vmul.f32 0.01, %v6683_v26  ;;  %v6153_v33 = vpop.f32.mrb[8].mxu1  ;;  %6177 = vmatprep.mubr.msk.f32.mxu1 %vm89_vm0, %v8883_v46 }
 0x829   :  { %v6686_v36 = vadd.f32 %v8874_v2, %v6153_v33  ;;  %v2827_v49 = vpop.f32.mrb[9].mxu1  ;;  %v8902_v59 = vmax.f32 %v6680_v25, %v2897_v4 }
 0x82a   :  { %v8895_v15 = vmax.f32 %v6683_v26, %v2896_v39  ;;  %v6689_v11 = vadd.f32 %v8874_v2, %v2827_v49 }
 0x82b   :  { %6178 = vmatmul.mubr.msk.f32.gmra.mrb[20].mxu1 %vm89_vm0, %v8892_v60  ;;  %v2899_v41 = vmul.f32 0.01, %v6686_v36 }
 0x82c   :  { %v2898_v35 = vmul.f32 0.01, %v6689_v11  ;;  %v6156_v32 = vpop.f32.mrb[10].mxu1  ;;  %6180 = vmatprep.mubr.msk.f32.mxu1 %vm89_vm0, %v8895_v15 }
 0x82d   :  { %v6692_v31 = vadd.f32 %v8874_v2, %v6156_v32  ;;  %v2837_v53 = vpop.f32.mrb[11].mxu1  ;;  %v8912_v12 = vmax.f32 %v6686_v36, %v2899_v41 }
 0x82e   :  { %v8905_v29 = vmax.f32 %v6689_v11, %v2898_v35  ;;  %v6695_v21 = vadd.f32 %v8874_v2, %v2837_v53 }
 0x82f   :  { %6181 = vmatmul.mubr.msk.f32.gmra.mrb[22].mxu1 %vm89_vm0, %v8902_v59  ;;  %v2901_v51 = vmul.f32 0.01, %v6692_v31 }
 0x830   :  { %v2900_v58 = vmul.f32 0.01, %v6695_v21  ;;  %v6159_v61 = vpop.f32.mrb[12].mxu1  ;;  %6183 = vmatprep.mubr.msk.f32.mxu1 %vm89_vm0, %v8905_v29 }
 0x831   :  { %v6698_v8 = vadd.f32 %v8874_v2, %v6159_v61  ;;  %v2847_v16 = vpop.f32.mrb[13].mxu1  ;;  %v8922_v7 = vmax.f32 %v6692_v31, %v2901_v51 }
 0x832   :  { %v8915_v63 = vmax.f32 %v6695_v21, %v2900_v58  ;;  %v6701_v19 = vadd.f32 %v8874_v2, %v2847_v16 }
 0x833   :  { %6184 = vmatmul.mubr.msk.f32.gmra.mrb[24].mxu1 %vm89_vm0, %v8912_v12  ;;  %v2903_v44 = vmul.f32 0.01, %v6698_v8 }
 0x834   :  { %v2902_v22 = vmul.f32 0.01, %v6701_v19  ;;  %v6162_v13 = vpop.f32.mrb[14].mxu1  ;;  %6186 = vmatprep.mubr.msk.f32.mxu1 %vm89_vm0, %v8915_v63 }
 0x835   :  { %v6704_v38 = vadd.f32 %v8874_v2, %v6162_v13  ;;  %v2857_v45 = vpop.f32.mrb[15].mxu1  ;;  %v8932_v18 = vmax.f32 %v6698_v8, %v2903_v44 }
 0x836   :  { %v8925_v0 = vmax.f32 %v6701_v19, %v2902_v22  ;;  %v6707_v54 = vadd.f32 %v8874_v2, %v2857_v45 }
 0x837   :  { %6187 = vmatmul.mubr.msk.f32.gmra.mrb[26].mxu1 %vm89_vm0, %v8922_v7  ;;  %v2905_v28 = vmul.f32 0.01, %v6704_v38 }
 0x838   :  { %v2904_v52 = vmul.f32 0.01, %v6707_v54  ;;  %v6165_v50 = vpop.f32.mrb[16].mxu1  ;;  %6189 = vmatprep.mubr.msk.f32.mxu1 %vm89_vm0, %v8925_v0 }
 0x839   :  { %v6710_v5 = vadd.f32 %v8874_v2, %v6165_v50  ;;  %v2867_v55 = vpop.f32.mrb[17].mxu1  ;;  %v8942_v3 = vmax.f32 %v6704_v38, %v2905_v28 }
 0x83a   :  { %v8935_v14 = vmax.f32 %v6707_v54, %v2904_v52  ;;  %v6713_v1 = vadd.f32 %v8874_v2, %v2867_v55  ;;  %v5375_v2 = vld [vmem:[%s9589_s4 + $0x160] sm:$0xff] }
 0x83b   :  { %6190 = vmatmul.mubr.msk.f32.gmra.mrb[28].mxu1 %vm89_vm0, %v8932_v18  ;;  %v2907_v34 = vmul.f32 0.01, %v6710_v5  ;;  %v6606_v37 = vpack.c.bf16 %v5376_v48, %v5375_v2 }
 0x83c   :  { %v2906_v56 = vmul.f32 0.01, %v6713_v1  ;;  %6192 = vmatprep.mubr.msk.f32.mxu1 %vm89_vm0, %v8935_v14 }
 0x83d   :  { %v8950_v23 = vmax.f32 %v6710_v5, %v2907_v34  ;;  %6607 = vmatprep.subr.bf16.mxu1 %v6606_v37 }
 0x83e   :  { %v8944_v42 = vmax.f32 %v6713_v1, %v2906_v56  ;;  %6609 = vmatpush3.bf16.msra.mxu1 %v6606_v37 }
 0x83f   :  { %6193 = vmatmul.mubr.msk.f32.gmra.mrb[30].mxu1 %vm89_vm0, %v8942_v3  ;;  %6611 = vmatprep.subr.bf16.mxu1 %v6610_v17 }
 0x840   :  { %6195 = vmatprep.mubr.msk.f32.mxu1 %vm89_vm0, %v8944_v42 }
 0x842   :  { %6613 = vmatpush3.bf16.msra.mxu1 %v6610_v17 }
 0x843   :  { %6196 = vmatmul.mubr.msk.f32.gmra.mrb[32].mxu1 %vm89_vm0, %v8950_v23 }
 0x8fa   :  { %v6176_v27 = vpop.f32.mrb[18].mxu1 }
 0x8fb   :  { %v3054_v62 = vadd.f32 %v6176_v27, %v8969_v24  ;;  %v3048_v47 = vpop.f32.mrb[19].mxu1 }
 0x8fc   :  { %v3049_v30 = vadd.f32 %v8969_v24, %v3048_v47 }
 0x8fd   :  { %v3128_v10 = vmul.f32 0.01, %v3054_v62 }
 0x8fe   :  { %v3127_v40 = vmul.f32 0.01, %v3049_v30  ;;  %v6179_v25 = vpop.f32.mrb[20].mxu1 }
 0x8ff   :  { %v3064_v20 = vadd.f32 %v6179_v25, %v8969_v24  ;;  %v3058_v26 = vpop.f32.mrb[21].mxu1  ;;  %v3144_v4 = vmax.f32 %v3054_v62, %v3128_v10 }
 0x900   :  { %v3143_v39 = vmax.f32 %v3049_v30, %v3127_v40  ;;  %v3059_v33 = vadd.f32 %v8969_v24, %v3058_v26 }
 0x901   :  { %v3130_v36 = vmul.f32 0.01, %v3064_v20 }
 0x902   :  { %v3129_v49 = vmul.f32 0.01, %v3059_v33  ;;  %v6182_v11 = vpop.f32.mrb[22].mxu1  ;;  %6206 = vmatprep.mubr.msk.f32.mxu0 %vm89_vm0, %v3143_v39 }
 0x903   :  { %v3074_v35 = vadd.f32 %v6182_v11, %v8969_v24  ;;  %v3068_v32 = vpop.f32.mrb[23].mxu1  ;;  %6207 = vmatmul.mubr.msk.f32.vlgmr.msra.gmra.mrb[64].mxu0 %vm89_vm0, %v3144_v4  ;;  %v3146_v53 = vmax.f32 %v3064_v20, %v3130_v36 }
 0x904   :  { %v3145_v41 = vmax.f32 %v3059_v33, %v3129_v49  ;;  %v3069_v31 = vadd.f32 %v8969_v24, %v3068_v32 }
 0x905   :  { %v3132_v21 = vmul.f32 0.01, %v3074_v35 }
 0x906   :  { %v3131_v58 = vmul.f32 0.01, %v3069_v31  ;;  %v6185_v61 = vpop.f32.mrb[24].mxu1  ;;  %6209 = vmatprep.mubr.msk.f32.mxu0 %vm89_vm0, %v3145_v41  ;;  %v5417_v41 = vld [vmem:[%s9589_s4 + $0x1a0] sm:$0xff] }
 0x907   :  { %v3084_v51 = vadd.f32 %v6185_v61, %v8969_v24  ;;  %v3078_v8 = vpop.f32.mrb[25].mxu1  ;;  %6210 = vmatmul.mubr.msk.f32.gmra.mrb[66].mxu0 %vm89_vm0, %v3146_v53  ;;  %v3148_v22 = vmax.f32 %v3074_v35, %v3132_v21  ;;  %v5396_v53 = vld [vmem:[%s9589_s4 + $0x180] sm:$0xff]  ;;  %v5397_v21 = vld [vmem:[%s9589_s4 + $0x188] sm:$0xff] }
 0x908   :  { %v3147_v16 = vmax.f32 %v3069_v31, %v3131_v58  ;;  %v3079_v19 = vadd.f32 %v8969_v24, %v3078_v8  ;;  %v5398_v58 = vld [vmem:[%s9589_s4 + $0x190] sm:$0xff]  ;;  %v6614_v61 = vpack.c.bf16 %v5397_v21, %v5396_v53 }
 0x909   :  { %v3134_v13 = vmul.f32 0.01, %v3084_v51 }
 0x90a   :  { %v3133_v44 = vmul.f32 0.01, %v3079_v19  ;;  %v6188_v38 = vpop.f32.mrb[26].mxu1  ;;  %6212 = vmatprep.mubr.msk.f32.mxu0 %vm89_vm0, %v3147_v16  ;;  %6615 = vmatprep.subr.bf16.mxu0 %v6614_v61  ;;  %v9024_v16 = vld [vmem:[%s9591_s5 + $0xa] ss:$0 sm:$0xff] }
 0x90b   :  { %v3094_v45 = vadd.f32 %v6188_v38, %v8969_v24  ;;  %v3088_v54 = vpop.f32.mrb[27].mxu1  ;;  %6213 = vmatmul.mubr.msk.f32.gmra.mrb[68].mxu0 %vm89_vm0, %v3148_v22  ;;  %v3150_v28 = vmax.f32 %v3084_v51, %v3134_v13  ;;  %v5399_v51 = vld [vmem:[%s9589_s4 + $0x198] sm:$0xff] }
 0x90c   :  { %v3149_v52 = vmax.f32 %v3079_v19, %v3133_v44  ;;  %v3089_v50 = vadd.f32 %v8969_v24, %v3088_v54  ;;  %v6618_v8 = vpack.c.bf16 %v5399_v51, %v5398_v58  ;;  %6617 = vmatpush3.bf16.msra.mxu0 %v6614_v61 }
 0x90d   :  { %v3136_v5 = vmul.f32 0.01, %v3094_v45 }
 0x90e   :  { %v3135_v55 = vmul.f32 0.01, %v3089_v50  ;;  %v6191_v1 = vpop.f32.mrb[28].mxu1  ;;  %6215 = vmatprep.mubr.msk.f32.mxu0 %vm89_vm0, %v3149_v52  ;;  %6619 = vmatprep.subr.bf16.mxu0 %v6618_v8  ;;  %v5419_v52 = vld [vmem:[%s9589_s4 + $0x1b0] sm:$0xff] }
 0x90f   :  { %v3104_v56 = vadd.f32 %v6191_v1, %v8969_v24  ;;  %v3098_v34 = vpop.f32.mrb[29].mxu1  ;;  %6216 = vmatmul.mubr.msk.f32.gmra.mrb[70].mxu0 %vm89_vm0, %v3150_v28  ;;  %v3152_v57 = vmax.f32 %v3094_v45, %v3136_v5 }
 0x910   :  { %v3151_v2 = vmax.f32 %v3089_v50, %v3135_v55  ;;  %v3099_v48 = vadd.f32 %v8969_v24, %v3098_v34  ;;  %6621 = vmatpush3.bf16.msra.mxu0 %v6618_v8  ;;  %v5420_v50 = vld [vmem:[%s9589_s4 + $0x1b8] sm:$0xff] }
 0x911   :  { %v3138_v37 = vmul.f32 0.01, %v3104_v56 }
 0x912   :  { %v3137_v6 = vmul.f32 0.01, %v3099_v48  ;;  %v6194_v17 = vpop.f32.mrb[30].mxu1  ;;  %6218 = vmatprep.mubr.msk.f32.mxu0 %vm89_vm0, %v3151_v2  ;;  %v6626_v2 = vpack.c.bf16 %v5420_v50, %v5419_v52 }
 0x913   :  { %v3114_v27 = vadd.f32 %v6194_v17, %v8969_v24  ;;  %v3108_v62 = vpop.f32.mrb[31].mxu1  ;;  %6219 = vmatmul.mubr.msk.f32.gmra.mrb[72].mxu0 %vm89_vm0, %v3152_v57  ;;  %v3154_v10 = vmax.f32 %v3104_v56, %v3138_v37 }
 0x914   :  { %v3153_v47 = vmax.f32 %v3099_v48, %v3137_v6  ;;  %v3109_v30 = vadd.f32 %v8969_v24, %v3108_v62 }
 0x915   :  { %v3140_v40 = vmul.f32 0.01, %v3114_v27 }
 0x916   :  { %v3139_v25 = vmul.f32 0.01, %v3109_v30  ;;  %v6197_v20 = vpop.f32.mrb[32].mxu1  ;;  %6221 = vmatprep.mubr.msk.f32.mxu0 %vm89_vm0, %v3153_v47 }
 0x917   :  { %v3124_v26 = vadd.f32 %v6197_v20, %v8969_v24  ;;  %v3118_v39 = vpop.f32.mrb[33].mxu1  ;;  %6222 = vmatmul.mubr.msk.f32.gmra.mrb[74].mxu0 %vm89_vm0, %v3154_v10  ;;  %v3156_v36 = vmax.f32 %v3114_v27, %v3140_v40 }
 0x918   :  { %v3155_v33 = vmax.f32 %v3109_v30, %v3139_v25  ;;  %v3119_v4 = vadd.f32 %v8969_v24, %v3118_v39  ;;  %v5418_v24 = vld [vmem:[%s9589_s4 + $0x1a8] sm:$0xff] }
 0x919   :  { %v3142_v49 = vmul.f32 0.01, %v3124_v26  ;;  %v6622_v31 = vpack.c.bf16 %v5418_v24, %v5417_v41 }
 0x91a   :  { %v3141_v11 = vmul.f32 0.01, %v3119_v4  ;;  %6224 = vmatprep.mubr.msk.f32.mxu0 %vm89_vm0, %v3155_v33 }
 0x91b   :  { %6225 = vmatmul.mubr.msk.f32.gmra.mrb[76].mxu0 %vm89_vm0, %v3156_v36  ;;  %v3158_v32 = vmax.f32 %v3124_v26, %v3142_v49  ;;  %6623 = vmatprep.subr.bf16.mxu1 %v6622_v31 }
 0x91c   :  { %v3157_v35 = vmax.f32 %v3119_v4, %v3141_v11 }
 0x91e   :  { %6227 = vmatprep.mubr.msk.f32.mxu0 %vm89_vm0, %v3157_v35 }
 0x91f   :  { %6228 = vmatmul.mubr.msk.f32.gmra.mrb[78].mxu0 %vm89_vm0, %v3158_v32 }
 0x9d6   :  { %v6208_v19 = vpop.f32.mrb[64].mxu0 }
 0x9d7   :  { %v3289_v22 = vadd.f32 %v6208_v19, %v9024_v16  ;;  %v3283_v13 = vpop.f32.mrb[65].mxu0 }
 0x9d8   :  { %v3284_v44 = vadd.f32 %v9024_v16, %v3283_v13 }
 0x9d9   :  { %v3363_v38 = vmul.f32 0.01, %v3289_v22 }
 0x9da   :  { %v3362_v45 = vmul.f32 0.01, %v3284_v44  ;;  %v6211_v54 = vpop.f32.mrb[66].mxu0 }
 0x9db   :  { %v3299_v28 = vadd.f32 %v6211_v54, %v9024_v16  ;;  %v3293_v5 = vpop.f32.mrb[67].mxu0  ;;  %v3379_v56 = vmax.f32 %v3289_v22, %v3363_v38 }
 0x9dc   :  { %v3378_v55 = vmax.f32 %v3284_v44, %v3362_v45  ;;  %v3294_v1 = vadd.f32 %v9024_v16, %v3293_v5 }
 0x9dd   :  { %v3365_v34 = vmul.f32 0.01, %v3299_v28 }
 0x9de   :  { %v3364_v48 = vmul.f32 0.01, %v3294_v1  ;;  %v6214_v57 = vpop.f32.mrb[68].mxu0  ;;  %6238 = vmatprep.mubr.msk.f32.mxu1 %vm89_vm0, %v3378_v55 }
 0x9df   :  { %v3309_v37 = vadd.f32 %v6214_v57, %v9024_v16  ;;  %v3303_v6 = vpop.f32.mrb[69].mxu0  ;;  %6239 = vmatmul.mubr.msk.f32.vlgmr.msra.gmra.mrb[34].mxu1 %vm89_vm0, %v3379_v56  ;;  %v3381_v62 = vmax.f32 %v3299_v28, %v3365_v34 }
 0x9e0   :  { %v3380_v17 = vmax.f32 %v3294_v1, %v3364_v48  ;;  %v3304_v27 = vadd.f32 %v9024_v16, %v3303_v6  ;;  %6625 = vmatpush3.bf16.msra.mxu1 %v6622_v31 }
 0x9e1   :  { %v3367_v47 = vmul.f32 0.01, %v3309_v37  ;;  %6627 = vmatprep.subr.bf16.mxu1 %v6626_v2 }
 0x9e2   :  { %v3366_v30 = vmul.f32 0.01, %v3304_v27  ;;  %v6217_v10 = vpop.f32.mrb[70].mxu0  ;;  %6241 = vmatprep.mubr.msk.f32.mxu1 %vm89_vm0, %v3380_v17 }
 0x9e3   :  { %v3319_v40 = vadd.f32 %v6217_v10, %v9024_v16  ;;  %v3313_v25 = vpop.f32.mrb[71].mxu0  ;;  %6242 = vmatmul.mubr.msk.f32.gmra.mrb[36].mxu1 %vm89_vm0, %v3381_v62  ;;  %v3383_v39 = vmax.f32 %v3309_v37, %v3367_v47 }
 0x9e4   :  { %v3382_v20 = vmax.f32 %v3304_v27, %v3366_v30  ;;  %v3314_v26 = vadd.f32 %v9024_v16, %v3313_v25  ;;  %6629 = vmatpush3.bf16.msra.mxu1 %v6626_v2 }
 0x9e5   :  { %v3369_v33 = vmul.f32 0.01, %v3319_v40 }
 0x9e6   :  { %v3368_v4 = vmul.f32 0.01, %v3314_v26  ;;  %v6220_v36 = vpop.f32.mrb[72].mxu0  ;;  %6244 = vmatprep.mubr.msk.f32.mxu1 %vm89_vm0, %v3382_v20 }
 0x9e7   :  { %v3329_v49 = vadd.f32 %v6220_v36, %v9024_v16  ;;  %v3323_v11 = vpop.f32.mrb[73].mxu0  ;;  %6245 = vmatmul.mubr.msk.f32.gmra.mrb[38].mxu1 %vm89_vm0, %v3383_v39  ;;  %v3385_v41 = vmax.f32 %v3319_v40, %v3369_v33 }
 0x9e8   :  { %v3384_v35 = vmax.f32 %v3314_v26, %v3368_v4  ;;  %v3324_v32 = vadd.f32 %v9024_v16, %v3323_v11 }
 0x9e9   :  { %v3371_v24 = vmul.f32 0.01, %v3329_v49 }
 0x9ea   :  { %v3370_v31 = vmul.f32 0.01, %v3324_v32  ;;  %v6223_v53 = vpop.f32.mrb[74].mxu0  ;;  %6247 = vmatprep.mubr.msk.f32.mxu1 %vm89_vm0, %v3384_v35 }
 0x9eb   :  { %v3339_v21 = vadd.f32 %v6223_v53, %v9024_v16  ;;  %v3333_v58 = vpop.f32.mrb[75].mxu0  ;;  %6248 = vmatmul.mubr.msk.f32.gmra.mrb[40].mxu1 %vm89_vm0, %v3385_v41  ;;  %v3387_v8 = vmax.f32 %v3329_v49, %v3371_v24 }
 0x9ec   :  { %v3386_v61 = vmax.f32 %v3324_v32, %v3370_v31  ;;  %v3334_v51 = vadd.f32 %v9024_v16, %v3333_v58 }
 0x9ed   :  { %v3373_v19 = vmul.f32 0.01, %v3339_v21 }
 0x9ee   :  { %v3372_v22 = vmul.f32 0.01, %v3334_v51  ;;  %v6226_v13 = vpop.f32.mrb[76].mxu0  ;;  %6250 = vmatprep.mubr.msk.f32.mxu1 %vm89_vm0, %v3386_v61 }
 0x9ef   :  { %v3349_v44 = vadd.f32 %v6226_v13, %v9024_v16  ;;  %v3343_v38 = vpop.f32.mrb[77].mxu0  ;;  %6251 = vmatmul.mubr.msk.f32.gmra.mrb[42].mxu1 %vm89_vm0, %v3387_v8  ;;  %v3389_v52 = vmax.f32 %v3339_v21, %v3373_v19 }
 0x9f0   :  { %v3388_v45 = vmax.f32 %v3334_v51, %v3372_v22  ;;  %v3344_v54 = vadd.f32 %v9024_v16, %v3343_v38 }
 0x9f1   :  { %v3375_v50 = vmul.f32 0.01, %v3349_v44 }
 0x9f2   :  { %v3374_v28 = vmul.f32 0.01, %v3344_v54  ;;  %v6229_v5 = vpop.f32.mrb[78].mxu0  ;;  %6253 = vmatprep.mubr.msk.f32.mxu1 %vm89_vm0, %v3388_v45 }
 0x9f3   :  { %v3359_v55 = vadd.f32 %v6229_v5, %v9024_v16  ;;  %v3353_v1 = vpop.f32.mrb[79].mxu0  ;;  %6254 = vmatmul.mubr.msk.f32.gmra.mrb[44].mxu1 %vm89_vm0, %v3389_v52  ;;  %v3391_v2 = vmax.f32 %v3349_v44, %v3375_v50 }
 0x9f4   :  { %v3390_v56 = vmax.f32 %v3344_v54, %v3374_v28  ;;  %v3354_v34 = vadd.f32 %v9024_v16, %v3353_v1 }
 0x9f5   :  { %v3377_v48 = vmul.f32 0.01, %v3359_v55 }
 0x9f6   :  { %v3376_v57 = vmul.f32 0.01, %v3354_v34  ;;  %6256 = vmatprep.mubr.msk.f32.mxu1 %vm89_vm0, %v3390_v56 }
 0x9f7   :  { %6257 = vmatmul.mubr.msk.f32.gmra.mrb[46].mxu1 %vm89_vm0, %v3391_v2  ;;  %v3393_v6 = vmax.f32 %v3359_v55, %v3377_v48 }
 0x9f8   :  { %v3392_v37 = vmax.f32 %v3354_v34, %v3376_v57 }
 0x9fa   :  { %6259 = vmatprep.mubr.msk.f32.mxu1 %vm89_vm0, %v3392_v37 }
 0x9fb   :  { %6260 = vmatmul.mubr.msk.f32.gmra.mrb[48].mxu1 %vm89_vm0, %v3393_v6 }
 0x9fc   :  { %6302 = vmatprep.mubr.msk.f32.mxu1 %vm89_vm0, %v8878_v43  ;;  %v5438_v43 = vld [vmem:[%s9589_s4 + $0x1c0] sm:$0xff] }
 0x9ff   :  { %6303 = vmatmul.mubr.msk.f32.vlgmr.msra.gmra.mrb[50].mxu1 %vm89_vm0, %v8880_v9  ;;  %v5439_v9 = vld [vmem:[%s9589_s4 + $0x1c8] sm:$0xff] }
 0xa00   :  { %6305 = vmatprep.mubr.msk.f32.mxu1 %vm89_vm0, %v8883_v46  ;;  %v5440_v46 = vld [vmem:[%s9589_s4 + $0x1d0] sm:$0xff] }
 0xa03   :  { %6306 = vmatmul.mubr.msk.f32.gmra.mrb[52].mxu1 %vm89_vm0, %v8892_v60  ;;  %v6630_v60 = vpack.c.bf16 %v5439_v9, %v5438_v43 }
 0xa04   :  { %6308 = vmatprep.mubr.msk.f32.mxu1 %vm89_vm0, %v8895_v15  ;;  %v5441_v15 = vld [vmem:[%s9589_s4 + $0x1d8] sm:$0xff] }
 0xa05   :  { %6631 = vmatprep.subr.bf16.mxu1 %v6630_v60 }
 0xa06   :  { %6633 = vmatpush3.bf16.msra.mxu1 %v6630_v60 }
 0xa07   :  { %6309 = vmatmul.mubr.msk.f32.gmra.mrb[54].mxu1 %vm89_vm0, %v8902_v59  ;;  %v6634_v59 = vpack.c.bf16 %v5441_v15, %v5440_v46 }
 0xa08   :  { %6311 = vmatprep.mubr.msk.f32.mxu1 %vm89_vm0, %v8905_v29  ;;  %v9111_v29 = vld [vmem:[%s9591_s5 + $0xb] ss:$0 sm:$0xff] }
 0xa09   :  { %6635 = vmatprep.subr.bf16.mxu1 %v6634_v59 }
 0xa0a   :  { %6637 = vmatpush3.bf16.msra.mxu1 %v6634_v59 }
 0xa0b   :  { %6312 = vmatmul.mubr.msk.f32.gmra.mrb[56].mxu1 %vm89_vm0, %v8912_v12 }
 0xa0c   :  { %6314 = vmatprep.mubr.msk.f32.mxu1 %vm89_vm0, %v8915_v63 }
 0xa0f   :  { %6315 = vmatmul.mubr.msk.f32.gmra.mrb[58].mxu1 %vm89_vm0, %v8922_v7 }
 0xa10   :  { %6317 = vmatprep.mubr.msk.f32.mxu1 %vm89_vm0, %v8925_v0 }
 0xa13   :  { %6318 = vmatmul.mubr.msk.f32.gmra.mrb[60].mxu1 %vm89_vm0, %v8932_v18 }
 0xa14   :  { %6320 = vmatprep.mubr.msk.f32.mxu1 %vm89_vm0, %v8935_v14 }
 0xa17   :  { %6321 = vmatmul.mubr.msk.f32.gmra.mrb[62].mxu1 %vm89_vm0, %v8942_v3 }
 0xa18   :  { %6323 = vmatprep.mubr.msk.f32.mxu1 %vm89_vm0, %v8944_v42 }
 0xa1b   :  { %6324 = vmatmul.mubr.msk.f32.gmra.mrb[64].mxu1 %vm89_vm0, %v8950_v23 }
 0xab2   :  { %v6240_v12 = vpop.f32.mrb[34].mxu1 }
 0xab3   :  { %v3524_v63 = vadd.f32 %v6240_v12, %v9111_v29  ;;  %v3518_v7 = vpop.f32.mrb[35].mxu1 }
 0xab4   :  { %v3519_v0 = vadd.f32 %v9111_v29, %v3518_v7  ;;  %v5460_v7 = vld [vmem:[%s9589_s4 + $0x1e8] sm:$0xff] }
 0xab5   :  { %v3598_v18 = vmul.f32 0.01, %v3524_v63 }
 0xab6   :  { %v3597_v14 = vmul.f32 0.01, %v3519_v0  ;;  %v6243_v3 = vpop.f32.mrb[36].mxu1 }
 0xab7   :  { %v3534_v42 = vadd.f32 %v6243_v3, %v9111_v29  ;;  %v3528_v23 = vpop.f32.mrb[37].mxu1  ;;  %v3614_v27 = vmax.f32 %v3524_v63, %v3598_v18  ;;  %v9861_v63 = vmov 0.0  }
 0xab8   :  { %v3613_v16 = vmax.f32 %v3519_v0, %v3597_v14  ;;  %v3529_v17 = vadd.f32 %v9111_v29, %v3528_v23  ;;  %5008 = vst [vmem:[%s9592_s6 + $0x8] sm:$0xff] %v9861_v63  ;;  %5007 = vst [vmem:[%s9592_s6] sm:$0xff] %v9861_v63  ;;  %v5461_v0 = vld [vmem:[%s9589_s4 + $0x1f0] sm:$0xff]  ;;  %v5462_v14 = vld [vmem:[%s9589_s4 + $0x1f8] sm:$0xff] }
 0xab9   :  { %v3600_v62 = vmul.f32 0.01, %v3534_v42  ;;  %5009 = vst [vmem:[%s9592_s6 + $0x10] sm:$0xff] %v9861_v63  ;;  %5010 = vst [vmem:[%s9592_s6 + $0x18] sm:$0xff] %v9861_v63  ;;  %v6642_v3 = vpack.c.bf16 %v5462_v14, %v5461_v0 }
 0xaba   :  { %v3599_v47 = vmul.f32 0.01, %v3529_v17  ;;  %v6246_v30 = vpop.f32.mrb[38].mxu1  ;;  %6270 = vmatprep.mubr.msk.f32.mxu0 %vm89_vm0, %v3613_v16  ;;  %5011 = vst [vmem:[%s9592_s6 + $0x20] sm:$0xff] %v9861_v63  ;;  %5012 = vst [vmem:[%s9592_s6 + $0x28] sm:$0xff] %v9861_v63 }
 0xabb   :  { %v3544_v10 = vadd.f32 %v6246_v30, %v9111_v29  ;;  %v3538_v40 = vpop.f32.mrb[39].mxu1  ;;  %6271 = vmatmul.mubr.msk.f32.vlgmr.msra.gmra.mrb[80].mxu0 %vm89_vm0, %v3614_v27  ;;  %v3616_v26 = vmax.f32 %v3534_v42, %v3600_v62  ;;  %5013 = vst [vmem:[%s9592_s6 + $0x30] sm:$0xff] %v9861_v63  ;;  %5014 = vst [vmem:[%s9592_s6 + $0x38] sm:$0xff] %v9861_v63  ;;  %v5400_v42 = vld [vmem:[%s9591_s5 + $0xc] ss:$0 sm:$0xff] }
 0xabc   :  { %v3615_v25 = vmax.f32 %v3529_v17, %v3599_v47  ;;  %v3539_v20 = vadd.f32 %v9111_v29, %v3538_v40  ;;  %5015 = vst [vmem:[%s9592_s6 + $0x40] sm:$0xff] %v9861_v63  ;;  %5016 = vst [vmem:[%s9592_s6 + $0x48] sm:$0xff] %v9861_v63 }
 0xabd   :  { %v3602_v39 = vmul.f32 0.01, %v3544_v10  ;;  %5017 = vst [vmem:[%s9592_s6 + $0x50] sm:$0xff] %v9861_v63  ;;  %5018 = vst [vmem:[%s9592_s6 + $0x58] sm:$0xff] %v9861_v63 }
 0xabe   :  { %v3601_v33 = vmul.f32 0.01, %v3539_v20  ;;  %v6249_v4 = vpop.f32.mrb[40].mxu1  ;;  %6273 = vmatprep.mubr.msk.f32.mxu0 %vm89_vm0, %v3615_v25  ;;  %5019 = vst [vmem:[%s9592_s6 + $0x60] sm:$0xff] %v9861_v63  ;;  %5020 = vst [vmem:[%s9592_s6 + $0x68] sm:$0xff] %v9861_v63 }
 0xabf   :  { %v3554_v36 = vadd.f32 %v6249_v4, %v9111_v29  ;;  %v3548_v49 = vpop.f32.mrb[41].mxu1  ;;  %6274 = vmatmul.mubr.msk.f32.gmra.mrb[82].mxu0 %vm89_vm0, %v3616_v26  ;;  %v3618_v32 = vmax.f32 %v3544_v10, %v3602_v39  ;;  %5021 = vst [vmem:[%s9592_s6 + $0x70] sm:$0xff] %v9861_v63  ;;  %5022 = vst [vmem:[%s9592_s6 + $0x78] sm:$0xff] %v9861_v63 }
 0xac0   :  { %v3617_v11 = vmax.f32 %v3539_v20, %v3601_v33  ;;  %v3549_v35 = vadd.f32 %v9111_v29, %v3548_v49 }
 0xac1   :  { %v3604_v41 = vmul.f32 0.01, %v3554_v36 }
 0xac2   :  { %v3603_v24 = vmul.f32 0.01, %v3549_v35  ;;  %v6252_v31 = vpop.f32.mrb[42].mxu1  ;;  %6276 = vmatprep.mubr.msk.f32.mxu0 %vm89_vm0, %v3617_v11 }
 0xac3   :  { %v3564_v53 = vadd.f32 %v6252_v31, %v9111_v29  ;;  %v3558_v21 = vpop.f32.mrb[43].mxu1  ;;  %6277 = vmatmul.mubr.msk.f32.gmra.mrb[84].mxu0 %vm89_vm0, %v3618_v32  ;;  %v3620_v51 = vmax.f32 %v3554_v36, %v3604_v41 }
 0xac4   :  { %v3619_v58 = vmax.f32 %v3549_v35, %v3603_v24  ;;  %v3559_v61 = vadd.f32 %v9111_v29, %v3558_v21 }
 0xac5   :  { %v3606_v8 = vmul.f32 0.01, %v3564_v53 }
 0xac6   :  { %v3605_v19 = vmul.f32 0.01, %v3559_v61  ;;  %v6255_v22 = vpop.f32.mrb[44].mxu1  ;;  %6279 = vmatprep.mubr.msk.f32.mxu0 %vm89_vm0, %v3619_v58 }
 0xac7   :  { %v3574_v13 = vadd.f32 %v6255_v22, %v9111_v29  ;;  %v3568_v44 = vpop.f32.mrb[45].mxu1  ;;  %6280 = vmatmul.mubr.msk.f32.gmra.mrb[86].mxu0 %vm89_vm0, %v3620_v51  ;;  %v3622_v54 = vmax.f32 %v3564_v53, %v3606_v8 }
 0xac8   :  { %v3621_v38 = vmax.f32 %v3559_v61, %v3605_v19  ;;  %v3569_v45 = vadd.f32 %v9111_v29, %v3568_v44  ;;  %v5480_v44 = vld [vmem:[%s9589_s4 + $0x200] sm:$0xff] }
 0xac9   :  { %v3608_v52 = vmul.f32 0.01, %v3574_v13 }
 0xaca   :  { %v3607_v50 = vmul.f32 0.01, %v3569_v45  ;;  %v6258_v28 = vpop.f32.mrb[46].mxu1  ;;  %6282 = vmatprep.mubr.msk.f32.mxu0 %vm89_vm0, %v3621_v38  ;;  %v5481_v38 = vld [vmem:[%s9589_s4 + $0x208] sm:$0xff] }
 0xacb   :  { %v3584_v5 = vadd.f32 %v6258_v28, %v9111_v29  ;;  %v3578_v55 = vpop.f32.mrb[47].mxu1  ;;  %6283 = vmatmul.mubr.msk.f32.gmra.mrb[88].mxu0 %vm89_vm0, %v3622_v54  ;;  %v3624_v34 = vmax.f32 %v3574_v13, %v3608_v52  ;;  %v5421_v54 = vld [vmem:[%s9591_s5 + $0xd] ss:$0 sm:$0xff]  ;;  %v5442_v52 = vld [vmem:[%s9591_s5 + $0xe] ss:$0 sm:$0xff] }
 0xacc   :  { %v3623_v1 = vmax.f32 %v3569_v45, %v3607_v50  ;;  %v3579_v56 = vadd.f32 %v9111_v29, %v3578_v55  ;;  %v6646_v45 = vpack.c.bf16 %v5481_v38, %v5480_v44 }
 0xacd   :  { %v3610_v2 = vmul.f32 0.01, %v3584_v5 }
 0xace   :  { %v3609_v48 = vmul.f32 0.01, %v3579_v56  ;;  %v6261_v57 = vpop.f32.mrb[48].mxu1  ;;  %6285 = vmatprep.mubr.msk.f32.mxu0 %vm89_vm0, %v3623_v1 }
 0xacf   :  { %v3594_v37 = vadd.f32 %v6261_v57, %v9111_v29  ;;  %v3588_v6 = vpop.f32.mrb[49].mxu1  ;;  %6286 = vmatmul.mubr.msk.f32.gmra.mrb[90].mxu0 %vm89_vm0, %v3624_v34  ;;  %v3626_v46 = vmax.f32 %v3584_v5, %v3610_v2  ;;  %v9316_v5 = vadd.f32 %v5442_v52, %v5421_v54 }
 0xad0   :  { %v3625_v43 = vmax.f32 %v3579_v56, %v3609_v48  ;;  %v3589_v9 = vadd.f32 %v9111_v29, %v3588_v6  ;;  %v5459_v29 = vld [vmem:[%s9589_s4 + $0x1e0] sm:$0xff] }
 0xad1   :  { %v3612_v60 = vmul.f32 0.01, %v3594_v37  ;;  %v6638_v18 = vpack.c.bf16 %v5460_v7, %v5459_v29 }
 0xad2   :  { %v3611_v15 = vmul.f32 0.01, %v3589_v9  ;;  %6288 = vmatprep.mubr.msk.f32.mxu0 %vm89_vm0, %v3625_v43 }
 0xad3   :  { %6289 = vmatmul.mubr.msk.f32.gmra.mrb[92].mxu0 %vm89_vm0, %v3626_v46  ;;  %v3628_v12 = vmax.f32 %v3594_v37, %v3612_v60  ;;  %6639 = vmatprep.subr.bf16.mxu0 %v6638_v18  ;;  %v5483_v46 = vld [vmem:[%s9589_s4 + $0x218] sm:$0xff] }
 0xad4   :  { %v3627_v59 = vmax.f32 %v3589_v9, %v3611_v15  ;;  %6641 = vmatpush3.bf16.msra.mxu0 %v6638_v18  ;;  %v5482_v9 = vld [vmem:[%s9589_s4 + $0x210] sm:$0xff] }
 0xad5   :  { %6643 = vmatprep.subr.bf16.mxu0 %v6642_v3  ;;  %v6650_v0 = vpack.c.bf16 %v5483_v46, %v5482_v9 }
 0xad6   :  { %6291 = vmatprep.mubr.msk.f32.mxu0 %vm89_vm0, %v3627_v59 }
 0xad7   :  { %6292 = vmatmul.mubr.msk.f32.gmra.mrb[94].mxu0 %vm89_vm0, %v3628_v12 }
 0xad8   :  { %6645 = vmatpush3.bf16.msra.mxu0 %v6642_v3 }
 0xad9   :  { %6647 = vmatprep.subr.bf16.mxu0 %v6646_v45 }
 0xb8e   :  { %v6272_v23 = vpop.f32.mrb[80].mxu0 }
 0xb8f   :  { %v3759_v16 = vadd.f32 %v6272_v23, %v5400_v42  ;;  %v3753_v17 = vpop.f32.mrb[81].mxu0 }
 0xb90   :  { %v3754_v27 = vadd.f32 %v5400_v42, %v3753_v17 }
 0xb91   :  { %5025 = vst.msk [vmem:[%s9592_s6 + $0x8] sm:$0xff] %vm5023_vm14, %v3759_v16 }
 0xb92   :  { %v6275_v62 = vpop.f32.mrb[82].mxu0  ;;  %6334 = vmatprep.mubr.msk.f32.mxu1 %vm89_vm0, %v3754_v27  ;;  %5024 = vst.msk [vmem:[%s9592_s6] sm:$0xff] %vm5023_vm14, %v3754_v27 }
 0xb93   :  { %v3769_v47 = vadd.f32 %v6275_v62, %v5400_v42  ;;  %v3763_v30 = vpop.f32.mrb[83].mxu0  ;;  %6335 = vmatmul.mubr.msk.f32.vlgmr.msra.gmra.mrb[50].mxu1 %vm89_vm0, %v3759_v16 }
 0xb94   :  { %v3764_v10 = vadd.f32 %v5400_v42, %v3763_v30 }
 0xb95   :  { %5027 = vst.msk [vmem:[%s9592_s6 + $0x18] sm:$0xff] %vm5023_vm14, %v3769_v47 }
 0xb96   :  { %v6278_v40 = vpop.f32.mrb[84].mxu0  ;;  %6337 = vmatprep.mubr.msk.f32.mxu1 %vm89_vm0, %v3764_v10  ;;  %5026 = vst.msk [vmem:[%s9592_s6 + $0x10] sm:$0xff] %vm5023_vm14, %v3764_v10 }
 0xb97   :  { %v3779_v25 = vadd.f32 %v6278_v40, %v5400_v42  ;;  %v3773_v20 = vpop.f32.mrb[85].mxu0  ;;  %6338 = vmatmul.mubr.msk.f32.gmra.mrb[52].mxu1 %vm89_vm0, %v3769_v47 }
 0xb98   :  { %v3774_v26 = vadd.f32 %v5400_v42, %v3773_v20 }
 0xb99   :  { %5029 = vst.msk [vmem:[%s9592_s6 + $0x28] sm:$0xff] %vm5023_vm14, %v3779_v25 }
 0xb9a   :  { %v6281_v39 = vpop.f32.mrb[86].mxu0  ;;  %6340 = vmatprep.mubr.msk.f32.mxu1 %vm89_vm0, %v3774_v26  ;;  %5028 = vst.msk [vmem:[%s9592_s6 + $0x20] sm:$0xff] %vm5023_vm14, %v3774_v26 }
 0xb9b   :  { %v3789_v33 = vadd.f32 %v6281_v39, %v5400_v42  ;;  %v3783_v4 = vpop.f32.mrb[87].mxu0  ;;  %6341 = vmatmul.mubr.msk.f32.gmra.mrb[54].mxu1 %vm89_vm0, %v3779_v25 }
 0xb9c   :  { %v3784_v36 = vadd.f32 %v5400_v42, %v3783_v4 }
 0xb9d   :  { %5031 = vst.msk [vmem:[%s9592_s6 + $0x38] sm:$0xff] %vm5023_vm14, %v3789_v33 }
 0xb9e   :  { %v6284_v49 = vpop.f32.mrb[88].mxu0  ;;  %6343 = vmatprep.mubr.msk.f32.mxu1 %vm89_vm0, %v3784_v36  ;;  %5030 = vst.msk [vmem:[%s9592_s6 + $0x30] sm:$0xff] %vm5023_vm14, %v3784_v36 }
 0xb9f   :  { %v3799_v11 = vadd.f32 %v6284_v49, %v5400_v42  ;;  %v3793_v35 = vpop.f32.mrb[89].mxu0  ;;  %6344 = vmatmul.mubr.msk.f32.gmra.mrb[56].mxu1 %vm89_vm0, %v3789_v33 }
 0xba0   :  { %v3794_v32 = vadd.f32 %v5400_v42, %v3793_v35 }
 0xba1   :  { %5033 = vst.msk [vmem:[%s9592_s6 + $0x48] sm:$0xff] %vm5023_vm14, %v3799_v11 }
 0xba2   :  { %v6287_v41 = vpop.f32.mrb[90].mxu0  ;;  %6346 = vmatprep.mubr.msk.f32.mxu1 %vm89_vm0, %v3794_v32  ;;  %5032 = vst.msk [vmem:[%s9592_s6 + $0x40] sm:$0xff] %vm5023_vm14, %v3794_v32 }
 0xba3   :  { %v3809_v24 = vadd.f32 %v6287_v41, %v5400_v42  ;;  %v3803_v31 = vpop.f32.mrb[91].mxu0  ;;  %6347 = vmatmul.mubr.msk.f32.gmra.mrb[58].mxu1 %vm89_vm0, %v3799_v11 }
 0xba4   :  { %v3804_v53 = vadd.f32 %v5400_v42, %v3803_v31 }
 0xba5   :  { %5035 = vst.msk [vmem:[%s9592_s6 + $0x58] sm:$0xff] %vm5023_vm14, %v3809_v24 }
 0xba6   :  { %v6290_v21 = vpop.f32.mrb[92].mxu0  ;;  %6349 = vmatprep.mubr.msk.f32.mxu1 %vm89_vm0, %v3804_v53  ;;  %5034 = vst.msk [vmem:[%s9592_s6 + $0x50] sm:$0xff] %vm5023_vm14, %v3804_v53 }
 0xba7   :  { %v3819_v58 = vadd.f32 %v6290_v21, %v5400_v42  ;;  %v3813_v61 = vpop.f32.mrb[93].mxu0  ;;  %6350 = vmatmul.mubr.msk.f32.gmra.mrb[60].mxu1 %vm89_vm0, %v3809_v24 }
 0xba8   :  { %v3814_v51 = vadd.f32 %v5400_v42, %v3813_v61 }
 0xba9   :  { %5037 = vst.msk [vmem:[%s9592_s6 + $0x68] sm:$0xff] %vm5023_vm14, %v3819_v58 }
 0xbaa   :  { %v6293_v8 = vpop.f32.mrb[94].mxu0  ;;  %6352 = vmatprep.mubr.msk.f32.mxu1 %vm89_vm0, %v3814_v51  ;;  %5036 = vst.msk [vmem:[%s9592_s6 + $0x60] sm:$0xff] %vm5023_vm14, %v3814_v51 }
 0xbab   :  { %v3829_v19 = vadd.f32 %v6293_v8, %v5400_v42  ;;  %v3823_v22 = vpop.f32.mrb[95].mxu0  ;;  %6353 = vmatmul.mubr.msk.f32.gmra.mrb[62].mxu1 %vm89_vm0, %v3819_v58 }
 0xbac   :  { %v3824_v13 = vadd.f32 %v5400_v42, %v3823_v22 }
 0xbad   :  { %5039 = vst.msk [vmem:[%s9592_s6 + $0x78] sm:$0xff] %vm5023_vm14, %v3829_v19 }
 0xbae   :  { %6355 = vmatprep.mubr.msk.f32.mxu1 %vm89_vm0, %v3824_v13  ;;  %5038 = vst.msk [vmem:[%s9592_s6 + $0x70] sm:$0xff] %vm5023_vm14, %v3824_v13 }
 0xbaf   :  { %6356 = vmatmul.mubr.msk.f32.gmra.mrb[64].mxu1 %vm89_vm0, %v3829_v19 }
 0xc66   :  { %v6336_v50 = vpop.f32.mrb[50].mxu1 }
 0xc67   :  { %v6714_v28 = vadd.f32 %v6336_v50, %v5421_v54  ;;  %v4111_v55 = vpop.f32.mrb[51].mxu1 }
 0xc68   :  { %v6716_v1 = vadd.f32 %v5421_v54, %v4111_v55 }
 0xc69   :  { %v6715_v56 = vadd.f32 %v6714_v28, %v5442_v52 }
 0xc6a   :  { %v6717_v34 = vadd.f32 %v6716_v1, %v5442_v52  ;;  %v6339_v2 = vpop.f32.mrb[52].mxu1 }
 0xc6b   :  { %v4207_v48 = vmul.f32 0.01, %v6715_v56  ;;  %v6719_v57 = vadd.f32 %v9316_v5, %v6339_v2  ;;  %v4121_v37 = vpop.f32.mrb[53].mxu1  ;;  %v5501_v2 = vld [vmem:[%s9589_s4 + $0x220] sm:$0xff] }
 0xc6c   :  { %v4206_v6 = vmul.f32 0.01, %v6717_v34  ;;  %v6721_v43 = vadd.f32 %v9316_v5, %v4121_v37  ;;  %v5504_v37 = vld [vmem:[%s9589_s4 + $0x238] sm:$0xff] }
 0xc6d   :  { %v4223_v12 = vmax.f32 %v6715_v56, %v4207_v48  ;;  %v4209_v63 = vmul.f32 0.01, %v6719_v57  ;;  %v5503_v48 = vld [vmem:[%s9589_s4 + $0x230] sm:$0xff] }
 0xc6e   :  { %v4222_v60 = vmax.f32 %v6717_v34, %v4206_v6  ;;  %v4208_v15 = vmul.f32 0.01, %v6721_v43  ;;  %v6342_v59 = vpop.f32.mrb[54].mxu1  ;;  %v6658_v6 = vpack.c.bf16 %v5504_v37, %v5503_v48 }
 0xc6f   :  { %v6723_v29 = vadd.f32 %v9316_v5, %v6342_v59  ;;  %v4131_v7 = vpop.f32.mrb[55].mxu1  ;;  %v4225_v23 = vmax.f32 %v6719_v57, %v4209_v63 }
 0xc70   :  { %v4224_v18 = vmax.f32 %v6721_v43, %v4208_v15  ;;  %v6725_v14 = vadd.f32 %v9316_v5, %v4131_v7  ;;  %6366 = vmatprep.mubr.msk.f32.mxu0 %vm89_vm0, %v4222_v60  ;;  %v9369_v43 = vld [vmem:[%s9591_s5 + $0xf] ss:$0 sm:$0xff] }
 0xc71   :  { %6367 = vmatmul.mubr.msk.f32.vlgmr.msra.gmra.mrb[96].mxu0 %vm89_vm0, %v4223_v12  ;;  %v4211_v16 = vmul.f32 0.01, %v6723_v29 }
 0xc72   :  { %v4210_v3 = vmul.f32 0.01, %v6725_v14  ;;  %v6345_v42 = vpop.f32.mrb[56].mxu1  ;;  %6369 = vmatprep.mubr.msk.f32.mxu0 %vm89_vm0, %v4224_v18  ;;  %6649 = vmatpush3.bf16.msra.mxu0 %v6646_v45 }
 0xc73   :  { %v6727_v17 = vadd.f32 %v9316_v5, %v6345_v42  ;;  %v4141_v27 = vpop.f32.mrb[57].mxu1  ;;  %6651 = vmatprep.subr.bf16.mxu0 %v6650_v0  ;;  %v4227_v40 = vmax.f32 %v6723_v29, %v4211_v16 }
 0xc74   :  { %v4226_v62 = vmax.f32 %v6725_v14, %v4210_v3  ;;  %v6729_v47 = vadd.f32 %v9316_v5, %v4141_v27 }
 0xc75   :  { %6370 = vmatmul.mubr.msk.f32.gmra.mrb[98].mxu0 %vm89_vm0, %v4225_v23  ;;  %v4213_v25 = vmul.f32 0.01, %v6727_v17 }
 0xc76   :  { %v4212_v30 = vmul.f32 0.01, %v6729_v47  ;;  %v6348_v10 = vpop.f32.mrb[58].mxu1  ;;  %6372 = vmatprep.mubr.msk.f32.mxu0 %vm89_vm0, %v4226_v62  ;;  %6653 = vmatpush3.bf16.msra.mxu0 %v6650_v0 }
 0xc77   :  { %v6731_v20 = vadd.f32 %v9316_v5, %v6348_v10  ;;  %v4151_v26 = vpop.f32.mrb[59].mxu1  ;;  %v4229_v49 = vmax.f32 %v6727_v17, %v4213_v25 }
 0xc78   :  { %v4228_v39 = vmax.f32 %v6729_v47, %v4212_v30  ;;  %v6733_v33 = vadd.f32 %v9316_v5, %v4151_v26 }
 0xc79   :  { %6373 = vmatmul.mubr.msk.f32.gmra.mrb[100].mxu0 %vm89_vm0, %v4227_v40  ;;  %v4215_v11 = vmul.f32 0.01, %v6731_v20 }
 0xc7a   :  { %v4214_v4 = vmul.f32 0.01, %v6733_v33  ;;  %v6351_v36 = vpop.f32.mrb[60].mxu1  ;;  %6375 = vmatprep.mubr.msk.f32.mxu0 %vm89_vm0, %v4228_v39 }
 0xc7b   :  { %v6735_v35 = vadd.f32 %v9316_v5, %v6351_v36  ;;  %v4161_v32 = vpop.f32.mrb[61].mxu1  ;;  %v4231_v21 = vmax.f32 %v6731_v20, %v4215_v11 }
 0xc7c   :  { %v4230_v41 = vmax.f32 %v6733_v33, %v4214_v4  ;;  %v6737_v24 = vadd.f32 %v9316_v5, %v4161_v32 }
 0xc7d   :  { %6376 = vmatmul.mubr.msk.f32.gmra.mrb[102].mxu0 %vm89_vm0, %v4229_v49  ;;  %v4217_v58 = vmul.f32 0.01, %v6735_v35 }
 0xc7e   :  { %v4216_v31 = vmul.f32 0.01, %v6737_v24  ;;  %v6354_v53 = vpop.f32.mrb[62].mxu1  ;;  %6378 = vmatprep.mubr.msk.f32.mxu0 %vm89_vm0, %v4230_v41 }
 0xc7f   :  { %v6739_v61 = vadd.f32 %v9316_v5, %v6354_v53  ;;  %v4171_v51 = vpop.f32.mrb[63].mxu1  ;;  %v4233_v44 = vmax.f32 %v6735_v35, %v4217_v58 }
 0xc80   :  { %v4232_v8 = vmax.f32 %v6737_v24, %v4216_v31  ;;  %v6741_v19 = vadd.f32 %v9316_v5, %v4171_v51 }
 0xc81   :  { %6379 = vmatmul.mubr.msk.f32.gmra.mrb[104].mxu0 %vm89_vm0, %v4231_v21  ;;  %v4219_v38 = vmul.f32 0.01, %v6739_v61 }
 0xc82   :  { %v4218_v22 = vmul.f32 0.01, %v6741_v19  ;;  %v6357_v13 = vpop.f32.mrb[64].mxu1  ;;  %6381 = vmatprep.mubr.msk.f32.mxu0 %vm89_vm0, %v4232_v8 }
 0xc83   :  { %v6743_v45 = vadd.f32 %v9316_v5, %v6357_v13  ;;  %v4181_v54 = vpop.f32.mrb[65].mxu1  ;;  %v4235_v55 = vmax.f32 %v6739_v61, %v4219_v38 }
 0xc84   :  { %v4234_v52 = vmax.f32 %v6741_v19, %v4218_v22  ;;  %v6745_v50 = vadd.f32 %v9316_v5, %v4181_v54  ;;  %v5502_v5 = vld [vmem:[%s9589_s4 + $0x228] sm:$0xff] }
 0xc85   :  { %6382 = vmatmul.mubr.msk.f32.gmra.mrb[106].mxu0 %vm89_vm0, %v4233_v44  ;;  %v4221_v1 = vmul.f32 0.01, %v6743_v45  ;;  %v6654_v57 = vpack.c.bf16 %v5502_v5, %v5501_v2 }
 0xc86   :  { %v4220_v28 = vmul.f32 0.01, %v6745_v50  ;;  %6384 = vmatprep.mubr.msk.f32.mxu0 %vm89_vm0, %v4234_v52 }
 0xc87   :  { %v4237_v34 = vmax.f32 %v6743_v45, %v4221_v1  ;;  %6655 = vmatprep.subr.bf16.mxu0 %v6654_v57  ;;  %6662 = vmatprep.subr.bf16.mxu1 %v6654_v57 }
 0xc88   :  { %v4236_v56 = vmax.f32 %v6745_v50, %v4220_v28  ;;  %6664 = vmatpush3.bf16.msra.mxu1 %v6654_v57 }
 0xc89   :  { %6385 = vmatmul.mubr.msk.f32.gmra.mrb[108].mxu0 %vm89_vm0, %v4235_v55  ;;  %6663 = vmatprep.subr.bf16.mxu1 %v6658_v6 }
 0xc8a   :  { %6387 = vmatprep.mubr.msk.f32.mxu0 %vm89_vm0, %v4236_v56 }
 0xc8c   :  { %6665 = vmatpush3.bf16.msra.mxu1 %v6658_v6 }
 0xc8d   :  { %6388 = vmatmul.mubr.msk.f32.gmra.mrb[110].mxu0 %vm89_vm0, %v4237_v34 }
 0xd44   :  { %v6368_v9 = vpop.f32.mrb[96].mxu0 }
 0xd45   :  { %v4368_v46 = vadd.f32 %v6368_v9, %v9369_v43  ;;  %v4362_v60 = vpop.f32.mrb[97].mxu0 }
 0xd46   :  { %v4363_v15 = vadd.f32 %v9369_v43, %v4362_v60 }
 0xd47   :  { %v4442_v59 = vmul.f32 0.01, %v4368_v46 }
 0xd48   :  { %v4441_v12 = vmul.f32 0.01, %v4363_v15  ;;  %v6371_v63 = vpop.f32.mrb[98].mxu0 }
 0xd49   :  { %v4378_v29 = vadd.f32 %v6371_v63, %v9369_v43  ;;  %v4372_v7 = vpop.f32.mrb[99].mxu0  ;;  %v4458_v14 = vmax.f32 %v4368_v46, %v4442_v59  ;;  %v9406_v46 = vld [vmem:[%s9591_s5 + $0x10] ss:$0 sm:$0xff] }
 0xd4a   :  { %v4457_v0 = vmax.f32 %v4363_v15, %v4441_v12  ;;  %v4373_v18 = vadd.f32 %v9369_v43, %v4372_v7 }
 0xd4b   :  { %v4444_v3 = vmul.f32 0.01, %v4378_v29 }
 0xd4c   :  { %v4443_v42 = vmul.f32 0.01, %v4373_v18  ;;  %v6374_v23 = vpop.f32.mrb[100].mxu0  ;;  %6398 = vmatprep.mubr.msk.f32.mxu0 %vm89_vm0, %v4457_v0 }
 0xd4d   :  { %v4388_v16 = vadd.f32 %v6374_v23, %v9369_v43  ;;  %v4382_v17 = vpop.f32.mrb[101].mxu0  ;;  %6399 = vmatmul.mubr.msk.f32.vlgmr.msra.gmra.mrb[112].mxu0 %vm89_vm0, %v4458_v14  ;;  %v4460_v47 = vmax.f32 %v4378_v29, %v4444_v3 }
 0xd4e   :  { %v4459_v27 = vmax.f32 %v4373_v18, %v4443_v42  ;;  %v4383_v62 = vadd.f32 %v9369_v43, %v4382_v17  ;;  %6657 = vmatpush3.bf16.msra.mxu0 %v6654_v57 }
 0xd4f   :  { %v4446_v30 = vmul.f32 0.01, %v4388_v16  ;;  %6659 = vmatprep.subr.bf16.mxu0 %v6658_v6 }
 0xd50   :  { %v4445_v10 = vmul.f32 0.01, %v4383_v62  ;;  %v6377_v40 = vpop.f32.mrb[102].mxu0  ;;  %6401 = vmatprep.mubr.msk.f32.mxu0 %vm89_vm0, %v4459_v27 }
 0xd51   :  { %v4398_v25 = vadd.f32 %v6377_v40, %v9369_v43  ;;  %v4392_v20 = vpop.f32.mrb[103].mxu0  ;;  %6402 = vmatmul.mubr.msk.f32.gmra.mrb[114].mxu0 %vm89_vm0, %v4460_v47  ;;  %v4462_v33 = vmax.f32 %v4388_v16, %v4446_v30 }
 0xd52   :  { %v4461_v26 = vmax.f32 %v4383_v62, %v4445_v10  ;;  %v4393_v39 = vadd.f32 %v9369_v43, %v4392_v20  ;;  %6661 = vmatpush3.bf16.msra.mxu0 %v6658_v6 }
 0xd53   :  { %v4448_v4 = vmul.f32 0.01, %v4398_v25 }
 0xd54   :  { %v4447_v36 = vmul.f32 0.01, %v4393_v39  ;;  %v6380_v49 = vpop.f32.mrb[104].mxu0  ;;  %6404 = vmatprep.mubr.msk.f32.mxu0 %vm89_vm0, %v4461_v26 }
 0xd55   :  { %v4408_v11 = vadd.f32 %v6380_v49, %v9369_v43  ;;  %v4402_v35 = vpop.f32.mrb[105].mxu0  ;;  %6405 = vmatmul.mubr.msk.f32.gmra.mrb[116].mxu0 %vm89_vm0, %v4462_v33  ;;  %v4464_v24 = vmax.f32 %v4398_v25, %v4448_v4 }
 0xd56   :  { %v4463_v32 = vmax.f32 %v4393_v39, %v4447_v36  ;;  %v4403_v41 = vadd.f32 %v9369_v43, %v4402_v35 }
 0xd57   :  { %v4450_v31 = vmul.f32 0.01, %v4408_v11 }
 0xd58   :  { %v4449_v53 = vmul.f32 0.01, %v4403_v41  ;;  %v6383_v21 = vpop.f32.mrb[106].mxu0  ;;  %6407 = vmatprep.mubr.msk.f32.mxu0 %vm89_vm0, %v4463_v32 }
 0xd59   :  { %v4418_v58 = vadd.f32 %v6383_v21, %v9369_v43  ;;  %v4412_v61 = vpop.f32.mrb[107].mxu0  ;;  %6408 = vmatmul.mubr.msk.f32.gmra.mrb[118].mxu0 %vm89_vm0, %v4464_v24  ;;  %v4466_v19 = vmax.f32 %v4408_v11, %v4450_v31 }
 0xd5a   :  { %v4465_v51 = vmax.f32 %v4403_v41, %v4449_v53  ;;  %v4413_v8 = vadd.f32 %v9369_v43, %v4412_v61 }
 0xd5b   :  { %v4452_v22 = vmul.f32 0.01, %v4418_v58 }
 0xd5c   :  { %v4451_v13 = vmul.f32 0.01, %v4413_v8  ;;  %v6386_v44 = vpop.f32.mrb[108].mxu0  ;;  %6410 = vmatprep.mubr.msk.f32.mxu0 %vm89_vm0, %v4465_v51 }
 0xd5d   :  { %v4428_v38 = vadd.f32 %v6386_v44, %v9369_v43  ;;  %v4422_v45 = vpop.f32.mrb[109].mxu0  ;;  %6411 = vmatmul.mubr.msk.f32.gmra.mrb[120].mxu0 %vm89_vm0, %v4466_v19  ;;  %v4468_v50 = vmax.f32 %v4418_v58, %v4452_v22 }
 0xd5e   :  { %v4467_v54 = vmax.f32 %v4413_v8, %v4451_v13  ;;  %v4423_v52 = vadd.f32 %v9369_v43, %v4422_v45 }
 0xd5f   :  { %v4454_v28 = vmul.f32 0.01, %v4428_v38 }
 0xd60   :  { %v4453_v55 = vmul.f32 0.01, %v4423_v52  ;;  %v6389_v1 = vpop.f32.mrb[110].mxu0  ;;  %6413 = vmatprep.mubr.msk.f32.mxu0 %vm89_vm0, %v4467_v54 }
 0xd61   :  { %v4438_v56 = vadd.f32 %v6389_v1, %v9369_v43  ;;  %v4432_v34 = vpop.f32.mrb[111].mxu0  ;;  %6414 = vmatmul.mubr.msk.f32.gmra.mrb[122].mxu0 %vm89_vm0, %v4468_v50  ;;  %v4470_v48 = vmax.f32 %v4428_v38, %v4454_v28 }
 0xd62   :  { %v4469_v2 = vmax.f32 %v4423_v52, %v4453_v55  ;;  %v4433_v5 = vadd.f32 %v9369_v43, %v4432_v34 }
 0xd63   :  { %v4456_v57 = vmul.f32 0.01, %v4438_v56 }
 0xd64   :  { %v4455_v37 = vmul.f32 0.01, %v4433_v5  ;;  %6416 = vmatprep.mubr.msk.f32.mxu0 %vm89_vm0, %v4469_v2 }
 0xd65   :  { %6417 = vmatmul.mubr.msk.f32.gmra.mrb[124].mxu0 %vm89_vm0, %v4470_v48  ;;  %v4472_v9 = vmax.f32 %v4438_v56, %v4456_v57 }
 0xd66   :  { %v4471_v6 = vmax.f32 %v4433_v5, %v4455_v37 }
 0xd68   :  { %6419 = vmatprep.mubr.msk.f32.mxu0 %vm89_vm0, %v4471_v6 }
 0xd69   :  { %6420 = vmatmul.mubr.msk.f32.gmra.mrb[126].mxu0 %vm89_vm0, %v4472_v9 }
 0xe20   :  { %v6400_v60 = vpop.f32.mrb[112].mxu0 }
 0xe21   :  { %v4603_v43 = vadd.f32 %v6400_v60, %v9406_v46  ;;  %v4597_v15 = vpop.f32.mrb[113].mxu0 }
 0xe22   :  { %v4598_v59 = vadd.f32 %v9406_v46, %v4597_v15 }
 0xe23   :  { %v4677_v12 = vmul.f32 0.01, %v4603_v43 }
 0xe24   :  { %v4676_v63 = vmul.f32 0.01, %v4598_v59  ;;  %v6403_v29 = vpop.f32.mrb[114].mxu0 }
 0xe25   :  { %v4613_v7 = vadd.f32 %v6403_v29, %v9406_v46  ;;  %v4607_v0 = vpop.f32.mrb[115].mxu0  ;;  %v4693_v3 = vmax.f32 %v4603_v43, %v4677_v12  ;;  %v5505_v43 = vld [vmem:[%s9591_s5 + $0x11] ss:$0 sm:$0xff] }
 0xe26   :  { %v4692_v18 = vmax.f32 %v4598_v59, %v4676_v63  ;;  %v4608_v14 = vadd.f32 %v9406_v46, %v4607_v0 }
 0xe27   :  { %v4679_v42 = vmul.f32 0.01, %v4613_v7 }
 0xe28   :  { %v4678_v23 = vmul.f32 0.01, %v4608_v14  ;;  %v6406_v16 = vpop.f32.mrb[116].mxu0  ;;  %6430 = vmatprep.mubr.msk.f32.mxu0 %vm89_vm0, %v4692_v18 }
 0xe29   :  { %v4623_v17 = vadd.f32 %v6406_v16, %v9406_v46  ;;  %v4617_v27 = vpop.f32.mrb[117].mxu0  ;;  %6431 = vmatmul.mubr.msk.f32.vlgmr.msra.gmra.mrb[128].mxu0 %vm89_vm0, %v4693_v3  ;;  %v4695_v30 = vmax.f32 %v4613_v7, %v4679_v42 }
 0xe2a   :  { %v4694_v62 = vmax.f32 %v4608_v14, %v4678_v23  ;;  %v4618_v47 = vadd.f32 %v9406_v46, %v4617_v27 }
 0xe2b   :  { %v4681_v10 = vmul.f32 0.01, %v4623_v17 }
 0xe2c   :  { %v4680_v40 = vmul.f32 0.01, %v4618_v47  ;;  %v6409_v25 = vpop.f32.mrb[118].mxu0  ;;  %6433 = vmatprep.mubr.msk.f32.mxu1 %vm89_vm0, %v4694_v62 }
 0xe2d   :  { %v4633_v20 = vadd.f32 %v6409_v25, %v9406_v46  ;;  %v4627_v26 = vpop.f32.mrb[119].mxu0  ;;  %6434 = vmatmul.mubr.msk.f32.vlgmr.msra.gmra.mrb[66].mxu1 %vm89_vm0, %v4695_v30  ;;  %v4697_v4 = vmax.f32 %v4623_v17, %v4681_v10 }
 0xe2e   :  { %v4696_v39 = vmax.f32 %v4618_v47, %v4680_v40  ;;  %v4628_v33 = vadd.f32 %v9406_v46, %v4627_v26 }
 0xe2f   :  { %v4683_v36 = vmul.f32 0.01, %v4633_v20 }
 0xe30   :  { %v4682_v49 = vmul.f32 0.01, %v4628_v33  ;;  %v6412_v11 = vpop.f32.mrb[120].mxu0  ;;  %6436 = vmatprep.mubr.msk.f32.mxu1 %vm89_vm0, %v4696_v39 }
 0xe31   :  { %v4643_v35 = vadd.f32 %v6412_v11, %v9406_v46  ;;  %v4637_v32 = vpop.f32.mrb[121].mxu0  ;;  %6437 = vmatmul.mubr.msk.f32.gmra.mrb[68].mxu1 %vm89_vm0, %v4697_v4  ;;  %v4699_v31 = vmax.f32 %v4633_v20, %v4683_v36 }
 0xe32   :  { %v4698_v41 = vmax.f32 %v4628_v33, %v4682_v49  ;;  %v4638_v24 = vadd.f32 %v9406_v46, %v4637_v32 }
 0xe33   :  { %v4685_v53 = vmul.f32 0.01, %v4643_v35 }
 0xe34   :  { %v4684_v21 = vmul.f32 0.01, %v4638_v24  ;;  %v6415_v58 = vpop.f32.mrb[122].mxu0  ;;  %6439 = vmatprep.mubr.msk.f32.mxu1 %vm89_vm0, %v4698_v41  ;;  %v4912_v41 = vld [vmem:[%s9593_s0 + $0x8] sm:$0xff] }
 0xe35   :  { %v4653_v61 = vadd.f32 %v6415_v58, %v9406_v46  ;;  %v4647_v51 = vpop.f32.mrb[123].mxu0  ;;  %6440 = vmatmul.mubr.msk.f32.gmra.mrb[70].mxu1 %vm89_vm0, %v4699_v31  ;;  %v4701_v22 = vmax.f32 %v4643_v35, %v4685_v53 }
 0xe36   :  { %v4700_v8 = vmax.f32 %v4638_v24, %v4684_v21  ;;  %v4648_v19 = vadd.f32 %v9406_v46, %v4647_v51  ;;  %v4911_v24 = vld [vmem:[%s9593_s0] sm:$0xff] }
 0xe37   :  { %v4687_v13 = vmul.f32 0.01, %v4653_v61 }
 0xe38   :  { %v4686_v44 = vmul.f32 0.01, %v4648_v19  ;;  %v6418_v38 = vpop.f32.mrb[124].mxu0  ;;  %6442 = vmatprep.mubr.msk.f32.mxu1 %vm89_vm0, %v4700_v8 }
 0xe39   :  { %v4663_v45 = vadd.f32 %v6418_v38, %v9406_v46  ;;  %v4657_v54 = vpop.f32.mrb[125].mxu0  ;;  %6443 = vmatmul.mubr.msk.f32.gmra.mrb[72].mxu1 %vm89_vm0, %v4701_v22  ;;  %v4703_v28 = vmax.f32 %v4653_v61, %v4687_v13  ;;  %v4914_v61 = vld [vmem:[%s9593_s0 + $0x18] sm:$0xff]  ;;  %v4915_v38 = vld [vmem:[%s9593_s0 + $0x20] sm:$0xff] }
 0xe3a   :  { %v4702_v52 = vmax.f32 %v4648_v19, %v4686_v44  ;;  %v4658_v50 = vadd.f32 %v9406_v46, %v4657_v54  ;;  %v4913_v19 = vld [vmem:[%s9593_s0 + $0x10] sm:$0xff] }
 0xe3b   :  { %v4689_v55 = vmul.f32 0.01, %v4663_v45 }
 0xe3c   :  { %v4688_v1 = vmul.f32 0.01, %v4658_v50  ;;  %v6421_v56 = vpop.f32.mrb[126].mxu0  ;;  %6445 = vmatprep.mubr.msk.f32.mxu1 %vm89_vm0, %v4702_v52 }
 0xe3d   :  { %v4673_v34 = vadd.f32 %v6421_v56, %v9406_v46  ;;  %v4667_v2 = vpop.f32.mrb[127].mxu0  ;;  %6446 = vmatmul.mubr.msk.f32.gmra.mrb[74].mxu1 %vm89_vm0, %v4703_v28  ;;  %v4705_v57 = vmax.f32 %v4663_v45, %v4689_v55  ;;  %v4916_v45 = vld [vmem:[%s9593_s0 + $0x28] sm:$0xff]  ;;  %v4917_v55 = vld [vmem:[%s9593_s0 + $0x30] sm:$0xff] }
 0xe3e   :  { %v4704_v5 = vmax.f32 %v4658_v50, %v4688_v1  ;;  %v4668_v48 = vadd.f32 %v9406_v46, %v4667_v2  ;;  %v4918_v1 = vld [vmem:[%s9593_s0 + $0x38] sm:$0xff] }
 0xe3f   :  { %v4691_v37 = vmul.f32 0.01, %v4673_v34 }
 0xe40   :  { %v4690_v6 = vmul.f32 0.01, %v4668_v48  ;;  %6448 = vmatprep.mubr.msk.f32.mxu1 %vm89_vm0, %v4704_v5 }
 0xe41   :  { %6449 = vmatmul.mubr.msk.f32.gmra.mrb[76].mxu1 %vm89_vm0, %v4705_v57  ;;  %v4707_v60 = vmax.f32 %v4673_v34, %v4691_v37  ;;  %v4920_v57 = vld [vmem:[%s9593_s0 + $0x48] sm:$0xff] }
 0xe42   :  { %v4706_v9 = vmax.f32 %v4668_v48, %v4690_v6  ;;  %v4919_v48 = vld [vmem:[%s9593_s0 + $0x40] sm:$0xff] }
 0xe44   :  { %6451 = vmatprep.mubr.msk.f32.mxu1 %vm89_vm0, %v4706_v9 }
 0xe45   :  { %6452 = vmatmul.mubr.msk.f32.gmra.mrb[78].mxu1 %vm89_vm0, %v4707_v60  ;;  %vm5104_vm0 = vcmask 80944  }
 0xefc   :  { %v6432_v15 = vpop.f32.mrb[128].mxu0 }
 0xefd   :  { %v4838_v59 = vadd.f32 %v6432_v15, %v5505_v43  ;;  %v4832_v46 = vpop.f32.mrb[129].mxu0  ;;  %v4922_v15 = vld [vmem:[%s9593_s0 + $0x58] sm:$0xff] }
 0xefe   :  { %v4833_v12 = vadd.f32 %v5505_v43, %v4832_v46 }
 0xeff   :  { %4945 = vrot.lane.b32.xlu1 %v4838_v59, %s6899_s3 }
 0xf00   :  { %v6435_v63 = vpop.f32.mrb[66].mxu1  ;;  %4943 = vrot.lane.b32.xlu0 %v4833_v12, %s6899_s3 }
 0xf01   :  { %v4848_v29 = vadd.f32 %v6435_v63, %v5505_v43  ;;  %v4842_v7 = vpop.f32.mrb[67].mxu1 }
 0xf02   :  { %v4843_v18 = vadd.f32 %v5505_v43, %v4842_v7  ;;  %v4924_v7 = vld [vmem:[%s9593_s0 + $0x68] sm:$0xff] }
 0xf03   :  { %4949 = vrot.lane.b32.xlu1 %v4848_v29, %s6899_s3  ;;  %v4923_v29 = vld [vmem:[%s9593_s0 + $0x60] sm:$0xff] }
 0xf04   :  { %v6438_v0 = vpop.f32.mrb[68].mxu1 }
 0xf05   :  { %v4852_v14 = vpop.f32.mrb[69].mxu1  ;;  %v4858_v23 = vadd.f32 %v6438_v0, %v5505_v43 }
 0xf06   :  { %v4853_v3 = vadd.f32 %v5505_v43, %v4852_v14 }
 0xf07   :  { %4947 = vrot.lane.b32.xlu1 %v4843_v18, %s6899_s3 }
 0xf08   :  { %v6441_v42 = vpop.f32.mrb[70].mxu1  ;;  %4951 = vrot.lane.b32.xlu0 %v4853_v3, %s6899_s3 }
 0xf09   :  { %v4862_v16 = vpop.f32.mrb[71].mxu1  ;;  %v4868_v62 = vadd.f32 %v6441_v42, %v5505_v43  ;;  %v4925_v42 = vld [vmem:[%s9593_s0 + $0x70] sm:$0xff] }
 0xf0a   :  { %v4863_v17 = vadd.f32 %v5505_v43, %v4862_v16 }
 0xf0b   :  { %4953 = vrot.lane.b32.xlu1 %v4858_v23, %s6899_s3  ;;  %v4926_v23 = vld [vmem:[%s9593_s0 + $0x78] sm:$0xff] }
 0xf0c   :  { %v6444_v27 = vpop.f32.mrb[72].mxu1  ;;  %4955 = vrot.lane.b32.xlu0 %v4863_v17, %s6899_s3 }
 0xf0d   :  { %v4872_v47 = vpop.f32.mrb[73].mxu1  ;;  %v4878_v40 = vadd.f32 %v6444_v27, %v5505_v43 }
 0xf0e   :  { %v4873_v30 = vadd.f32 %v5505_v43, %v4872_v47 }
 0xf0f   :  { %4957 = vrot.lane.b32.xlu1 %v4868_v62, %s6899_s3 }
 0xf10   :  { %v6447_v10 = vpop.f32.mrb[74].mxu1  ;;  %4959 = vrot.lane.b32.xlu0 %v4873_v30, %s6899_s3 }
 0xf11   :  { %v4882_v25 = vpop.f32.mrb[75].mxu1  ;;  %v4888_v39 = vadd.f32 %v6447_v10, %v5505_v43 }
 0xf12   :  { %v4883_v20 = vadd.f32 %v5505_v43, %v4882_v25 }
 0xf13   :  { %4961 = vrot.lane.b32.xlu1 %v4878_v40, %s6899_s3 }
 0xf14   :  { %v6450_v26 = vpop.f32.mrb[76].mxu1  ;;  %4963 = vrot.lane.b32.xlu0 %v4883_v20, %s6899_s3 }
 0xf15   :  { %v4892_v33 = vpop.f32.mrb[77].mxu1  ;;  %v4898_v49 = vadd.f32 %v6450_v26, %v5505_v43 }
 0xf16   :  { %v4893_v4 = vadd.f32 %v5505_v43, %v4892_v33 }
 0xf17   :  { %4965 = vrot.lane.b32.xlu1 %v4888_v39, %s6899_s3 }
 0xf18   :  { %4967 = vrot.lane.b32.xlu0 %v4893_v4, %s6899_s3  ;;  %v6453_v36 = vpop.f32.mrb[78].mxu1 }
 0xf19   :  { %v4902_v11 = vpop.f32.mrb[79].mxu1  ;;  %v4908_v32 = vadd.f32 %v6453_v36, %v5505_v43 }
 0xf1a   :  { %v4903_v35 = vadd.f32 %v5505_v43, %v4902_v11  ;;  %v4921_v43 = vld [vmem:[%s9593_s0 + $0x50] sm:$0xff] }
 0xf1b   :  { %4969 = vrot.lane.b32.xlu1 %v4898_v49, %s6899_s3 }
 0xf1c   :  { %4971 = vrot.lane.b32.xlu0 %v4903_v35, %s6899_s3 }
 0xf1f   :  { %4973 = vrot.lane.b32.xlu1 %v4908_v32, %s6899_s3 }
 0xf71   :  { %v4946_v31 = vpop.permute.xlu1 %4945 }
 0xf72   :  { %v4992_v53 = vadd.f32 %v4946_v31, %v4912_v41  ;;  %v4944_v21 = vpop.permute.xlu0 %4943 }
 0xf73   :  { %v4991_v58 = vadd.f32 %v4944_v21, %v4911_v24 }
 0xf74   :  { %5058 = vrot.lane.b32.xlu1 %v4992_v53, %s6899_s3 }
 0xf75   :  { %v4950_v51 = vpop.permute.xlu1 %4949  ;;  %5056 = vrot.lane.b32.xlu0 %v4991_v58, %s6899_s3 }
 0xf76   :  { %v4994_v8 = vadd.f32 %v4950_v51, %v4914_v61 }
 0xf78   :  { %5062 = vrot.lane.b32.xlu1 %v4994_v8, %s6899_s3 }
 0xf79   :  { %v4948_v22 = vpop.permute.xlu1 %4947 }
 0xf7a   :  { %v4993_v13 = vadd.f32 %v4948_v22, %v4913_v19  ;;  %v4952_v44 = vpop.permute.xlu0 %4951 }
 0xf7b   :  { %v4995_v52 = vadd.f32 %v4952_v44, %v4915_v38 }
 0xf7c   :  { %5060 = vrot.lane.b32.xlu0 %v4993_v13, %s6899_s3 }
 0xf7d   :  { %v4954_v54 = vpop.permute.xlu1 %4953 }
 0xf7e   :  { %v4996_v50 = vadd.f32 %v4954_v54, %v4916_v45  ;;  %v4956_v28 = vpop.permute.xlu0 %4955 }
 0xf7f   :  { %v4997_v34 = vadd.f32 %v4956_v28, %v4917_v55 }
 0xf80   :  { %5066 = vrot.lane.b32.xlu1 %v4996_v50, %s6899_s3  ;;  %5064 = vrot.lane.b32.xlu0 %v4995_v52, %s6899_s3 }
 0xf81   :  { %v4958_v56 = vpop.permute.xlu1 %4957 }
 0xf82   :  { %v4998_v2 = vadd.f32 %v4958_v56, %v4918_v1  ;;  %v4960_v5 = vpop.permute.xlu0 %4959 }
 0xf83   :  { %v4999_v6 = vadd.f32 %v4960_v5, %v4919_v48 }
 0xf84   :  { %5070 = vrot.lane.b32.xlu1 %v4998_v2, %s6899_s3  ;;  %5068 = vrot.lane.b32.xlu0 %v4997_v34, %s6899_s3 }
 0xf85   :  { %v4962_v37 = vpop.permute.xlu1 %4961 }
 0xf86   :  { %v5000_v9 = vadd.f32 %v4962_v37, %v4920_v57  ;;  %v4964_v60 = vpop.permute.xlu0 %4963 }
 0xf87   :  { %v5001_v46 = vadd.f32 %v4964_v60, %v4921_v43 }
 0xf88   :  { %5074 = vrot.lane.b32.xlu1 %v5000_v9, %s6899_s3  ;;  %5072 = vrot.lane.b32.xlu0 %v4999_v6, %s6899_s3 }
 0xf89   :  { %v4966_v59 = vpop.permute.xlu1 %4965 }
 0xf8a   :  { %v5002_v12 = vadd.f32 %v4966_v59, %v4922_v15  ;;  %v4968_v63 = vpop.permute.xlu0 %4967 }
 0xf8b   :  { %v5003_v18 = vadd.f32 %v4968_v63, %v4923_v29 }
 0xf8c   :  { %5078 = vrot.lane.b32.xlu1 %v5002_v12, %s6899_s3  ;;  %5076 = vrot.lane.b32.xlu0 %v5001_v46, %s6899_s3 }
 0xf8d   :  { %v4970_v0 = vpop.permute.xlu1 %4969 }
 0xf8e   :  { %v5004_v14 = vadd.f32 %v4970_v0, %v4924_v7  ;;  %v4972_v3 = vpop.permute.xlu0 %4971 }
 0xf8f   :  { %v5005_v17 = vadd.f32 %v4972_v3, %v4925_v42 }
 0xf90   :  { %5082 = vrot.lane.b32.xlu1 %v5004_v14, %s6899_s3  ;;  %5080 = vrot.lane.b32.xlu0 %v5003_v18, %s6899_s3 }
 0xf91   :  { %v4974_v16 = vpop.permute.xlu1 %4973 }
 0xf92   :  { %v5006_v27 = vadd.f32 %v4974_v16, %v4926_v23 }
 0xf94   :  { %5086 = vrot.lane.b32.xlu1 %v5006_v27, %s6899_s3  ;;  %5084 = vrot.lane.b32.xlu0 %v5005_v17, %s6899_s3 }
 0xfe6   :  { %v5059_v62 = vpop.permute.xlu1 %5058 }
 0xfe7   :  { %5106 = vst.msk [vmem:[%s9592_s6 + $0x8] sm:$0xff] %vm5104_vm0, %v5059_v62  ;;  %v5057_v47 = vpop.permute.xlu0 %5056 }
 0xfe8   :  { %5105 = vst.msk [vmem:[%s9592_s6] sm:$0xff] %vm5104_vm0, %v5057_v47 }
 0xfea   :  { %v5063_v30 = vpop.permute.xlu1 %5062 }
 0xfeb   :  { %5108 = vst.msk [vmem:[%s9592_s6 + $0x18] sm:$0xff] %vm5104_vm0, %v5063_v30 }
 0xfee   :  { %v5061_v10 = vpop.permute.xlu0 %5060 }
 0xfef   :  { %5107 = vst.msk [vmem:[%s9592_s6 + $0x10] sm:$0xff] %vm5104_vm0, %v5061_v10 }
 0xff2   :  { %v5067_v40 = vpop.permute.xlu1 %5066  ;;  %v5065_v25 = vpop.permute.xlu0 %5064 }
 0xff3   :  { %5110 = vst.msk [vmem:[%s9592_s6 + $0x28] sm:$0xff] %vm5104_vm0, %v5067_v40  ;;  %5109 = vst.msk [vmem:[%s9592_s6 + $0x20] sm:$0xff] %vm5104_vm0, %v5065_v25 }
 0xff6   :  { %v5071_v20 = vpop.permute.xlu1 %5070  ;;  %v5069_v26 = vpop.permute.xlu0 %5068 }
 0xff7   :  { %5112 = vst.msk [vmem:[%s9592_s6 + $0x38] sm:$0xff] %vm5104_vm0, %v5071_v20  ;;  %5111 = vst.msk [vmem:[%s9592_s6 + $0x30] sm:$0xff] %vm5104_vm0, %v5069_v26 }
 0xffa   :  { %v5075_v39 = vpop.permute.xlu1 %5074  ;;  %v5073_v33 = vpop.permute.xlu0 %5072 }
 0xffb   :  { %5114 = vst.msk [vmem:[%s9592_s6 + $0x48] sm:$0xff] %vm5104_vm0, %v5075_v39  ;;  %5113 = vst.msk [vmem:[%s9592_s6 + $0x40] sm:$0xff] %vm5104_vm0, %v5073_v33 }
 0xffe   :  { %v5079_v4 = vpop.permute.xlu1 %5078  ;;  %v5077_v36 = vpop.permute.xlu0 %5076 }
 0xfff   :  { %5116 = vst.msk [vmem:[%s9592_s6 + $0x58] sm:$0xff] %vm5104_vm0, %v5079_v4  ;;  %5115 = vst.msk [vmem:[%s9592_s6 + $0x50] sm:$0xff] %vm5104_vm0, %v5077_v36 }
0x1002   :  { %v5083_v49 = vpop.permute.xlu1 %5082  ;;  %v5081_v11 = vpop.permute.xlu0 %5080 }
0x1003   :  { %5118 = vst.msk [vmem:[%s9592_s6 + $0x68] sm:$0xff] %vm5104_vm0, %v5083_v49  ;;  %5117 = vst.msk [vmem:[%s9592_s6 + $0x60] sm:$0xff] %vm5104_vm0, %v5081_v11 }
0x1006   :  { %v5087_v35 = vpop.permute.xlu1 %5086  ;;  %v5085_v32 = vpop.permute.xlu0 %5084 }
0x1007   :  { %5120 = vst.msk [vmem:[%s9592_s6 + $0x78] sm:$0xff] %vm5104_vm0, %v5087_v35  ;;  %5119 = vst.msk [vmem:[%s9592_s6 + $0x70] sm:$0xff] %vm5104_vm0, %v5085_v32 }

</bundles_post_ra>
